<compile_context>
chip_gen: v6e
topology: v6e:2x2x1
jax: 0.10.0
libtpu: 0.0.40
codegen_flags: <defaults>
</compile_context>

<pallas_src>
import jax
import jax.numpy as jnp
import numpy as np
from jax.experimental import pallas as pl
from jax.experimental.pallas import tpu as pltpu

CONV_N_MAPS = [4, 32, 32]
CONV_KERNEL_SIZES = [(4, 4), (2, 2)]
CONV_STRIDES = [2, 2]
CONV_PADDINGS = [2, 0]
N_HIDDEN_IN = 32 * 11 * 10
N_HIDDEN = [512, 128]
BN_EPS = 1e-5

H_IN, W_IN = 44, 40          # input spatial size implied by N_HIDDEN_IN = 32*11*10
HO2, WO2 = 11, 10            # conv2 output grid
S2 = HO2 * WO2               # 110 spatial positions after conv2
C1 = CONV_N_MAPS[1]          # 32 conv1 output channels
C2 = CONV_N_MAPS[2]          # 32 conv2 output channels
K1 = CONV_N_MAPS[0] * CONV_KERNEL_SIZES[0][0] * CONV_KERNEL_SIZES[0][1]  # 64


# ------------------------------ Pallas kernels ------------------------------ #
def _conv_stage_kernel(p_ref, w1_ref, s1_ref, b1_ref, w2_ref, s2_ref, b2_ref,
                       o_ref):
    """Fused conv1 + BN1 + ReLU + conv2 + BN2 + ReLU.

    p_ref : (4, B*S2, K1) conv1 im2col patches, grouped by the conv2 patch
            offset q = di*2 + dj (so conv2 needs no strided gather in-kernel).
    w1_ref: (K1, C1)      conv1 weight as a matmul operand.
    w2_ref: (4, C1, C2)   conv2 weight; w2_ref[q] multiplies the q-th group.
    s*/b* : (1, C)        folded eval-mode BatchNorm scale / bias.
    o_ref : (B*S2, C2)    conv2 activations, channel on the lane axis.
    """
    s1 = s1_ref[...]
    b1 = b1_ref[...]
    acc = jnp.zeros(o_ref.shape, jnp.float32)
    for q in range(4):  # static unroll over the 4 conv2 patch offsets
        y1 = jnp.dot(p_ref[q], w1_ref[...], preferred_element_type=jnp.float32)
        y1 = jnp.maximum(y1 * s1 + b1, 0.0)                  # BN1 + ReLU (VPU)
        acc = acc + jnp.dot(y1, w2_ref[q], preferred_element_type=jnp.float32)
    o_ref[...] = jnp.maximum(acc * s2_ref[...] + b2_ref[...], 0.0)


def _mlp_kernel(x_ref, w1_ref, b1_ref, w2_ref, b2_ref, w3_ref, b3_ref, o_ref):
    """Fused hidden1+ReLU+hidden2+ReLU+output.  Weights are bf16 (pre-transposed
    to (in, out) at prep time); matmuls accumulate in f32 on the MXU."""
    h = jnp.dot(x_ref[...].astype(jnp.bfloat16), w1_ref[...],
                preferred_element_type=jnp.float32) + b1_ref[...]
    h = jnp.maximum(h, 0.0)
    h = jnp.dot(h.astype(jnp.bfloat16), w2_ref[...],
                preferred_element_type=jnp.float32) + b2_ref[...]
    h = jnp.maximum(h, 0.0)
    y = jnp.dot(h.astype(jnp.bfloat16), w3_ref[...],
                preferred_element_type=jnp.float32) + b3_ref[...]
    o_ref[...] = y.astype(o_ref.dtype)


def _vmem_specs(n):
    return [pl.BlockSpec(memory_space=pltpu.MemorySpace.VMEM)] * n


def conv_stage(patches, w1, s1, b1, w2, s2, b2):
    _, M, _ = patches.shape
    return pl.pallas_call(
        _conv_stage_kernel,
        out_shape=jax.ShapeDtypeStruct((M, C2), jnp.float32),
        in_specs=_vmem_specs(7),
        out_specs=pl.BlockSpec(memory_space=pltpu.MemorySpace.VMEM),
    )(patches, w1, s1, b1, w2, s2, b2)


def mlp_stage(x, w1, b1, w2, b2, w3, b3):
    B = x.shape[0]
    n_out = w3.shape[1]
    return pl.pallas_call(
        _mlp_kernel,
        out_shape=jax.ShapeDtypeStruct((B, n_out), jnp.float32),
        in_specs=_vmem_specs(7),
        out_specs=pl.BlockSpec(memory_space=pltpu.MemorySpace.VMEM),
    )(x, w1, b1, w2, b2, w3, b3)


# ------------------------------- glue (JAX) -------------------------------- #
def conv1_patches(x_nchw):
    """im2col for conv1, rows ordered (q = di*2+dj, b, i2, j2) so that the conv2
    2x2/stride-2 gather becomes 4 contiguous row groups inside the kernel.
    Only the 22x20 conv1 positions that conv2 actually consumes are built."""
    B, C, _, _ = x_nchw.shape
    kh, kw = CONV_KERNEL_SIZES[0]
    stride, pad = CONV_STRIDES[0], CONV_PADDINGS[0]
    ho, wo = 2 * HO2, 2 * WO2                      # 22, 20
    xp = jnp.pad(x_nchw, ((0, 0), (0, 0), (pad, pad), (pad, pad)))
    cols = []
    for i in range(kh):
        for j in range(kw):
            cols.append(xp[:, :,
                           i:i + stride * (ho - 1) + 1:stride,
                           j:j + stride * (wo - 1) + 1:stride])
    p = jnp.stack(cols, axis=2)                    # (B, C, kh*kw, ho, wo)
    p = p.transpose(0, 3, 4, 1, 2)                 # (B, ho, wo, C, kh*kw)
    p = p.reshape(B, HO2, 2, WO2, 2, C * kh * kw)  # r = 2*i2+di, c = 2*j2+dj
    p = p.transpose(2, 4, 0, 1, 3, 5)              # (di, dj, B, i2, j2, feat)
    return p.reshape(4, B * S2, C * kh * kw)


def prepare_params(params):
    """One-time layout/precision prep: fold eval-mode BN, build matmul-ready
    conv weights, pre-transpose Linear weights to (in, out), permute h1_w rows
    to absorb the NCHW flatten, and store Linear weights in bf16."""
    kh1, kw1 = CONV_KERNEL_SIZES[0]
    s1 = params["bn1_gamma"] / jnp.sqrt(params["bn1_var"] + BN_EPS)
    b1 = params["bn1_beta"] + s1 * (params["conv1_b"] - params["bn1_mean"])
    s2 = params["bn2_gamma"] / jnp.sqrt(params["bn2_var"] + BN_EPS)
    b2 = params["bn2_beta"] + s2 * (params["conv2_b"] - params["bn2_mean"])
    w1 = params["conv1_w"].reshape(C1, CONV_N_MAPS[0] * kh1 * kw1).T  # (K1, C1)
    w2 = params["conv2_w"].transpose(2, 3, 1, 0).reshape(4, C1, C2)   # (q, cin, cout)
    # hidden1 weight: transpose to (in, out) and permute rows from the PyTorch
    # flatten order (c*S2 + s) to the kernel's conv-output order (s*C2 + c).
    h1_wt = (params["h1_w"].T.reshape(C2, S2, N_HIDDEN[0])
             .transpose(1, 0, 2).reshape(S2 * C2, N_HIDDEN[0])).astype(jnp.bfloat16)
    return {
        "conv_w1": w1,
        "conv_s1": s1.reshape(1, C1), "conv_b1": b1.reshape(1, C1),
        "conv_w2": w2,
        "conv_s2": s2.reshape(1, C2), "conv_b2": b2.reshape(1, C2),
        "h1_wt": h1_wt, "h1_b": params["h1_b"].reshape(1, -1),
        "h2_wt": params["h2_w"].T.astype(jnp.bfloat16),
        "h2_b": params["h2_b"].reshape(1, -1),
        "out_wt": params["out_w"].T.astype(jnp.bfloat16),
        "out_b": params["out_b"].reshape(1, -1),
    }


def dqn_forward(kparams, x):
    B = x.shape[0]
    patches = conv1_patches(x)                                  # (4, B*110, 64)
    y2 = conv_stage(patches,
                    kparams["conv_w1"], kparams["conv_s1"], kparams["conv_b1"],
                    kparams["conv_w2"], kparams["conv_s2"], kparams["conv_b2"])
    xflat = y2.reshape(B, S2 * C2)   # contiguous; order matched by h1_wt rows
    return mlp_stage(xflat, kparams["h1_wt"], kparams["h1_b"],
                     kparams["h2_wt"], kparams["h2_b"],
                     kparams["out_wt"], kparams["out_b"])


# ------------------------------- params / ref ------------------------------- #
def init_params(key, outputs):
    ks = jax.random.split(key, 18)

    def norm(k, shape, s=0.05):
        return s * jax.random.normal(k, shape, jnp.float32)

    return {
        "conv1_w": norm(ks[0], (32, 4, 4, 4)),
        "conv1_b": norm(ks[1], (32,)),
        "bn1_gamma": 1.0 + norm(ks[2], (32,)),
        "bn1_beta": norm(ks[3], (32,)),
        "bn1_mean": norm(ks[4], (32,)),
        "bn1_var": 1.0 + jnp.abs(norm(ks[5], (32,))),
        "conv2_w": norm(ks[6], (32, 32, 2, 2)),
        "conv2_b": norm(ks[7], (32,)),
        "bn2_gamma": 1.0 + norm(ks[8], (32,)),
        "bn2_beta": norm(ks[9], (32,)),
        "bn2_mean": norm(ks[10], (32,)),
        "bn2_var": 1.0 + jnp.abs(norm(ks[11], (32,))),
        "h1_w": norm(ks[12], (N_HIDDEN[0], N_HIDDEN_IN), 0.02),
        "h1_b": norm(ks[13], (N_HIDDEN[0],)),
        "h2_w": norm(ks[14], (N_HIDDEN[1], N_HIDDEN[0]), 0.05),
        "h2_b": norm(ks[15], (N_HIDDEN[1],)),
        "out_w": norm(ks[16], (outputs, N_HIDDEN[1]), 0.05),
        "out_b": norm(ks[17], (outputs,)),
    }


def dqn_reference(params, x):
    """Pure-JAX reference mirroring the PyTorch forward (eval-mode BN).  The
    Linear layers use the same bf16 weight/activation rounding as the kernels
    (f32 accumulation) so the comparison stays tight."""
    def conv(x, w, b, stride, pad):
        y = jax.lax.conv_general_dilated(
            x, w, window_strides=(stride, stride),
            padding=[(pad, pad), (pad, pad)],
            dimension_numbers=("NCHW", "OIHW", "NCHW"))
        return y + b[None, :, None, None]

    def bn(x, g, bta, m, v):
        return g[None, :, None, None] * (x - m[None, :, None, None]) / \
            jnp.sqrt(v[None, :, None, None] + BN_EPS) + bta[None, :, None, None]

    def lin(x, w, b):
        return jnp.dot(x.astype(jnp.bfloat16), w.T.astype(jnp.bfloat16),
                       preferred_element_type=jnp.float32) + b

    x = jax.nn.relu(bn(conv(x, params["conv1_w"], params["conv1_b"],
                            CONV_STRIDES[0], CONV_PADDINGS[0]),
                       params["bn1_gamma"], params["bn1_beta"],
                       params["bn1_mean"], params["bn1_var"]))
    x = jax.nn.relu(bn(conv(x, params["conv2_w"], params["conv2_b"],
                            CONV_STRIDES[1], CONV_PADDINGS[1]),
                       params["bn2_gamma"], params["bn2_beta"],
                       params["bn2_mean"], params["bn2_var"]))
    x = x.reshape(x.shape[0], -1)
    x = jax.nn.relu(lin(x, params["h1_w"], params["h1_b"]))
    x = jax.nn.relu(lin(x, params["h2_w"], params["h2_b"]))
    return lin(x, params["out_w"], params["out_b"])


if __name__ == "__main__":
    key = jax.random.PRNGKey(0)
    k_param, k_x = jax.random.split(key)
    OUTPUTS = 8
    params = init_params(k_param, OUTPUTS)
    kparams = prepare_params(params)   # one-time weight layout / bf16 prep

    # Input spatial size (44, 40) is what N_HIDDEN_IN = 32*11*10 implies:
    # conv1 (k=4,s=2,p=2): 44x40 -> 23x21 (22x20 consumed); conv2 (k=2,s=2) -> 11x10.
    x = jax.random.normal(k_x, (2, CONV_N_MAPS[0], H_IN, W_IN), jnp.float32)

    fwd = jax.jit(dqn_forward)
    out = jax.block_until_ready(fwd(kparams, x))
    assert out.shape == (2, OUTPUTS) and out.dtype == jnp.float32

    ref = jax.block_until_ready(jax.jit(dqn_reference)(params, x))
    np.testing.assert_allclose(np.asarray(out), np.asarray(ref),
                               rtol=2e-3, atol=2e-3)

    print("KERNEL_OK")
</pallas_src>

<mosaic_0001>
module attributes {stable_mosaic.version = 11 : i64} {
  func.func @_conv_stage_kernel(%arg0: memref<4x220x64xf32, #tpu.memory_space<vmem>>, %arg1: memref<64x32xf32, #tpu.memory_space<vmem>>, %arg2: memref<1x32xf32, #tpu.memory_space<vmem>>, %arg3: memref<1x32xf32, #tpu.memory_space<vmem>>, %arg4: memref<4x32x32xf32, #tpu.memory_space<vmem>>, %arg5: memref<1x32xf32, #tpu.memory_space<vmem>>, %arg6: memref<1x32xf32, #tpu.memory_space<vmem>>, %arg7: memref<220x32xf32, #tpu.memory_space<vmem>>) attributes {dimension_semantics = [], scalar_prefetch = 0 : i64, scratch_operands = 0 : i64, tpu.core_type = #tpu.core_type<tc>} {
    %c0 = arith.constant 0 : index
    %c0_0 = arith.constant 0 : index
    %0 = vector.load %arg2[%c0, %c0_0] : memref<1x32xf32, #tpu.memory_space<vmem>>, vector<1x32xf32>
    %c0_1 = arith.constant 0 : index
    %c0_2 = arith.constant 0 : index
    %1 = vector.load %arg3[%c0_1, %c0_2] : memref<1x32xf32, #tpu.memory_space<vmem>>, vector<1x32xf32>
    %cst = arith.constant 0.000000e+00 : f32
    %2 = vector.broadcast %cst : f32 to vector<220x32xf32>
    %c0_3 = arith.constant 0 : index
    %c0_4 = arith.constant 0 : index
    %c0_5 = arith.constant 0 : index
    %3 = vector.load %arg0[%c0_3, %c0_4, %c0_5] : memref<4x220x64xf32, #tpu.memory_space<vmem>>, vector<1x220x64xf32>
    %4 = vector.shape_cast %3 : vector<1x220x64xf32> to vector<220x64xf32>
    %c0_6 = arith.constant 0 : index
    %c0_7 = arith.constant 0 : index
    %5 = vector.load %arg1[%c0_6, %c0_7] : memref<64x32xf32, #tpu.memory_space<vmem>>, vector<64x32xf32>
    %cst_8 = arith.constant dense<0.000000e+00> : vector<220x32xf32>
    %6 = tpu.matmul %4, %5, %cst_8 {dimension_numbers = #tpu.dot_dimension_numbers<[1], [0], [0], [1], [0, 0, 1, 1], [], []>} : vector<220x64xf32>, vector<64x32xf32>, vector<220x32xf32> -> vector<220x32xf32>
    %7 = vector.broadcast %0 : vector<1x32xf32> to vector<220x32xf32>
    %8 = arith.mulf %6, %7 : vector<220x32xf32>
    %9 = vector.broadcast %1 : vector<1x32xf32> to vector<220x32xf32>
    %10 = arith.addf %8, %9 : vector<220x32xf32>
    %cst_9 = arith.constant 0.000000e+00 : f32
    %11 = vector.broadcast %cst_9 : f32 to vector<220x32xf32>
    %12 = arith.maximumf %10, %11 : vector<220x32xf32>
    %c0_10 = arith.constant 0 : index
    %c0_11 = arith.constant 0 : index
    %c0_12 = arith.constant 0 : index
    %13 = vector.load %arg4[%c0_10, %c0_11, %c0_12] : memref<4x32x32xf32, #tpu.memory_space<vmem>>, vector<1x32x32xf32>
    %14 = vector.shape_cast %13 : vector<1x32x32xf32> to vector<32x32xf32>
    %cst_13 = arith.constant dense<0.000000e+00> : vector<220x32xf32>
    %15 = tpu.matmul %12, %14, %cst_13 {dimension_numbers = #tpu.dot_dimension_numbers<[1], [0], [0], [1], [0, 0, 1, 1], [], []>} : vector<220x32xf32>, vector<32x32xf32>, vector<220x32xf32> -> vector<220x32xf32>
    %16 = arith.addf %2, %15 : vector<220x32xf32>
    %c1 = arith.constant 1 : index
    %c0_14 = arith.constant 0 : index
    %c0_15 = arith.constant 0 : index
    %17 = vector.load %arg0[%c1, %c0_14, %c0_15] : memref<4x220x64xf32, #tpu.memory_space<vmem>>, vector<1x220x64xf32>
    %18 = vector.shape_cast %17 : vector<1x220x64xf32> to vector<220x64xf32>
    %c0_16 = arith.constant 0 : index
    %c0_17 = arith.constant 0 : index
    %19 = vector.load %arg1[%c0_16, %c0_17] : memref<64x32xf32, #tpu.memory_space<vmem>>, vector<64x32xf32>
    %cst_18 = arith.constant dense<0.000000e+00> : vector<220x32xf32>
    %20 = tpu.matmul %18, %19, %cst_18 {dimension_numbers = #tpu.dot_dimension_numbers<[1], [0], [0], [1], [0, 0, 1, 1], [], []>} : vector<220x64xf32>, vector<64x32xf32>, vector<220x32xf32> -> vector<220x32xf32>
    %21 = vector.broadcast %0 : vector<1x32xf32> to vector<220x32xf32>
    %22 = arith.mulf %20, %21 : vector<220x32xf32>
    %23 = vector.broadcast %1 : vector<1x32xf32> to vector<220x32xf32>
    %24 = arith.addf %22, %23 : vector<220x32xf32>
    %cst_19 = arith.constant 0.000000e+00 : f32
    %25 = vector.broadcast %cst_19 : f32 to vector<220x32xf32>
    %26 = arith.maximumf %24, %25 : vector<220x32xf32>
    %c1_20 = arith.constant 1 : index
    %c0_21 = arith.constant 0 : index
    %c0_22 = arith.constant 0 : index
    %27 = vector.load %arg4[%c1_20, %c0_21, %c0_22] : memref<4x32x32xf32, #tpu.memory_space<vmem>>, vector<1x32x32xf32>
    %28 = vector.shape_cast %27 : vector<1x32x32xf32> to vector<32x32xf32>
    %cst_23 = arith.constant dense<0.000000e+00> : vector<220x32xf32>
    %29 = tpu.matmul %26, %28, %cst_23 {dimension_numbers = #tpu.dot_dimension_numbers<[1], [0], [0], [1], [0, 0, 1, 1], [], []>} : vector<220x32xf32>, vector<32x32xf32>, vector<220x32xf32> -> vector<220x32xf32>
    %30 = arith.addf %16, %29 : vector<220x32xf32>
    %c2 = arith.constant 2 : index
    %c0_24 = arith.constant 0 : index
    %c0_25 = arith.constant 0 : index
    %31 = vector.load %arg0[%c2, %c0_24, %c0_25] : memref<4x220x64xf32, #tpu.memory_space<vmem>>, vector<1x220x64xf32>
    %32 = vector.shape_cast %31 : vector<1x220x64xf32> to vector<220x64xf32>
    %c0_26 = arith.constant 0 : index
    %c0_27 = arith.constant 0 : index
    %33 = vector.load %arg1[%c0_26, %c0_27] : memref<64x32xf32, #tpu.memory_space<vmem>>, vector<64x32xf32>
    %cst_28 = arith.constant dense<0.000000e+00> : vector<220x32xf32>
    %34 = tpu.matmul %32, %33, %cst_28 {dimension_numbers = #tpu.dot_dimension_numbers<[1], [0], [0], [1], [0, 0, 1, 1], [], []>} : vector<220x64xf32>, vector<64x32xf32>, vector<220x32xf32> -> vector<220x32xf32>
    %35 = vector.broadcast %0 : vector<1x32xf32> to vector<220x32xf32>
    %36 = arith.mulf %34, %35 : vector<220x32xf32>
    %37 = vector.broadcast %1 : vector<1x32xf32> to vector<220x32xf32>
    %38 = arith.addf %36, %37 : vector<220x32xf32>
    %cst_29 = arith.constant 0.000000e+00 : f32
    %39 = vector.broadcast %cst_29 : f32 to vector<220x32xf32>
    %40 = arith.maximumf %38, %39 : vector<220x32xf32>
    %c2_30 = arith.constant 2 : index
    %c0_31 = arith.constant 0 : index
    %c0_32 = arith.constant 0 : index
    %41 = vector.load %arg4[%c2_30, %c0_31, %c0_32] : memref<4x32x32xf32, #tpu.memory_space<vmem>>, vector<1x32x32xf32>
    %42 = vector.shape_cast %41 : vector<1x32x32xf32> to vector<32x32xf32>
    %cst_33 = arith.constant dense<0.000000e+00> : vector<220x32xf32>
    %43 = tpu.matmul %40, %42, %cst_33 {dimension_numbers = #tpu.dot_dimension_numbers<[1], [0], [0], [1], [0, 0, 1, 1], [], []>} : vector<220x32xf32>, vector<32x32xf32>, vector<220x32xf32> -> vector<220x32xf32>
    %44 = arith.addf %30, %43 : vector<220x32xf32>
    %c3 = arith.constant 3 : index
    %c0_34 = arith.constant 0 : index
    %c0_35 = arith.constant 0 : index
    %45 = vector.load %arg0[%c3, %c0_34, %c0_35] : memref<4x220x64xf32, #tpu.memory_space<vmem>>, vector<1x220x64xf32>
    %46 = vector.shape_cast %45 : vector<1x220x64xf32> to vector<220x64xf32>
    %c0_36 = arith.constant 0 : index
    %c0_37 = arith.constant 0 : index
    %47 = vector.load %arg1[%c0_36, %c0_37] : memref<64x32xf32, #tpu.memory_space<vmem>>, vector<64x32xf32>
    %cst_38 = arith.constant dense<0.000000e+00> : vector<220x32xf32>
    %48 = tpu.matmul %46, %47, %cst_38 {dimension_numbers = #tpu.dot_dimension_numbers<[1], [0], [0], [1], [0, 0, 1, 1], [], []>} : vector<220x64xf32>, vector<64x32xf32>, vector<220x32xf32> -> vector<220x32xf32>
    %49 = vector.broadcast %0 : vector<1x32xf32> to vector<220x32xf32>
    %50 = arith.mulf %48, %49 : vector<220x32xf32>
    %51 = vector.broadcast %1 : vector<1x32xf32> to vector<220x32xf32>
    %52 = arith.addf %50, %51 : vector<220x32xf32>
    %cst_39 = arith.constant 0.000000e+00 : f32
    %53 = vector.broadcast %cst_39 : f32 to vector<220x32xf32>
    %54 = arith.maximumf %52, %53 : vector<220x32xf32>
    %c3_40 = arith.constant 3 : index
    %c0_41 = arith.constant 0 : index
    %c0_42 = arith.constant 0 : index
    %55 = vector.load %arg4[%c3_40, %c0_41, %c0_42] : memref<4x32x32xf32, #tpu.memory_space<vmem>>, vector<1x32x32xf32>
    %56 = vector.shape_cast %55 : vector<1x32x32xf32> to vector<32x32xf32>
    %cst_43 = arith.constant dense<0.000000e+00> : vector<220x32xf32>
    %57 = tpu.matmul %54, %56, %cst_43 {dimension_numbers = #tpu.dot_dimension_numbers<[1], [0], [0], [1], [0, 0, 1, 1], [], []>} : vector<220x32xf32>, vector<32x32xf32>, vector<220x32xf32> -> vector<220x32xf32>
    %58 = arith.addf %44, %57 : vector<220x32xf32>
    %c0_44 = arith.constant 0 : index
    %c0_45 = arith.constant 0 : index
    %59 = vector.load %arg5[%c0_44, %c0_45] : memref<1x32xf32, #tpu.memory_space<vmem>>, vector<1x32xf32>
    %60 = vector.broadcast %59 : vector<1x32xf32> to vector<220x32xf32>
    %61 = arith.mulf %58, %60 : vector<220x32xf32>
    %c0_46 = arith.constant 0 : index
    %c0_47 = arith.constant 0 : index
    %62 = vector.load %arg6[%c0_46, %c0_47] : memref<1x32xf32, #tpu.memory_space<vmem>>, vector<1x32xf32>
    %63 = vector.broadcast %62 : vector<1x32xf32> to vector<220x32xf32>
    %64 = arith.addf %61, %63 : vector<220x32xf32>
    %cst_48 = arith.constant 0.000000e+00 : f32
    %65 = vector.broadcast %cst_48 : f32 to vector<220x32xf32>
    %66 = arith.maximumf %64, %65 : vector<220x32xf32>
    %c0_49 = arith.constant 0 : index
    %c0_50 = arith.constant 0 : index
    %67 = vector.load %arg7[%c0_49, %c0_50] : memref<220x32xf32, #tpu.memory_space<vmem>>, vector<220x32xf32>
    tpu.vector_store %arg7[%c0_49, %c0_50], %66 {strides = array<i32>} : memref<220x32xf32, #tpu.memory_space<vmem>>, vector<220x32xf32>,
    return
  }
}

module attributes {stable_mosaic.version = 11 : i64} {
  func.func @_mlp_kernel(%arg0: memref<2x3520xf32, #tpu.memory_space<vmem>>, %arg1: memref<3520x512xbf16, #tpu.memory_space<vmem>>, %arg2: memref<1x512xf32, #tpu.memory_space<vmem>>, %arg3: memref<512x128xbf16, #tpu.memory_space<vmem>>, %arg4: memref<1x128xf32, #tpu.memory_space<vmem>>, %arg5: memref<128x8xbf16, #tpu.memory_space<vmem>>, %arg6: memref<1x8xf32, #tpu.memory_space<vmem>>, %arg7: memref<2x8xf32, #tpu.memory_space<vmem>>) attributes {dimension_semantics = [], scalar_prefetch = 0 : i64, scratch_operands = 0 : i64, tpu.core_type = #tpu.core_type<tc>} {
    %c0 = arith.constant 0 : index
    %c0_0 = arith.constant 0 : index
    %0 = vector.load %arg0[%c0, %c0_0] : memref<2x3520xf32, #tpu.memory_space<vmem>>, vector<2x3520xf32>
    %1 = arith.truncf %0 : vector<2x3520xf32> to vector<2x3520xbf16>
    %c0_1 = arith.constant 0 : index
    %c0_2 = arith.constant 0 : index
    %2 = vector.load %arg1[%c0_1, %c0_2] : memref<3520x512xbf16, #tpu.memory_space<vmem>>, vector<3520x512xbf16>
    %cst = arith.constant dense<0.000000e+00> : vector<2x512xf32>
    %3 = tpu.matmul %1, %2, %cst {dimension_numbers = #tpu.dot_dimension_numbers<[1], [0], [0], [1], [0, 0, 1, 1], [], []>} : vector<2x3520xbf16>, vector<3520x512xbf16>, vector<2x512xf32> -> vector<2x512xf32>
    %c0_3 = arith.constant 0 : index
    %c0_4 = arith.constant 0 : index
    %4 = vector.load %arg2[%c0_3, %c0_4] : memref<1x512xf32, #tpu.memory_space<vmem>>, vector<1x512xf32>
    %5 = vector.broadcast %4 : vector<1x512xf32> to vector<2x512xf32>
    %6 = arith.addf %3, %5 : vector<2x512xf32>
    %cst_5 = arith.constant 0.000000e+00 : f32
    %7 = vector.broadcast %cst_5 : f32 to vector<2x512xf32>
    %8 = arith.maximumf %6, %7 : vector<2x512xf32>
    %9 = arith.truncf %8 : vector<2x512xf32> to vector<2x512xbf16>
    %c0_6 = arith.constant 0 : index
    %c0_7 = arith.constant 0 : index
    %10 = vector.load %arg3[%c0_6, %c0_7] : memref<512x128xbf16, #tpu.memory_space<vmem>>, vector<512x128xbf16>
    %cst_8 = arith.constant dense<0.000000e+00> : vector<2x128xf32>
    %11 = tpu.matmul %9, %10, %cst_8 {dimension_numbers = #tpu.dot_dimension_numbers<[1], [0], [0], [1], [0, 0, 1, 1], [], []>} : vector<2x512xbf16>, vector<512x128xbf16>, vector<2x128xf32> -> vector<2x128xf32>
    %c0_9 = arith.constant 0 : index
    %c0_10 = arith.constant 0 : index
    %12 = vector.load %arg4[%c0_9, %c0_10] : memref<1x128xf32, #tpu.memory_space<vmem>>, vector<1x128xf32>
    %13 = vector.broadcast %12 : vector<1x128xf32> to vector<2x128xf32>
    %14 = arith.addf %11, %13 : vector<2x128xf32>
    %cst_11 = arith.constant 0.000000e+00 : f32
    %15 = vector.broadcast %cst_11 : f32 to vector<2x128xf32>
    %16 = arith.maximumf %14, %15 : vector<2x128xf32>
    %17 = arith.truncf %16 : vector<2x128xf32> to vector<2x128xbf16>
    %c0_12 = arith.constant 0 : index
    %c0_13 = arith.constant 0 : index
    %18 = vector.load %arg5[%c0_12, %c0_13] : memref<128x8xbf16, #tpu.memory_space<vmem>>, vector<128x8xbf16>
    %cst_14 = arith.constant dense<0.000000e+00> : vector<2x8xf32>
    %19 = tpu.matmul %17, %18, %cst_14 {dimension_numbers = #tpu.dot_dimension_numbers<[1], [0], [0], [1], [0, 0, 1, 1], [], []>} : vector<2x128xbf16>, vector<128x8xbf16>, vector<2x8xf32> -> vector<2x8xf32>
    %c0_15 = arith.constant 0 : index
    %c0_16 = arith.constant 0 : index
    %20 = vector.load %arg6[%c0_15, %c0_16] : memref<1x8xf32, #tpu.memory_space<vmem>>, vector<1x8xf32>
    %21 = vector.broadcast %20 : vector<1x8xf32> to vector<2x8xf32>
    %22 = arith.addf %19, %21 : vector<2x8xf32>
    %c0_17 = arith.constant 0 : index
    %c0_18 = arith.constant 0 : index
    %23 = vector.load %arg7[%c0_17, %c0_18] : memref<2x8xf32, #tpu.memory_space<vmem>>, vector<2x8xf32>
    tpu.vector_store %arg7[%c0_17, %c0_18], %22 {strides = array<i32>} : memref<2x8xf32, #tpu.memory_space<vmem>>, vector<2x8xf32>,
    return
  }
}

</mosaic_0001>

<bundles_post_ra>
// kernel: dqn_forward.2
= control target key start
LH: loop header
LB: loop body
LE: loop exit
PB: predicated region body
PF: predicated region fallthrough
CT: control target
= control target key end

     0   :  { %vm64_vm0 = vcmask 523264   ;;  %vm861_vm1 = vcmask 261120   ;;  %vm3013_vm2 = vcmask 257024   ;;  %s5373_s1 = inlined_call_operand.vmem [shape: f32[64,32], index: 1, kind: input, shape index: {}]   ;;  %s5374_s0 = inlined_call_operand.vmem [shape: f32[4,220,64], index: 0, kind: input, shape index: {}]   ;;  %s5375_s4 = inlined_call_operand.vmem [shape: f32[4,32,32], index: 4, kind: input, shape index: {}]   ;;  %s5376_s2 = inlined_call_operand.vmem [shape: f32[1,32], index: 2, kind: input, shape index: {}]   ;;  %s5377_s3 = inlined_call_operand.vmem [shape: f32[1,32], index: 3, kind: input, shape index: {}]   ;;  %s5378_s5 = inlined_call_operand.vmem [shape: f32[1,32], index: 5, kind: input, shape index: {}]   ;;  %s5379_s6 = inlined_call_operand.vmem [shape: f32[1,32], index: 6, kind: input, shape index: {}]   ;;  %s5380_s7 = inlined_call_operand.vmem [shape: f32[220,32], index: 7, kind: output, shape index: {}]  }
   0x1   :  { %v4092_v0 = vld [vmem:[%s5373_s1 + $0x38] sm:$0xff]  ;;  %v4097_v1 = vld [vmem:[%s5373_s1 + $0x30] sm:$0xff]  ;;  %v4106_v2 = vld [vmem:[%s5373_s1 + $0x28] sm:$0xff] }
   0x2   :  { %3615 = vmatprep.subr.mxu0 %v4092_v0  ;;  %3673 = vmatprep.subr.mxu1 %v4092_v0  ;;  %v4115_v3 = vld [vmem:[%s5373_s1 + $0x20] sm:$0xff]  ;;  %v4124_v4 = vld [vmem:[%s5373_s1 + $0x18] sm:$0xff]  ;;  %v4133_v5 = vld [vmem:[%s5373_s1 + $0x10] sm:$0xff] }
   0x3   :  { %3616 = vmatpush3.msra.mxu0 %v4092_v0  ;;  %3674 = vmatpush3.msra.mxu1 %v4092_v0  ;;  %v4142_v6 = vld [vmem:[%s5373_s1 + $0x8] sm:$0xff]  ;;  %v4151_v7 = vld [vmem:[%s5373_s1] sm:$0xff]  ;;  %v30_v12 = vld [vmem:[%s5374_s0 + $0x10] sm:$0xff] }
   0x4   :  { %3617 = vmatprep.subr.mxu0 %v4097_v1  ;;  %3675 = vmatprep.subr.mxu1 %v4097_v1  ;;  %v28_v8 = vld [vmem:[%s5374_s0] sm:$0xff]  ;;  %v29_v10 = vld [vmem:[%s5374_s0 + $0x8] sm:$0xff]  ;;  %v3051_v13 = vld [vmem:[%s5374_s0 + $0xf0] sm:$0xff] }
   0x5   :  { %3618 = vmatpush3.msra.mxu0 %v4097_v1  ;;  %3676 = vmatpush3.msra.mxu1 %v4097_v1  ;;  %v3049_v9 = vld [vmem:[%s5374_s0 + $0xe0] sm:$0xff]  ;;  %v3050_v11 = vld [vmem:[%s5374_s0 + $0xe8] sm:$0xff]  ;;  %v31_v14 = vld [vmem:[%s5374_s0 + $0x18] sm:$0xff] }
   0x6   :  { %3619 = vmatprep.subr.mxu0 %v4106_v2  ;;  %3677 = vmatprep.subr.mxu1 %v4106_v2  ;;  %v3052_v15 = vld [vmem:[%s5374_s0 + $0xf8] sm:$0xff]  ;;  %v32_v16 = vld [vmem:[%s5374_s0 + $0x20] sm:$0xff]  ;;  %v33_v19 = vld [vmem:[%s5374_s0 + $0x28] sm:$0xff] }
   0x7   :  { %3620 = vmatpush3.msra.mxu0 %v4106_v2  ;;  %3678 = vmatpush3.msra.mxu1 %v4106_v2  ;;  %v3053_v17 = vld [vmem:[%s5374_s0 + $0x100] sm:$0xff]  ;;  %v3108_v18 = vld [vmem:[%s5375_s4 + $0x38] sm:$0xff]  ;;  %v3054_v20 = vld [vmem:[%s5374_s0 + $0x108] sm:$0xff] }
   0x8   :  { %3621 = vmatprep.subr.mxu0 %v4115_v3  ;;  %3679 = vmatprep.subr.mxu1 %v4115_v3  ;;  %v34_v21 = vld [vmem:[%s5374_s0 + $0x30] sm:$0xff]  ;;  %v35_v24 = vld [vmem:[%s5374_s0 + $0x38] sm:$0xff]  ;;  %v36_v26 = vld [vmem:[%s5374_s0 + $0x40] sm:$0xff] }
   0x9   :  { %3622 = vmatpush3.msra.mxu0 %v4115_v3  ;;  %3680 = vmatpush3.msra.mxu1 %v4115_v3  ;;  %v3055_v22 = vld [vmem:[%s5374_s0 + $0x110] sm:$0xff]  ;;  %v3056_v25 = vld [vmem:[%s5374_s0 + $0x118] sm:$0xff]  ;;  %v3057_v27 = vld [vmem:[%s5374_s0 + $0x120] sm:$0xff] }
   0xa   :  { %3623 = vmatprep.subr.mxu0 %v4124_v4  ;;  %3681 = vmatprep.subr.mxu1 %v4124_v4  ;;  %v3107_v23 = vld [vmem:[%s5375_s4 + $0x30] sm:$0xff]  ;;  %v3106_v28 = vld [vmem:[%s5375_s4 + $0x28] sm:$0xff]  ;;  %v3105_v33 = vld [vmem:[%s5375_s4 + $0x20] sm:$0xff] }
   0xb   :  { %3624 = vmatpush3.msra.mxu0 %v4124_v4  ;;  %3682 = vmatpush3.msra.mxu1 %v4124_v4  ;;  %v37_v29 = vld [vmem:[%s5374_s0 + $0x48] sm:$0xff]  ;;  %v38_v31 = vld [vmem:[%s5374_s0 + $0x50] sm:$0xff]  ;;  %v39_v34 = vld [vmem:[%s5374_s0 + $0x58] sm:$0xff] }
   0xc   :  { %3625 = vmatprep.subr.mxu0 %v4133_v5  ;;  %3683 = vmatprep.subr.mxu1 %v4133_v5  ;;  %v3058_v30 = vld [vmem:[%s5374_s0 + $0x128] sm:$0xff]  ;;  %v3059_v32 = vld [vmem:[%s5374_s0 + $0x130] sm:$0xff]  ;;  %v3060_v35 = vld [vmem:[%s5374_s0 + $0x138] sm:$0xff] }
   0xd   :  { %3626 = vmatpush3.msra.mxu0 %v4133_v5  ;;  %3684 = vmatpush3.msra.mxu1 %v4133_v5  ;;  %v40_v36 = vld [vmem:[%s5374_s0 + $0x60] sm:$0xff]  ;;  %v41_v38 = vld [vmem:[%s5374_s0 + $0x68] sm:$0xff]  ;;  %v42_v40 = vld [vmem:[%s5374_s0 + $0x70] sm:$0xff] }
   0xe   :  { %3627 = vmatprep.subr.mxu0 %v4142_v6  ;;  %3685 = vmatprep.subr.mxu1 %v4142_v6  ;;  %v3061_v37 = vld [vmem:[%s5374_s0 + $0x140] sm:$0xff]  ;;  %v3062_v39 = vld [vmem:[%s5374_s0 + $0x148] sm:$0xff]  ;;  %v3063_v41 = vld [vmem:[%s5374_s0 + $0x150] sm:$0xff] }
   0xf   :  { %3628 = vmatpush3.msra.mxu0 %v4142_v6  ;;  %3686 = vmatpush3.msra.mxu1 %v4142_v6  ;;  %v43_v42 = vld [vmem:[%s5374_s0 + $0x78] sm:$0xff]  ;;  %v44_v44 = vld [vmem:[%s5374_s0 + $0x80] sm:$0xff]  ;;  %v45_v46 = vld [vmem:[%s5374_s0 + $0x88] sm:$0xff] }
  0x10   :  { %3629 = vmatprep.subr.mxu0 %v4151_v7  ;;  %3687 = vmatprep.subr.mxu1 %v4151_v7  ;;  %v3064_v43 = vld [vmem:[%s5374_s0 + $0x158] sm:$0xff]  ;;  %v3065_v45 = vld [vmem:[%s5374_s0 + $0x160] sm:$0xff]  ;;  %v3066_v47 = vld [vmem:[%s5374_s0 + $0x168] sm:$0xff] }
  0x11   :  { %3630 = vmatpush3.msra.mxu0 %v4151_v7  ;;  %3631 = vmatprep.mubr.msk.f32.mxu0 %vm64_vm0, %v28_v8  ;;  %v46_v48 = vld [vmem:[%s5374_s0 + $0x90] sm:$0xff]  ;;  %v47_v50 = vld [vmem:[%s5374_s0 + $0x98] sm:$0xff]  ;;  %v48_v52 = vld [vmem:[%s5374_s0 + $0xa0] sm:$0xff] }
  0x12   :  { %3688 = vmatpush3.msra.mxu1 %v4151_v7  ;;  %3689 = vmatprep.mubr.msk.f32.mxu1 %vm64_vm0, %v3049_v9  ;;  %v3067_v49 = vld [vmem:[%s5374_s0 + $0x170] sm:$0xff]  ;;  %v3068_v51 = vld [vmem:[%s5374_s0 + $0x178] sm:$0xff]  ;;  %v3069_v53 = vld [vmem:[%s5374_s0 + $0x180] sm:$0xff] }
  0x13   :  { %3632 = vmatmul.mubr.msk.f32.vlgmr.msra.gmra.mxu0 %vm64_vm0, %v29_v10  ;;  %3690 = vmatmul.mubr.msk.f32.vlgmr.msra.gmra.mxu1 %vm64_vm0, %v3050_v11  ;;  %v49_v54 = vld [vmem:[%s5374_s0 + $0xa8] sm:$0xff]  ;;  %v50_v56 = vld [vmem:[%s5374_s0 + $0xb0] sm:$0xff]  ;;  %v51_v58 = vld [vmem:[%s5374_s0 + $0xb8] sm:$0xff] }
  0x14   :  { %3634 = vmatprep.mubr.msk.f32.mxu0 %vm64_vm0, %v30_v12  ;;  %3692 = vmatprep.mubr.msk.f32.mxu1 %vm64_vm0, %v3051_v13  ;;  %v3070_v55 = vld [vmem:[%s5374_s0 + $0x188] sm:$0xff]  ;;  %v3071_v57 = vld [vmem:[%s5374_s0 + $0x190] sm:$0xff]  ;;  %v3072_v59 = vld [vmem:[%s5374_s0 + $0x198] sm:$0xff] }
  0x15   :  { %3731 = vmatprep.subr.mxu0 %v3108_v18  ;;  %v52_v60 = vld [vmem:[%s5374_s0 + $0xc0] sm:$0xff]  ;;  %v53_v62 = vld [vmem:[%s5374_s0 + $0xc8] sm:$0xff]  ;;  %v54_v8 = vld [vmem:[%s5374_s0 + $0xd0] sm:$0xff] }
  0x16   :  { %3732 = vmatpush3.msra.mxu0 %v3108_v18  ;;  %v3073_v61 = vld [vmem:[%s5374_s0 + $0x1a0] sm:$0xff]  ;;  %v3074_v63 = vld [vmem:[%s5374_s0 + $0x1a8] sm:$0xff]  ;;  %v3075_v9 = vld [vmem:[%s5374_s0 + $0x1b0] sm:$0xff] }
  0x17   :  { %3635 = vmatmul.mubr.msk.f32.gmra.mxu0 %vm64_vm0, %v31_v14  ;;  %3693 = vmatmul.mubr.msk.f32.gmra.mxu1 %vm64_vm0, %v3052_v15  ;;  %v55_v10 = vld [vmem:[%s5374_s0 + $0xd8] sm:$0xf]  ;;  %v452_v13 = vld [vmem:[%s5375_s4 + $0x10] sm:$0xff]  ;;  %v451_v14 = vld [vmem:[%s5375_s4 + $0x8] sm:$0xff] }
  0x18   :  { %3637 = vmatprep.mubr.msk.f32.mxu0 %vm64_vm0, %v32_v16  ;;  %3695 = vmatprep.mubr.msk.f32.mxu1 %vm64_vm0, %v3053_v17  ;;  %v3076_v11 = vld [vmem:[%s5374_s0 + $0x1b8] sm:$0xf]  ;;  %v450_v15 = vld [vmem:[%s5375_s4] sm:$0xff] }
  0x19   :  { %3733 = vmatprep.subr.mxu0 %v3107_v23  ;;  %v453_v12 = vld [vmem:[%s5375_s4 + $0x18] sm:$0xff]  ;;  %v4413_v16 = vld [vmem:[%s5376_s2] ss:$0 sm:$0xff] }
  0x1a   :  { %3734 = vmatpush3.msra.mxu0 %v3107_v23  ;;  %3781 = vmatprep.subr.mxu1 %v453_v12 }
  0x1b   :  { %3638 = vmatmul.mubr.msk.f32.gmra.mxu0 %vm64_vm0, %v33_v19  ;;  %3696 = vmatmul.mubr.msk.f32.gmra.mxu1 %vm64_vm0, %v3054_v20  ;;  %v4418_v19 = vld [vmem:[%s5377_s3] ss:$0 sm:$0xff] }
  0x1c   :  { %3640 = vmatprep.mubr.msk.f32.mxu0 %vm64_vm0, %v34_v21  ;;  %3698 = vmatprep.mubr.msk.f32.mxu1 %vm64_vm0, %v3055_v22 }
  0x1d   :  { %3735 = vmatprep.subr.mxu0 %v3106_v28  ;;  %3782 = vmatpush3.msra.mxu1 %v453_v12 }
  0x1e   :  { %3736 = vmatpush3.msra.mxu0 %v3106_v28  ;;  %3783 = vmatprep.subr.mxu1 %v452_v13 }
  0x1f   :  { %3641 = vmatmul.mubr.msk.f32.gmra.mxu0 %vm64_vm0, %v35_v24  ;;  %3699 = vmatmul.mubr.msk.f32.gmra.mxu1 %vm64_vm0, %v3056_v25 }
  0x20   :  { %3643 = vmatprep.mubr.msk.f32.mxu0 %vm64_vm0, %v36_v26  ;;  %3701 = vmatprep.mubr.msk.f32.mxu1 %vm64_vm0, %v3057_v27 }
  0x21   :  { %3737 = vmatprep.subr.mxu0 %v3105_v33  ;;  %3784 = vmatpush3.msra.mxu1 %v452_v13 }
  0x22   :  { %3738 = vmatpush3.msra.mxu0 %v3105_v33  ;;  %3785 = vmatprep.subr.mxu1 %v451_v14 }
  0x23   :  { %3644 = vmatmul.mubr.msk.f32.gmra.mxu0 %vm64_vm0, %v37_v29  ;;  %3702 = vmatmul.mubr.msk.f32.gmra.mxu1 %vm64_vm0, %v3058_v30 }
  0x24   :  { %3646 = vmatprep.mubr.msk.f32.mxu0 %vm64_vm0, %v38_v31  ;;  %3704 = vmatprep.mubr.msk.f32.mxu1 %vm64_vm0, %v3059_v32 }
  0x25   :  { %3831 = vmatprep.subr.mxu0 %v4092_v0  ;;  %3786 = vmatpush3.msra.mxu1 %v451_v14 }
  0x26   :  { %3787 = vmatprep.subr.mxu1 %v450_v15 }
  0x27   :  { %3647 = vmatmul.mubr.msk.f32.gmra.mxu0 %vm64_vm0, %v39_v34  ;;  %3705 = vmatmul.mubr.msk.f32.gmra.mxu1 %vm64_vm0, %v3060_v35 }
  0x28   :  { %3649 = vmatprep.mubr.msk.f32.mxu0 %vm64_vm0, %v40_v36  ;;  %3707 = vmatprep.mubr.msk.f32.mxu1 %vm64_vm0, %v3061_v37 }
  0x29   :  { %3788 = vmatpush3.msra.mxu1 %v450_v15 }
  0x2b   :  { %3650 = vmatmul.mubr.msk.f32.gmra.mxu0 %vm64_vm0, %v41_v38  ;;  %3708 = vmatmul.mubr.msk.f32.gmra.mxu1 %vm64_vm0, %v3062_v39 }
  0x2c   :  { %3652 = vmatprep.mubr.msk.f32.mxu0 %vm64_vm0, %v42_v40  ;;  %3710 = vmatprep.mubr.msk.f32.mxu1 %vm64_vm0, %v3063_v41 }
  0x2f   :  { %3653 = vmatmul.mubr.msk.f32.gmra.mxu0 %vm64_vm0, %v43_v42  ;;  %3711 = vmatmul.mubr.msk.f32.gmra.mxu1 %vm64_vm0, %v3064_v43 }
  0x30   :  { %3655 = vmatprep.mubr.msk.f32.mxu0 %vm64_vm0, %v44_v44  ;;  %3713 = vmatprep.mubr.msk.f32.mxu1 %vm64_vm0, %v3065_v45 }
  0x33   :  { %3656 = vmatmul.mubr.msk.f32.gmra.mxu0 %vm64_vm0, %v45_v46  ;;  %3714 = vmatmul.mubr.msk.f32.gmra.mxu1 %vm64_vm0, %v3066_v47 }
  0x34   :  { %3658 = vmatprep.mubr.msk.f32.mxu0 %vm64_vm0, %v46_v48  ;;  %3716 = vmatprep.mubr.msk.f32.mxu1 %vm64_vm0, %v3067_v49 }
  0x37   :  { %3659 = vmatmul.mubr.msk.f32.gmra.mxu0 %vm64_vm0, %v47_v50  ;;  %3717 = vmatmul.mubr.msk.f32.gmra.mxu1 %vm64_vm0, %v3068_v51 }
  0x38   :  { %3661 = vmatprep.mubr.msk.f32.mxu0 %vm64_vm0, %v48_v52  ;;  %3719 = vmatprep.mubr.msk.f32.mxu1 %vm64_vm0, %v3069_v53 }
  0x3b   :  { %3662 = vmatmul.mubr.msk.f32.gmra.mxu0 %vm64_vm0, %v49_v54  ;;  %3720 = vmatmul.mubr.msk.f32.gmra.mxu1 %vm64_vm0, %v3070_v55 }
  0x3c   :  { %3664 = vmatprep.mubr.msk.f32.mxu0 %vm64_vm0, %v50_v56  ;;  %3722 = vmatprep.mubr.msk.f32.mxu1 %vm64_vm0, %v3071_v57 }
  0x3f   :  { %3665 = vmatmul.mubr.msk.f32.gmra.mxu0 %vm64_vm0, %v51_v58  ;;  %3723 = vmatmul.mubr.msk.f32.gmra.mxu1 %vm64_vm0, %v3072_v59 }
  0x40   :  { %3667 = vmatprep.mubr.msk.f32.mxu0 %vm64_vm0, %v52_v60  ;;  %3725 = vmatprep.mubr.msk.f32.mxu1 %vm64_vm0, %v3073_v61 }
  0x43   :  { %3668 = vmatmul.mubr.msk.f32.gmra.mxu0 %vm64_vm0, %v53_v62  ;;  %3726 = vmatmul.mubr.msk.f32.gmra.mxu1 %vm64_vm0, %v3074_v63 }
  0x44   :  { %3670 = vmatprep.mubr.msk.f32.mxu0 %vm64_vm0, %v54_v8  ;;  %3728 = vmatprep.mubr.msk.f32.mxu1 %vm64_vm0, %v3075_v9 }
  0x47   :  { %3671 = vmatmul.mubr.msk.f32.gmra.mxu0 %vm64_vm0, %v55_v10  ;;  %3729 = vmatmul.mubr.msk.f32.gmra.mxu1 %vm64_vm0, %v3076_v11 }
  0xd3   :  { %v3633_v17 = vpop.f32.mrf.mxu0  ;;  %v3691_v18 = vpop.f32.mrf.mxu1 }
  0xd4   :  { %v361_v20 = vmul.f32 %v3633_v17, %v4413_v16  ;;  %v773_v21 = vmul.f32 %v3691_v18, %v4413_v16 }
  0xd5   :  { %v215_v22 = vpop.f32.mrf.mxu0  ;;  %v633_v23 = vpop.f32.mrf.mxu1 }
  0xd6   :  { %v395_v24 = vadd.f32 %v4418_v19, %v361_v20  ;;  %v360_v25 = vmul.f32 %v4413_v16, %v215_v22  ;;  %v772_v26 = vmul.f32 %v4413_v16, %v633_v23  ;;  %v801_v27 = vadd.f32 %v4418_v19, %v773_v21 }
  0xd7   :  { %v3636_v28 = vpop.f32.mrf.mxu0  ;;  %v3694_v29 = vpop.f32.mrf.mxu1 }
  0xd8   :  { %v394_v30 = vadd.f32 %v4418_v19, %v360_v25  ;;  %v800_v31 = vadd.f32 %v4418_v19, %v772_v26  ;;  %v423_v32 = vmax.f32 %v395_v24, 0.0  ;;  %v363_v33 = vmul.f32 %v3636_v28, %v4413_v16 }
  0xd9   :  { %v775_v34 = vmul.f32 %v3694_v29, %v4413_v16  ;;  %v225_v35 = vpop.f32.mrf.mxu0  ;;  %v643_v36 = vpop.f32.mrf.mxu1  ;;  %v829_v41 = vmax.f32 %v801_v27, 0.0 }
  0xda   :  { %v422_v37 = vmax.f32 %v394_v30, 0.0  ;;  %v828_v38 = vmax.f32 %v800_v31, 0.0  ;;  %v362_v39 = vmul.f32 %v4413_v16, %v225_v35  ;;  %v774_v40 = vmul.f32 %v4413_v16, %v643_v36 }
  0xdb   :  { %v397_v42 = vadd.f32 %v4418_v19, %v363_v33  ;;  %v803_v43 = vadd.f32 %v4418_v19, %v775_v34  ;;  %v3639_v44 = vpop.f32.mrf.mxu0  ;;  %v3697_v45 = vpop.f32.mrf.mxu1 }
  0xdc   :  { %v396_v46 = vadd.f32 %v4418_v19, %v362_v39  ;;  %v802_v47 = vadd.f32 %v4418_v19, %v774_v40  ;;  %v365_v48 = vmul.f32 %v3639_v44, %v4413_v16  ;;  %v777_v49 = vmul.f32 %v3697_v45, %v4413_v16  ;;  %3739 = vmatprep.mubr.msk.f32.mxu0 %vm861_vm1, %v828_v38 }
  0xdd   :  { %3789 = vmatprep.mubr.msk.f32.mxu1 %vm861_vm1, %v422_v37  ;;  %v235_v50 = vpop.f32.mrf.mxu0  ;;  %v653_v51 = vpop.f32.mrf.mxu1  ;;  %3740 = vmatmul.mubr.msk.f32.vlgmr.msra.gmra.mxu0 %vm861_vm1, %v829_v41  ;;  %v425_v52 = vmax.f32 %v397_v42, 0.0  ;;  %v831_v56 = vmax.f32 %v803_v43, 0.0 }
  0xde   :  { %v424_v53 = vmax.f32 %v396_v46, 0.0  ;;  %v830_v54 = vmax.f32 %v802_v47, 0.0  ;;  %v399_v55 = vadd.f32 %v4418_v19, %v365_v48  ;;  %3790 = vmatmul.mubr.msk.f32.vlgmr.msra.gmra.mxu1 %vm861_vm1, %v423_v32  ;;  %3832 = vmatpush3.msra.mxu0 %v4092_v0  ;;  %v364_v57 = vmul.f32 %v4413_v16, %v235_v50 }
  0xdf   :  { %v776_v58 = vmul.f32 %v4413_v16, %v653_v51  ;;  %v3642_v59 = vpop.f32.mrf.mxu0  ;;  %v3700_v60 = vpop.f32.mrf.mxu1  ;;  %3833 = vmatprep.subr.mxu0 %v4097_v1  ;;  %v805_v61 = vadd.f32 %v4418_v19, %v777_v49 }
  0xe0   :  { %v367_v62 = vmul.f32 %v3642_v59, %v4413_v16  ;;  %v779_v63 = vmul.f32 %v3700_v60, %v4413_v16  ;;  %3742 = vmatprep.mubr.msk.f32.mxu0 %vm861_vm1, %v830_v54  ;;  %3792 = vmatprep.mubr.msk.f32.mxu1 %vm861_vm1, %v424_v53  ;;  %v398_v8 = vadd.f32 %v4418_v19, %v364_v57  ;;  %v427_v12 = vmax.f32 %v399_v55, 0.0 }
  0xe1   :  { %v804_v9 = vadd.f32 %v4418_v19, %v776_v58  ;;  %v245_v10 = vpop.f32.mrf.mxu0  ;;  %v663_v11 = vpop.f32.mrf.mxu1  ;;  %3743 = vmatmul.mubr.msk.f32.gmra.mxu0 %vm861_vm1, %v831_v56  ;;  %v833_v23 = vmax.f32 %v805_v61, 0.0 }
  0xe2   :  { %v401_v13 = vadd.f32 %v4418_v19, %v367_v62  ;;  %v366_v14 = vmul.f32 %v4413_v16, %v245_v10  ;;  %v778_v15 = vmul.f32 %v4413_v16, %v663_v11  ;;  %3793 = vmatmul.mubr.msk.f32.gmra.mxu1 %vm861_vm1, %v425_v52  ;;  %v426_v17 = vmax.f32 %v398_v8, 0.0  ;;  %3834 = vmatpush3.msra.mxu0 %v4097_v1 }
  0xe3   :  { %v832_v18 = vmax.f32 %v804_v9, 0.0  ;;  %v807_v20 = vadd.f32 %v4418_v19, %v779_v63  ;;  %v3645_v21 = vpop.f32.mrf.mxu0  ;;  %v3703_v22 = vpop.f32.mrf.mxu1  ;;  %3835 = vmatprep.subr.mxu0 %v4106_v2 }
  0xe4   :  { %v400_v24 = vadd.f32 %v4418_v19, %v366_v14  ;;  %v806_v25 = vadd.f32 %v4418_v19, %v778_v15  ;;  %v429_v26 = vmax.f32 %v401_v13, 0.0  ;;  %v369_v27 = vmul.f32 %v3645_v21, %v4413_v16  ;;  %3795 = vmatprep.mubr.msk.f32.mxu1 %vm861_vm1, %v426_v17  ;;  %3836 = vmatpush3.msra.mxu0 %v4106_v2 }
  0xe5   :  { %v781_v28 = vmul.f32 %v3703_v22, %v4413_v16  ;;  %3745 = vmatprep.mubr.msk.f32.mxu0 %vm861_vm1, %v832_v18  ;;  %v255_v29 = vpop.f32.mrf.mxu0  ;;  %v673_v30 = vpop.f32.mrf.mxu1  ;;  %v835_v35 = vmax.f32 %v807_v20, 0.0  ;;  %3837 = vmatprep.subr.mxu0 %v4115_v3 }
  0xe6   :  { %v428_v31 = vmax.f32 %v400_v24, 0.0  ;;  %v834_v32 = vmax.f32 %v806_v25, 0.0  ;;  %v368_v33 = vmul.f32 %v4413_v16, %v255_v29  ;;  %v780_v34 = vmul.f32 %v4413_v16, %v673_v30  ;;  %3746 = vmatmul.mubr.msk.f32.gmra.mxu0 %vm861_vm1, %v833_v23  ;;  %3796 = vmatmul.mubr.msk.f32.gmra.mxu1 %vm861_vm1, %v427_v12 }
  0xe7   :  { %v403_v36 = vadd.f32 %v4418_v19, %v369_v27  ;;  %v809_v37 = vadd.f32 %v4418_v19, %v781_v28  ;;  %v3648_v38 = vpop.f32.mrf.mxu0  ;;  %v3706_v39 = vpop.f32.mrf.mxu1  ;;  %3838 = vmatpush3.msra.mxu0 %v4115_v3 }
  0xe8   :  { %v402_v40 = vadd.f32 %v4418_v19, %v368_v33  ;;  %v808_v41 = vadd.f32 %v4418_v19, %v780_v34  ;;  %v371_v42 = vmul.f32 %v3648_v38, %v4413_v16  ;;  %v783_v43 = vmul.f32 %v3706_v39, %v4413_v16  ;;  %3748 = vmatprep.mubr.msk.f32.mxu0 %vm861_vm1, %v834_v32 }
  0xe9   :  { %3798 = vmatprep.mubr.msk.f32.mxu1 %vm861_vm1, %v428_v31  ;;  %v265_v44 = vpop.f32.mrf.mxu0  ;;  %v683_v45 = vpop.f32.mrf.mxu1  ;;  %v431_v49 = vmax.f32 %v403_v36, 0.0  ;;  %v837_v54 = vmax.f32 %v809_v37, 0.0  ;;  %3839 = vmatprep.subr.mxu0 %v4124_v4 }
  0xea   :  { %v430_v46 = vmax.f32 %v402_v40, 0.0  ;;  %v836_v47 = vmax.f32 %v808_v41, 0.0  ;;  %v405_v48 = vadd.f32 %v4418_v19, %v371_v42  ;;  %3749 = vmatmul.mubr.msk.f32.gmra.mxu0 %vm861_vm1, %v835_v35  ;;  %3799 = vmatmul.mubr.msk.f32.gmra.mxu1 %vm861_vm1, %v429_v26  ;;  %v370_v50 = vmul.f32 %v4413_v16, %v265_v44 }
  0xeb   :  { %v782_v51 = vmul.f32 %v4413_v16, %v683_v45  ;;  %v3651_v52 = vpop.f32.mrf.mxu0  ;;  %v3709_v53 = vpop.f32.mrf.mxu1  ;;  %v811_v55 = vadd.f32 %v4418_v19, %v783_v43  ;;  %3840 = vmatpush3.msra.mxu0 %v4124_v4 }
  0xec   :  { %v373_v56 = vmul.f32 %v3651_v52, %v4413_v16  ;;  %v785_v57 = vmul.f32 %v3709_v53, %v4413_v16  ;;  %3751 = vmatprep.mubr.msk.f32.mxu0 %vm861_vm1, %v836_v47  ;;  %3801 = vmatprep.mubr.msk.f32.mxu1 %vm861_vm1, %v430_v46  ;;  %v404_v58 = vadd.f32 %v4418_v19, %v370_v50  ;;  %v433_v62 = vmax.f32 %v405_v48, 0.0 }
  0xed   :  { %v810_v59 = vadd.f32 %v4418_v19, %v782_v51  ;;  %v275_v60 = vpop.f32.mrf.mxu0  ;;  %v693_v61 = vpop.f32.mrf.mxu1  ;;  %v839_v15 = vmax.f32 %v811_v55, 0.0  ;;  %3841 = vmatprep.subr.mxu0 %v4133_v5 }
  0xee   :  { %v372_v63 = vmul.f32 %v4413_v16, %v275_v60  ;;  %v784_v8 = vmul.f32 %v4413_v16, %v693_v61  ;;  %3752 = vmatmul.mubr.msk.f32.gmra.mxu0 %vm861_vm1, %v837_v54  ;;  %v432_v9 = vmax.f32 %v404_v58, 0.0  ;;  %v407_v11 = vadd.f32 %v4418_v19, %v373_v56  ;;  %3802 = vmatmul.mubr.msk.f32.gmra.mxu1 %vm861_vm1, %v431_v49 }
  0xef   :  { %v838_v10 = vmax.f32 %v810_v59, 0.0  ;;  %v813_v12 = vadd.f32 %v4418_v19, %v785_v57  ;;  %v3654_v13 = vpop.f32.mrf.mxu0  ;;  %v3712_v14 = vpop.f32.mrf.mxu1  ;;  %3842 = vmatpush3.msra.mxu0 %v4133_v5 }
  0xf0   :  { %v406_v17 = vadd.f32 %v4418_v19, %v372_v63  ;;  %v812_v18 = vadd.f32 %v4418_v19, %v784_v8  ;;  %v375_v20 = vmul.f32 %v3654_v13, %v4413_v16  ;;  %v787_v21 = vmul.f32 %v3712_v14, %v4413_v16  ;;  %3804 = vmatprep.mubr.msk.f32.mxu1 %vm861_vm1, %v432_v9 }
  0xf1   :  { %3754 = vmatprep.mubr.msk.f32.mxu0 %vm861_vm1, %v838_v10  ;;  %v285_v22 = vpop.f32.mrf.mxu0  ;;  %v703_v23 = vpop.f32.mrf.mxu1  ;;  %v435_v28 = vmax.f32 %v407_v11, 0.0  ;;  %v841_v29 = vmax.f32 %v813_v12, 0.0  ;;  %3843 = vmatprep.subr.mxu0 %v4142_v6 }
  0xf2   :  { %v434_v24 = vmax.f32 %v406_v17, 0.0  ;;  %v840_v25 = vmax.f32 %v812_v18, 0.0  ;;  %v374_v26 = vmul.f32 %v4413_v16, %v285_v22  ;;  %v786_v27 = vmul.f32 %v4413_v16, %v703_v23  ;;  %3755 = vmatmul.mubr.msk.f32.gmra.mxu0 %vm861_vm1, %v839_v15  ;;  %3805 = vmatmul.mubr.msk.f32.gmra.mxu1 %vm861_vm1, %v433_v62 }
  0xf3   :  { %v409_v30 = vadd.f32 %v4418_v19, %v375_v20  ;;  %v815_v31 = vadd.f32 %v4418_v19, %v787_v21  ;;  %v3657_v32 = vpop.f32.mrf.mxu0  ;;  %v3715_v33 = vpop.f32.mrf.mxu1  ;;  %3844 = vmatpush3.msra.mxu0 %v4142_v6 }
  0xf4   :  { %v408_v34 = vadd.f32 %v4418_v19, %v374_v26  ;;  %v814_v35 = vadd.f32 %v4418_v19, %v786_v27  ;;  %v377_v36 = vmul.f32 %v3657_v32, %v4413_v16  ;;  %v789_v37 = vmul.f32 %v3715_v33, %v4413_v16  ;;  %3757 = vmatprep.mubr.msk.f32.mxu0 %vm861_vm1, %v840_v25 }
  0xf5   :  { %3807 = vmatprep.mubr.msk.f32.mxu1 %vm861_vm1, %v434_v24  ;;  %v295_v38 = vpop.f32.mrf.mxu0  ;;  %v713_v39 = vpop.f32.mrf.mxu1  ;;  %v437_v43 = vmax.f32 %v409_v30, 0.0  ;;  %v843_v48 = vmax.f32 %v815_v31, 0.0  ;;  %3845 = vmatprep.subr.mxu0 %v4151_v7 }
  0xf6   :  { %v436_v40 = vmax.f32 %v408_v34, 0.0  ;;  %v842_v41 = vmax.f32 %v814_v35, 0.0  ;;  %v411_v42 = vadd.f32 %v4418_v19, %v377_v36  ;;  %3758 = vmatmul.mubr.msk.f32.gmra.mxu0 %vm861_vm1, %v841_v29  ;;  %v376_v44 = vmul.f32 %v4413_v16, %v295_v38  ;;  %3808 = vmatmul.mubr.msk.f32.gmra.mxu1 %vm861_vm1, %v435_v28 }
  0xf7   :  { %v788_v45 = vmul.f32 %v4413_v16, %v713_v39  ;;  %v3660_v46 = vpop.f32.mrf.mxu0  ;;  %v3718_v47 = vpop.f32.mrf.mxu1  ;;  %v817_v49 = vadd.f32 %v4418_v19, %v789_v37  ;;  %3846 = vmatpush3.msra.mxu0 %v4151_v7 }
  0xf8   :  { %v379_v50 = vmul.f32 %v3660_v46, %v4413_v16  ;;  %v791_v51 = vmul.f32 %v3718_v47, %v4413_v16  ;;  %3760 = vmatprep.mubr.msk.f32.mxu0 %vm861_vm1, %v842_v41  ;;  %3810 = vmatprep.mubr.msk.f32.mxu1 %vm861_vm1, %v436_v40  ;;  %v410_v52 = vadd.f32 %v4418_v19, %v376_v44  ;;  %v439_v56 = vmax.f32 %v411_v42, 0.0 }
  0xf9   :  { %v816_v53 = vadd.f32 %v4418_v19, %v788_v45  ;;  %v305_v54 = vpop.f32.mrf.mxu0  ;;  %v723_v55 = vpop.f32.mrf.mxu1  ;;  %v845_v9 = vmax.f32 %v817_v49, 0.0  ;;  %3939 = vmatprep.subr.mxu0 %v4092_v0 }
  0xfa   :  { %v378_v57 = vmul.f32 %v4413_v16, %v305_v54  ;;  %v790_v58 = vmul.f32 %v4413_v16, %v723_v55  ;;  %3761 = vmatmul.mubr.msk.f32.gmra.mxu0 %vm861_vm1, %v843_v48  ;;  %v438_v59 = vmax.f32 %v410_v52, 0.0  ;;  %v413_v61 = vadd.f32 %v4418_v19, %v379_v50  ;;  %3811 = vmatmul.mubr.msk.f32.gmra.mxu1 %vm861_vm1, %v437_v43 }
  0xfb   :  { %v844_v60 = vmax.f32 %v816_v53, 0.0  ;;  %v819_v62 = vadd.f32 %v4418_v19, %v791_v51  ;;  %v3663_v63 = vpop.f32.mrf.mxu0  ;;  %v3721_v8 = vpop.f32.mrf.mxu1 }
  0xfc   :  { %v412_v10 = vadd.f32 %v4418_v19, %v378_v57  ;;  %v818_v11 = vadd.f32 %v4418_v19, %v790_v58  ;;  %v381_v12 = vmul.f32 %v3663_v63, %v4413_v16  ;;  %v793_v13 = vmul.f32 %v3721_v8, %v4413_v16  ;;  %3813 = vmatprep.mubr.msk.f32.mxu1 %vm861_vm1, %v438_v59 }
  0xfd   :  { %3763 = vmatprep.mubr.msk.f32.mxu0 %vm861_vm1, %v844_v60  ;;  %v315_v14 = vpop.f32.mrf.mxu0  ;;  %v733_v15 = vpop.f32.mrf.mxu1  ;;  %v441_v22 = vmax.f32 %v413_v61, 0.0  ;;  %v847_v23 = vmax.f32 %v819_v62, 0.0 }
  0xfe   :  { %v440_v17 = vmax.f32 %v412_v10, 0.0  ;;  %v846_v18 = vmax.f32 %v818_v11, 0.0  ;;  %v380_v20 = vmul.f32 %v4413_v16, %v315_v14  ;;  %v792_v21 = vmul.f32 %v4413_v16, %v733_v15  ;;  %3764 = vmatmul.mubr.msk.f32.gmra.mxu0 %vm861_vm1, %v845_v9  ;;  %3814 = vmatmul.mubr.msk.f32.gmra.mxu1 %vm861_vm1, %v439_v56 }
  0xff   :  { %v415_v24 = vadd.f32 %v4418_v19, %v381_v12  ;;  %v821_v25 = vadd.f32 %v4418_v19, %v793_v13  ;;  %v3666_v26 = vpop.f32.mrf.mxu0  ;;  %v3724_v27 = vpop.f32.mrf.mxu1 }
 0x100   :  { %v414_v28 = vadd.f32 %v4418_v19, %v380_v20  ;;  %v820_v29 = vadd.f32 %v4418_v19, %v792_v21  ;;  %v383_v30 = vmul.f32 %v3666_v26, %v4413_v16  ;;  %v795_v31 = vmul.f32 %v3724_v27, %v4413_v16  ;;  %3766 = vmatprep.mubr.msk.f32.mxu0 %vm861_vm1, %v846_v18  ;;  %v3167_v26 = vld [vmem:[%s5374_s0 + $0x1d0] sm:$0xff]  ;;  %v3168_v27 = vld [vmem:[%s5374_s0 + $0x1d8] sm:$0xff] }
 0x101   :  { %3816 = vmatprep.mubr.msk.f32.mxu1 %vm861_vm1, %v440_v17  ;;  %v325_v32 = vpop.f32.mrf.mxu0  ;;  %v743_v33 = vpop.f32.mrf.mxu1  ;;  %v443_v36 = vmax.f32 %v415_v24, 0.0  ;;  %v849_v42 = vmax.f32 %v821_v25, 0.0  ;;  %v3166_v25 = vld [vmem:[%s5374_s0 + $0x1c8] sm:$0xff] }
 0x102   :  { %v442_v34 = vmax.f32 %v414_v28, 0.0  ;;  %v848_v35 = vmax.f32 %v820_v29, 0.0  ;;  %3767 = vmatmul.mubr.msk.f32.gmra.mxu0 %vm861_vm1, %v847_v23  ;;  %v417_v37 = vadd.f32 %v4418_v19, %v383_v30  ;;  %v382_v38 = vmul.f32 %v4413_v16, %v325_v32  ;;  %3817 = vmatmul.mubr.msk.f32.gmra.mxu1 %vm861_vm1, %v441_v22  ;;  %v3169_v28 = vld [vmem:[%s5374_s0 + $0x1e0] sm:$0xff]  ;;  %v3171_v29 = vld [vmem:[%s5374_s0 + $0x1f0] sm:$0xff]  ;;  %v3180_v32 = vld [vmem:[%s5374_s0 + $0x238] sm:$0xff] }
 0x103   :  { %v794_v39 = vmul.f32 %v4413_v16, %v743_v33  ;;  %v3669_v40 = vpop.f32.mrf.mxu0  ;;  %v3727_v41 = vpop.f32.mrf.mxu1  ;;  %v823_v43 = vadd.f32 %v4418_v19, %v795_v31  ;;  %v3177_v30 = vld [vmem:[%s5374_s0 + $0x220] sm:$0xff]  ;;  %v3179_v31 = vld [vmem:[%s5374_s0 + $0x230] sm:$0xff] }
 0x104   :  { %v385_v44 = vmul.f32 %v3669_v40, %v4413_v16  ;;  %v797_v45 = vmul.f32 %v3727_v41, %v4413_v16  ;;  %3769 = vmatprep.mubr.msk.f32.mxu0 %vm861_vm1, %v848_v35  ;;  %3819 = vmatprep.mubr.msk.f32.mxu1 %vm861_vm1, %v442_v34  ;;  %v416_v46 = vadd.f32 %v4418_v19, %v382_v38  ;;  %v445_v52 = vmax.f32 %v417_v37, 0.0  ;;  %v3181_v33 = vld [vmem:[%s5374_s0 + $0x240] sm:$0xff]  ;;  %v3182_v34 = vld [vmem:[%s5374_s0 + $0x248] sm:$0xff]  ;;  %v3183_v35 = vld [vmem:[%s5374_s0 + $0x250] sm:$0xff] }
 0x105   :  { %v822_v47 = vadd.f32 %v4418_v19, %v794_v39  ;;  %v335_v48 = vpop.f32.mrf.mxu0  ;;  %v753_v49 = vpop.f32.mrf.mxu1  ;;  %v851_v58 = vmax.f32 %v823_v43, 0.0  ;;  %v3184_v37 = vld [vmem:[%s5374_s0 + $0x258] sm:$0xff]  ;;  %v3185_v38 = vld [vmem:[%s5374_s0 + $0x260] sm:$0xff]  ;;  %v3186_v39 = vld [vmem:[%s5374_s0 + $0x268] sm:$0xff] }
 0x106   :  { %v384_v50 = vmul.f32 %v4413_v16, %v335_v48  ;;  %v796_v51 = vmul.f32 %v4413_v16, %v753_v49  ;;  %3770 = vmatmul.mubr.msk.f32.gmra.mxu0 %vm861_vm1, %v849_v42  ;;  %v444_v53 = vmax.f32 %v416_v46, 0.0  ;;  %v419_v55 = vadd.f32 %v4418_v19, %v385_v44  ;;  %3820 = vmatmul.mubr.msk.f32.gmra.mxu1 %vm861_vm1, %v443_v36  ;;  %v3223_v36 = vld [vmem:[%s5375_s4 + $0x50] sm:$0xff]  ;;  %v3188_v41 = vld [vmem:[%s5374_s0 + $0x278] sm:$0xff]  ;;  %v3189_v42 = vld [vmem:[%s5374_s0 + $0x280] sm:$0xff] }
 0x107   :  { %v850_v54 = vmax.f32 %v822_v47, 0.0  ;;  %v3672_v56 = vpop.f32.mrf.mxu0  ;;  %v3730_v57 = vpop.f32.mrf.mxu1  ;;  %v825_v59 = vadd.f32 %v4418_v19, %v797_v45  ;;  %v3187_v40 = vld [vmem:[%s5374_s0 + $0x270] sm:$0xff]  ;;  %v3190_v43 = vld [vmem:[%s5374_s0 + $0x288] sm:$0xff]  ;;  %v3192_v46 = vld [vmem:[%s5374_s0 + $0x298] sm:$0xf] }
 0x108   :  { %v418_v60 = vadd.f32 %v4418_v19, %v384_v50  ;;  %v824_v61 = vadd.f32 %v4418_v19, %v796_v51  ;;  %v387_v62 = vmul.f32 %v3672_v56, %v4413_v16  ;;  %v799_v63 = vmul.f32 %v3730_v57, %v4413_v16  ;;  %3822 = vmatprep.mubr.msk.f32.mxu1 %vm861_vm1, %v444_v53  ;;  %v3191_v44 = vld [vmem:[%s5374_s0 + $0x290] sm:$0xff]  ;;  %v3222_v45 = vld [vmem:[%s5375_s4 + $0x48] sm:$0xff]  ;;  %v3253_v47 = vld [vmem:[%s5374_s0 + $0x2a0] sm:$0xff] }
 0x109   :  { %3772 = vmatprep.mubr.msk.f32.mxu0 %vm861_vm1, %v850_v54  ;;  %v345_v8 = vpop.f32.mrf.mxu0  ;;  %v763_v9 = vpop.f32.mrf.mxu1  ;;  %v447_v14 = vmax.f32 %v419_v55, 0.0  ;;  %v853_v17 = vmax.f32 %v825_v59, 0.0  ;;  %v3254_v48 = vld [vmem:[%s5374_s0 + $0x2a8] sm:$0xff]  ;;  %v3255_v49 = vld [vmem:[%s5374_s0 + $0x2b0] sm:$0xff]  ;;  %v3256_v50 = vld [vmem:[%s5374_s0 + $0x2b8] sm:$0xff] }
 0x10a   :  { %v446_v10 = vmax.f32 %v418_v60, 0.0  ;;  %v852_v11 = vmax.f32 %v824_v61, 0.0  ;;  %v386_v12 = vmul.f32 %v4413_v16, %v345_v8  ;;  %v798_v13 = vmul.f32 %v4413_v16, %v763_v9  ;;  %3773 = vmatmul.mubr.msk.f32.gmra.mxu0 %vm861_vm1, %v851_v58  ;;  %3823 = vmatmul.mubr.msk.f32.gmra.mxu1 %vm861_vm1, %v445_v52  ;;  %v3257_v51 = vld [vmem:[%s5374_s0 + $0x2c0] sm:$0xff]  ;;  %v3258_v53 = vld [vmem:[%s5374_s0 + $0x2c8] sm:$0xff]  ;;  %v3259_v54 = vld [vmem:[%s5374_s0 + $0x2d0] sm:$0xff] }
 0x10b   :  { %v421_v15 = vadd.f32 %v4418_v19, %v387_v62  ;;  %v827_v18 = vadd.f32 %v4418_v19, %v799_v63  ;;  %v3221_v52 = vld [vmem:[%s5375_s4 + $0x40] sm:$0xff]  ;;  %v3260_v55 = vld [vmem:[%s5374_s0 + $0x2d8] sm:$0xff]  ;;  %v3262_v57 = vld [vmem:[%s5374_s0 + $0x2e8] sm:$0xff] }
 0x10c   :  { %v420_v20 = vadd.f32 %v4418_v19, %v386_v12  ;;  %v826_v21 = vadd.f32 %v4418_v19, %v798_v13  ;;  %3775 = vmatprep.mubr.msk.f32.mxu0 %vm861_vm1, %v852_v11  ;;  %3825 = vmatprep.mubr.msk.f32.mxu1 %vm861_vm1, %v446_v10  ;;  %v3165_v19 = vld [vmem:[%s5374_s0 + $0x1c0] sm:$0xff]  ;;  %v3263_v58 = vld [vmem:[%s5374_s0 + $0x2f0] sm:$0xff]  ;;  %v3264_v59 = vld [vmem:[%s5374_s0 + $0x2f8] sm:$0xff] }
 0x10d   :  { %v449_v23 = vmax.f32 %v421_v15, 0.0  ;;  %v855_v24 = vmax.f32 %v827_v18, 0.0  ;;  %v3261_v56 = vld [vmem:[%s5374_s0 + $0x2e0] sm:$0xff]  ;;  %v3266_v61 = vld [vmem:[%s5374_s0 + $0x308] sm:$0xff]  ;;  %v4801_v62 = vld [vmem:[%s5375_s4 + $0x78] sm:$0xff] }
 0x10e   :  { %v448_v22 = vmax.f32 %v420_v20, 0.0  ;;  %v854_v16 = vmax.f32 %v826_v21, 0.0  ;;  %3776 = vmatmul.mubr.msk.f32.gmra.mxu0 %vm861_vm1, %v853_v17  ;;  %3826 = vmatmul.mubr.msk.f32.gmra.mxu1 %vm861_vm1, %v447_v14  ;;  %v3265_v60 = vld [vmem:[%s5374_s0 + $0x300] sm:$0xff]  ;;  %v3267_v63 = vld [vmem:[%s5374_s0 + $0x310] sm:$0xff]  ;;  %v3268_v8 = vld [vmem:[%s5374_s0 + $0x318] sm:$0xff] }
 0x10f   :  { %v3269_v9 = vld [vmem:[%s5374_s0 + $0x320] sm:$0xff]  ;;  %v3270_v10 = vld [vmem:[%s5374_s0 + $0x328] sm:$0xff]  ;;  %v3271_v11 = vld [vmem:[%s5374_s0 + $0x330] sm:$0xff] }
 0x110   :  { %3778 = vmatprep.mubr.msk.f32.mxu0 %vm861_vm1, %v854_v16  ;;  %3828 = vmatprep.mubr.msk.f32.mxu1 %vm861_vm1, %v448_v22  ;;  %v3272_v12 = vld [vmem:[%s5374_s0 + $0x338] sm:$0xff]  ;;  %v3273_v13 = vld [vmem:[%s5374_s0 + $0x340] sm:$0xff]  ;;  %v3274_v14 = vld [vmem:[%s5374_s0 + $0x348] sm:$0xff] }
 0x111   :  { %v3275_v15 = vld [vmem:[%s5374_s0 + $0x350] sm:$0xff]  ;;  %v3276_v17 = vld [vmem:[%s5374_s0 + $0x358] sm:$0xff]  ;;  %v3277_v18 = vld [vmem:[%s5374_s0 + $0x360] sm:$0xff] }
 0x112   :  { %3779 = vmatmul.mubr.msk.f32.gmra.mxu0 %vm861_vm1, %v855_v24  ;;  %3829 = vmatmul.mubr.msk.f32.gmra.mxu1 %vm861_vm1, %v449_v23  ;;  %v3278_v20 = vld [vmem:[%s5374_s0 + $0x368] sm:$0xff]  ;;  %v3279_v21 = vld [vmem:[%s5374_s0 + $0x370] sm:$0xff]  ;;  %v3280_v22 = vld [vmem:[%s5374_s0 + $0x378] sm:$0xf] }
 0x113   :  { %3847 = vmatprep.mubr.msk.f32.mxu0 %vm64_vm0, %v3165_v19 }
 0x116   :  { %3848 = vmatmul.mubr.msk.f32.vlgmr.msra.gmra.mxu0 %vm64_vm0, %v3166_v25 }
 0x117   :  { %3940 = vmatpush3.msra.mxu0 %v4092_v0  ;;  %3850 = vmatprep.mubr.msk.f32.mxu0 %vm64_vm0, %v3167_v26  ;;  %v3170_v0 = vld [vmem:[%s5374_s0 + $0x1e8] sm:$0xff] }
 0x118   :  { %3941 = vmatprep.subr.mxu0 %v4097_v1 }
 0x119   :  { %3942 = vmatpush3.msra.mxu0 %v4097_v1  ;;  %v3172_v1 = vld [vmem:[%s5374_s0 + $0x1f8] sm:$0xff] }
 0x11a   :  { %3851 = vmatmul.mubr.msk.f32.gmra.mxu0 %vm64_vm0, %v3168_v27  ;;  %3943 = vmatprep.subr.mxu0 %v4106_v2 }
 0x11b   :  { %3853 = vmatprep.mubr.msk.f32.mxu0 %vm64_vm0, %v3169_v28  ;;  %3944 = vmatpush3.msra.mxu0 %v4106_v2  ;;  %v3173_v2 = vld [vmem:[%s5374_s0 + $0x200] sm:$0xff] }
 0x11c   :  { %3945 = vmatprep.subr.mxu0 %v4115_v3 }
 0x11d   :  { %3946 = vmatpush3.msra.mxu0 %v4115_v3  ;;  %v3174_v3 = vld [vmem:[%s5374_s0 + $0x208] sm:$0xff] }
 0x11e   :  { %3854 = vmatmul.mubr.msk.f32.gmra.mxu0 %vm64_vm0, %v3170_v0  ;;  %3947 = vmatprep.subr.mxu0 %v4124_v4 }
 0x11f   :  { %3856 = vmatprep.mubr.msk.f32.mxu0 %vm64_vm0, %v3171_v29  ;;  %3948 = vmatpush3.msra.mxu0 %v4124_v4  ;;  %v3175_v4 = vld [vmem:[%s5374_s0 + $0x210] sm:$0xff] }
 0x120   :  { %3949 = vmatprep.subr.mxu0 %v4133_v5 }
 0x121   :  { %3950 = vmatpush3.msra.mxu0 %v4133_v5  ;;  %v3176_v5 = vld [vmem:[%s5374_s0 + $0x218] sm:$0xff] }
 0x122   :  { %3857 = vmatmul.mubr.msk.f32.gmra.mxu0 %vm64_vm0, %v3172_v1  ;;  %3951 = vmatprep.subr.mxu0 %v4142_v6 }
 0x123   :  { %3859 = vmatprep.mubr.msk.f32.mxu0 %vm64_vm0, %v3173_v2  ;;  %3952 = vmatpush3.msra.mxu0 %v4142_v6  ;;  %v3224_v6 = vld [vmem:[%s5375_s4 + $0x58] sm:$0xff] }
 0x124   :  { %3953 = vmatprep.subr.mxu0 %v4151_v7  ;;  %3889 = vmatprep.subr.mxu1 %v3224_v6 }
 0x125   :  { %3954 = vmatpush3.msra.mxu0 %v4151_v7  ;;  %3890 = vmatpush3.msra.mxu1 %v3224_v6  ;;  %v3178_v7 = vld [vmem:[%s5374_s0 + $0x228] sm:$0xff] }
 0x126   :  { %3860 = vmatmul.mubr.msk.f32.gmra.mxu0 %vm64_vm0, %v3174_v3  ;;  %3891 = vmatprep.subr.mxu1 %v3223_v36 }
 0x127   :  { %3862 = vmatprep.mubr.msk.f32.mxu0 %vm64_vm0, %v3175_v4  ;;  %3892 = vmatpush3.msra.mxu1 %v3223_v36 }
 0x128   :  { %3893 = vmatprep.subr.mxu1 %v3222_v45 }
 0x129   :  { %3894 = vmatpush3.msra.mxu1 %v3222_v45 }
 0x12a   :  { %3863 = vmatmul.mubr.msk.f32.gmra.mxu0 %vm64_vm0, %v3176_v5  ;;  %3895 = vmatprep.subr.mxu1 %v3221_v52 }
 0x12b   :  { %3865 = vmatprep.mubr.msk.f32.mxu0 %vm64_vm0, %v3177_v30  ;;  %3896 = vmatpush3.msra.mxu1 %v3221_v52 }
 0x12c   :  { %3997 = vmatprep.subr.mxu1 %v4801_v62 }
 0x12e   :  { %3866 = vmatmul.mubr.msk.f32.gmra.mxu0 %vm64_vm0, %v3178_v7 }
 0x12f   :  { %3868 = vmatprep.mubr.msk.f32.mxu0 %vm64_vm0, %v3179_v31 }
 0x132   :  { %3869 = vmatmul.mubr.msk.f32.gmra.mxu0 %vm64_vm0, %v3180_v32 }
 0x133   :  { %3871 = vmatprep.mubr.msk.f32.mxu0 %vm64_vm0, %v3181_v33 }
 0x136   :  { %3872 = vmatmul.mubr.msk.f32.gmra.mxu0 %vm64_vm0, %v3182_v34 }
 0x137   :  { %3874 = vmatprep.mubr.msk.f32.mxu0 %vm64_vm0, %v3183_v35 }
 0x13a   :  { %3875 = vmatmul.mubr.msk.f32.gmra.mxu0 %vm64_vm0, %v3184_v37 }
 0x13b   :  { %3877 = vmatprep.mubr.msk.f32.mxu0 %vm64_vm0, %v3185_v38 }
 0x13e   :  { %3878 = vmatmul.mubr.msk.f32.gmra.mxu0 %vm64_vm0, %v3186_v39 }
 0x13f   :  { %3880 = vmatprep.mubr.msk.f32.mxu0 %vm64_vm0, %v3187_v40 }
 0x142   :  { %3881 = vmatmul.mubr.msk.f32.gmra.mxu0 %vm64_vm0, %v3188_v41 }
 0x143   :  { %3883 = vmatprep.mubr.msk.f32.mxu0 %vm64_vm0, %v3189_v42 }
 0x146   :  { %3884 = vmatmul.mubr.msk.f32.gmra.mxu0 %vm64_vm0, %v3190_v43 }
 0x147   :  { %3886 = vmatprep.mubr.msk.f32.mxu0 %vm64_vm0, %v3191_v44 }
 0x14a   :  { %3887 = vmatmul.mubr.msk.f32.gmra.mxu0 %vm64_vm0, %v3192_v46 }
 0x14b   :  { %3955 = vmatprep.mubr.msk.f32.mxu0 %vm64_vm0, %v3253_v47 }
 0x14e   :  { %3956 = vmatmul.mubr.msk.f32.vlgmr.msra.gmra.mxu0 %vm64_vm0, %v3254_v48 }
 0x14f   :  { %3958 = vmatprep.mubr.msk.f32.mxu0 %vm64_vm0, %v3255_v49 }
 0x152   :  { %3959 = vmatmul.mubr.msk.f32.gmra.mxu0 %vm64_vm0, %v3256_v50 }
 0x153   :  { %3961 = vmatprep.mubr.msk.f32.mxu0 %vm64_vm0, %v3257_v51 }
 0x156   :  { %3962 = vmatmul.mubr.msk.f32.gmra.mxu0 %vm64_vm0, %v3258_v53 }
 0x157   :  { %3964 = vmatprep.mubr.msk.f32.mxu0 %vm64_vm0, %v3259_v54 }
 0x15a   :  { %3965 = vmatmul.mubr.msk.f32.gmra.mxu0 %vm64_vm0, %v3260_v55 }
 0x15b   :  { %3967 = vmatprep.mubr.msk.f32.mxu0 %vm64_vm0, %v3261_v56 }
 0x15e   :  { %3968 = vmatmul.mubr.msk.f32.gmra.mxu0 %vm64_vm0, %v3262_v57 }
 0x15f   :  { %3970 = vmatprep.mubr.msk.f32.mxu0 %vm64_vm0, %v3263_v58 }
 0x162   :  { %3971 = vmatmul.mubr.msk.f32.gmra.mxu0 %vm64_vm0, %v3264_v59 }
 0x163   :  { %3973 = vmatprep.mubr.msk.f32.mxu0 %vm64_vm0, %v3265_v60 }
 0x166   :  { %3974 = vmatmul.mubr.msk.f32.gmra.mxu0 %vm64_vm0, %v3266_v61 }
 0x167   :  { %3976 = vmatprep.mubr.msk.f32.mxu0 %vm64_vm0, %v3267_v63 }
 0x16a   :  { %3977 = vmatmul.mubr.msk.f32.gmra.mxu0 %vm64_vm0, %v3268_v8 }
 0x16b   :  { %3979 = vmatprep.mubr.msk.f32.mxu0 %vm64_vm0, %v3269_v9 }
 0x16e   :  { %3980 = vmatmul.mubr.msk.f32.gmra.mxu0 %vm64_vm0, %v3270_v10 }
 0x16f   :  { %3982 = vmatprep.mubr.msk.f32.mxu0 %vm64_vm0, %v3271_v11 }
 0x172   :  { %3983 = vmatmul.mubr.msk.f32.gmra.mxu0 %vm64_vm0, %v3272_v12 }
 0x173   :  { %3985 = vmatprep.mubr.msk.f32.mxu0 %vm64_vm0, %v3273_v13 }
 0x176   :  { %3986 = vmatmul.mubr.msk.f32.gmra.mxu0 %vm64_vm0, %v3274_v14 }
 0x177   :  { %3988 = vmatprep.mubr.msk.f32.mxu0 %vm64_vm0, %v3275_v15 }
 0x17a   :  { %3989 = vmatmul.mubr.msk.f32.gmra.mxu0 %vm64_vm0, %v3276_v17 }
 0x17b   :  { %3991 = vmatprep.mubr.msk.f32.mxu0 %vm64_vm0, %v3277_v18 }
 0x17e   :  { %3992 = vmatmul.mubr.msk.f32.gmra.mxu0 %vm64_vm0, %v3278_v20 }
 0x17f   :  { %3994 = vmatprep.mubr.msk.f32.mxu0 %vm64_vm0, %v3279_v21 }
 0x182   :  { %3995 = vmatmul.mubr.msk.f32.gmra.mxu0 %vm64_vm0, %v3280_v22 }
 0x19d   :  { %v3741_v16 = vpop.f32.mrf.mxu0 }
 0x19e   :  { %v3791_v23 = vpop.f32.mrf.mxu1 }
 0x19f   :  { %v4861_v24 = vadd.f32 %v3791_v23, %v3741_v16  ;;  %v1012_v19 = vpop.f32.mrf.mxu0 }
 0x1a0   :  { %v1301_v25 = vpop.f32.mrf.mxu1 }
 0x1a1   :  { %v4863_v26 = vadd.f32 %v1301_v25, %v1012_v19  ;;  %v3744_v27 = vpop.f32.mrf.mxu0 }
 0x1a2   :  { %v3794_v28 = vpop.f32.mrf.mxu1 }
 0x1a3   :  { %v4865_v0 = vadd.f32 %v3794_v28, %v3744_v27  ;;  %v1022_v29 = vpop.f32.mrf.mxu0 }
 0x1a4   :  { %v1311_v1 = vpop.f32.mrf.mxu1 }
 0x1a5   :  { %v4867_v2 = vadd.f32 %v1311_v1, %v1022_v29 }
 0x1a6   :  { %v3747_v3 = vpop.f32.mrf.mxu0  ;;  %v3797_v4 = vpop.f32.mrf.mxu1 }
 0x1a7   :  { %v4869_v5 = vadd.f32 %v3797_v4, %v3747_v3 }
 0x1a8   :  { %v1032_v6 = vpop.f32.mrf.mxu0  ;;  %v1321_v30 = vpop.f32.mrf.mxu1 }
 0x1a9   :  { %v4871_v7 = vadd.f32 %v1321_v30, %v1032_v6 }
 0x1aa   :  { %v3750_v31 = vpop.f32.mrf.mxu0  ;;  %v3800_v32 = vpop.f32.mrf.mxu1 }
 0x1ab   :  { %v4873_v33 = vadd.f32 %v3800_v32, %v3750_v31 }
 0x1ac   :  { %v1042_v34 = vpop.f32.mrf.mxu0  ;;  %v1331_v35 = vpop.f32.mrf.mxu1 }
 0x1ad   :  { %v4875_v36 = vadd.f32 %v1331_v35, %v1042_v34 }
 0x1ae   :  { %v3753_v37 = vpop.f32.mrf.mxu0  ;;  %v3803_v38 = vpop.f32.mrf.mxu1 }
 0x1af   :  { %v4877_v39 = vadd.f32 %v3803_v38, %v3753_v37 }
 0x1b0   :  { %v1052_v40 = vpop.f32.mrf.mxu0  ;;  %v1341_v41 = vpop.f32.mrf.mxu1 }
 0x1b1   :  { %v4879_v42 = vadd.f32 %v1341_v41, %v1052_v40 }
 0x1b2   :  { %v3756_v43 = vpop.f32.mrf.mxu0  ;;  %v3806_v44 = vpop.f32.mrf.mxu1 }
 0x1b3   :  { %v4881_v45 = vadd.f32 %v3806_v44, %v3756_v43  ;;  %v4920_v43 = vld [vmem:[%s5376_s2] ss:$0 sm:$0xff] }
 0x1b4   :  { %v1062_v46 = vpop.f32.mrf.mxu0  ;;  %v1351_v47 = vpop.f32.mrf.mxu1 }
 0x1b5   :  { %v4883_v48 = vadd.f32 %v1351_v47, %v1062_v46 }
 0x1b6   :  { %v3759_v49 = vpop.f32.mrf.mxu0  ;;  %v3809_v50 = vpop.f32.mrf.mxu1 }
 0x1b7   :  { %v4885_v51 = vadd.f32 %v3809_v50, %v3759_v49  ;;  %v4927_v49 = vld [vmem:[%s5377_s3] ss:$0 sm:$0xff] }
 0x1b8   :  { %v1072_v52 = vpop.f32.mrf.mxu0  ;;  %v1361_v53 = vpop.f32.mrf.mxu1 }
 0x1b9   :  { %v4887_v54 = vadd.f32 %v1361_v53, %v1072_v52 }
 0x1ba   :  { %v3762_v55 = vpop.f32.mrf.mxu0  ;;  %v3812_v56 = vpop.f32.mrf.mxu1 }
 0x1bb   :  { %v4889_v57 = vadd.f32 %v3812_v56, %v3762_v55 }
 0x1bc   :  { %v1082_v58 = vpop.f32.mrf.mxu0  ;;  %v1371_v59 = vpop.f32.mrf.mxu1 }
 0x1bd   :  { %v4891_v60 = vadd.f32 %v1371_v59, %v1082_v58 }
 0x1be   :  { %v3765_v61 = vpop.f32.mrf.mxu0  ;;  %v3815_v63 = vpop.f32.mrf.mxu1 }
 0x1bf   :  { %v4893_v8 = vadd.f32 %v3815_v63, %v3765_v61 }
 0x1c0   :  { %v1092_v9 = vpop.f32.mrf.mxu0  ;;  %v1381_v10 = vpop.f32.mrf.mxu1 }
 0x1c1   :  { %v4895_v11 = vadd.f32 %v1381_v10, %v1092_v9 }
 0x1c2   :  { %v3768_v12 = vpop.f32.mrf.mxu0  ;;  %v3818_v13 = vpop.f32.mrf.mxu1 }
 0x1c3   :  { %v4897_v14 = vadd.f32 %v3818_v13, %v3768_v12  ;;  %v3311_v13 = vld [vmem:[%s5375_s4 + $0x70] sm:$0xff] }
 0x1c4   :  { %v1102_v15 = vpop.f32.mrf.mxu0  ;;  %v1391_v17 = vpop.f32.mrf.mxu1 }
 0x1c5   :  { %v4899_v18 = vadd.f32 %v1391_v17, %v1102_v15 }
 0x1c6   :  { %v3771_v20 = vpop.f32.mrf.mxu0  ;;  %v3821_v21 = vpop.f32.mrf.mxu1 }
 0x1c7   :  { %v4901_v22 = vadd.f32 %v3821_v21, %v3771_v20  ;;  %v3310_v21 = vld [vmem:[%s5375_s4 + $0x68] sm:$0xff] }
 0x1c8   :  { %v1112_v16 = vpop.f32.mrf.mxu0  ;;  %v1401_v23 = vpop.f32.mrf.mxu1 }
 0x1c9   :  { %v4903_v19 = vadd.f32 %v1401_v23, %v1112_v16 }
 0x1ca   :  { %v3774_v25 = vpop.f32.mrf.mxu0  ;;  %v3824_v27 = vpop.f32.mrf.mxu1 }
 0x1cb   :  { %v4905_v28 = vadd.f32 %v3824_v27, %v3774_v25 }
 0x1cc   :  { %v1122_v29 = vpop.f32.mrf.mxu0  ;;  %v1411_v1 = vpop.f32.mrf.mxu1 }
 0x1cd   :  { %v4907_v3 = vadd.f32 %v1411_v1, %v1122_v29 }
 0x1ce   :  { %v3777_v4 = vpop.f32.mrf.mxu0  ;;  %v3827_v6 = vpop.f32.mrf.mxu1 }
 0x1cf   :  { %v4909_v30 = vadd.f32 %v3827_v6, %v3777_v4 }
 0x1d0   :  { %v1132_v31 = vpop.f32.mrf.mxu0  ;;  %v1421_v32 = vpop.f32.mrf.mxu1 }
 0x1d1   :  { %v4911_v34 = vadd.f32 %v1421_v32, %v1132_v31 }
 0x1d2   :  { %v3780_v35 = vpop.f32.mrf.mxu0  ;;  %v3830_v37 = vpop.f32.mrf.mxu1 }
 0x1d3   :  { %5381 = vst [vmem:[#allocation2_spill] sm:$0xff] %v4911_v34  ;;  %v4913_v38 = vadd.f32 %v3830_v37, %v3780_v35 }
 0x1d4   :  { %v4915_v40 = vpop.f32.mrf.mxu0 }
 0x1d5   :  { %5382 = vst [vmem:[#allocation3_spill] sm:$0xff] %v4913_v38  ;;  %5383 = vst [vmem:[#allocation4_spill] sm:$0xff] %v4915_v40 }
 0x1d6   :  { %v3849_v41 = vpop.f32.mrf.mxu0 }
 0x1d7   :  { %v1759_v44 = vmul.f32 %v4920_v43, %v3849_v41 }
 0x1d8   :  { %v1619_v46 = vpop.f32.mrf.mxu0 }
 0x1d9   :  { %v1758_v47 = vmul.f32 %v4920_v43, %v1619_v46  ;;  %v1787_v50 = vadd.f32 %v4927_v49, %v1759_v44 }
 0x1da   :  { %v3852_v52 = vpop.f32.mrf.mxu0 }
 0x1db   :  { %v1786_v53 = vadd.f32 %v4927_v49, %v1758_v47  ;;  %v1761_v55 = vmul.f32 %v4920_v43, %v3852_v52  ;;  %v1815_v61 = vmax.f32 %v1787_v50, 0.0 }
 0x1dc   :  { %v1629_v56 = vpop.f32.mrf.mxu0 }
 0x1dd   :  { %v1814_v58 = vmax.f32 %v1786_v53, 0.0  ;;  %v1760_v59 = vmul.f32 %v4920_v43, %v1629_v56  ;;  %v1789_v63 = vadd.f32 %v4927_v49, %v1761_v55 }
 0x1de   :  { %v3855_v9 = vpop.f32.mrf.mxu0 }
 0x1df   :  { %v1788_v10 = vadd.f32 %v4927_v49, %v1760_v59  ;;  %v1763_v12 = vmul.f32 %v4920_v43, %v3855_v9  ;;  %3897 = vmatprep.mubr.msk.f32.mxu1 %vm861_vm1, %v1814_v58  ;;  %v1817_v16 = vmax.f32 %v1789_v63, 0.0 }
 0x1e0   :  { %v1639_v15 = vpop.f32.mrf.mxu0  ;;  %3898 = vmatmul.mubr.msk.f32.vlgmr.msra.gmra.mxu1 %vm861_vm1, %v1815_v61 }
 0x1e1   :  { %v1816_v17 = vmax.f32 %v1788_v10, 0.0  ;;  %v1762_v20 = vmul.f32 %v4920_v43, %v1639_v15  ;;  %3998 = vmatpush3.msra.mxu1 %v4801_v62  ;;  %v1791_v23 = vadd.f32 %v4927_v49, %v1763_v12  ;;  %v3309_v62 = vld [vmem:[%s5375_s4 + $0x60] sm:$0xff] }
 0x1e2   :  { %v3858_v25 = vpop.f32.mrf.mxu0  ;;  %3999 = vmatprep.subr.mxu1 %v3311_v13 }
 0x1e3   :  { %v1790_v27 = vadd.f32 %v4927_v49, %v1762_v20  ;;  %v1765_v29 = vmul.f32 %v4920_v43, %v3858_v25  ;;  %3900 = vmatprep.mubr.msk.f32.mxu1 %vm861_vm1, %v1816_v17  ;;  %4000 = vmatpush3.msra.mxu1 %v3311_v13  ;;  %v1819_v31 = vmax.f32 %v1791_v23, 0.0 }
 0x1e4   :  { %v1649_v1 = vpop.f32.mrf.mxu0  ;;  %3901 = vmatmul.mubr.msk.f32.gmra.mxu1 %vm861_vm1, %v1817_v16  ;;  %4001 = vmatprep.subr.mxu1 %v3310_v21 }
 0x1e5   :  { %v1818_v4 = vmax.f32 %v1790_v27, 0.0  ;;  %v1764_v6 = vmul.f32 %v4920_v43, %v1649_v1  ;;  %4002 = vmatpush3.msra.mxu1 %v3310_v21  ;;  %v1793_v32 = vadd.f32 %v4927_v49, %v1765_v29 }
 0x1e6   :  { %v3861_v35 = vpop.f32.mrf.mxu0  ;;  %4003 = vmatprep.subr.mxu1 %v3309_v62 }
 0x1e7   :  { %v1792_v37 = vadd.f32 %v4927_v49, %v1764_v6  ;;  %v1767_v41 = vmul.f32 %v4920_v43, %v3861_v35  ;;  %3903 = vmatprep.mubr.msk.f32.mxu1 %vm861_vm1, %v1818_v4  ;;  %4004 = vmatpush3.msra.mxu1 %v3309_v62  ;;  %v1821_v50 = vmax.f32 %v1793_v32, 0.0 }
 0x1e8   :  { %v1659_v44 = vpop.f32.mrf.mxu0  ;;  %3904 = vmatmul.mubr.msk.f32.gmra.mxu1 %vm861_vm1, %v1819_v31 }
 0x1e9   :  { %v1820_v46 = vmax.f32 %v1792_v37, 0.0  ;;  %v1766_v47 = vmul.f32 %v4920_v43, %v1659_v44  ;;  %v1795_v52 = vadd.f32 %v4927_v49, %v1767_v41 }
 0x1ea   :  { %v3864_v53 = vpop.f32.mrf.mxu0 }
 0x1eb   :  { %v1794_v55 = vadd.f32 %v4927_v49, %v1766_v47  ;;  %v1769_v56 = vmul.f32 %v4920_v43, %v3864_v53  ;;  %3906 = vmatprep.mubr.msk.f32.mxu1 %vm861_vm1, %v1820_v46  ;;  %v1823_v63 = vmax.f32 %v1795_v52, 0.0 }
 0x1ec   :  { %v1669_v58 = vpop.f32.mrf.mxu0  ;;  %3907 = vmatmul.mubr.msk.f32.gmra.mxu1 %vm861_vm1, %v1821_v50 }
 0x1ed   :  { %v1822_v59 = vmax.f32 %v1794_v55, 0.0  ;;  %v1768_v61 = vmul.f32 %v4920_v43, %v1669_v58  ;;  %v1797_v9 = vadd.f32 %v4927_v49, %v1769_v56 }
 0x1ee   :  { %v3867_v10 = vpop.f32.mrf.mxu0 }
 0x1ef   :  { %v1796_v12 = vadd.f32 %v4927_v49, %v1768_v61  ;;  %v1771_v13 = vmul.f32 %v4920_v43, %v3867_v10  ;;  %3909 = vmatprep.mubr.msk.f32.mxu1 %vm861_vm1, %v1822_v59  ;;  %v1825_v21 = vmax.f32 %v1797_v9, 0.0 }
 0x1f0   :  { %v1679_v15 = vpop.f32.mrf.mxu0  ;;  %3910 = vmatmul.mubr.msk.f32.gmra.mxu1 %vm861_vm1, %v1823_v63 }
 0x1f1   :  { %v1824_v17 = vmax.f32 %v1796_v12, 0.0  ;;  %v1770_v20 = vmul.f32 %v4920_v43, %v1679_v15  ;;  %v1799_v16 = vadd.f32 %v4927_v49, %v1771_v13 }
 0x1f2   :  { %v3870_v23 = vpop.f32.mrf.mxu0 }
 0x1f3   :  { %v1798_v25 = vadd.f32 %v4927_v49, %v1770_v20  ;;  %v1773_v27 = vmul.f32 %v4920_v43, %v3870_v23  ;;  %3912 = vmatprep.mubr.msk.f32.mxu1 %vm861_vm1, %v1824_v17  ;;  %v1827_v4 = vmax.f32 %v1799_v16, 0.0 }
 0x1f4   :  { %v1689_v29 = vpop.f32.mrf.mxu0  ;;  %3913 = vmatmul.mubr.msk.f32.gmra.mxu1 %vm861_vm1, %v1825_v21 }
 0x1f5   :  { %v1826_v62 = vmax.f32 %v1798_v25, 0.0  ;;  %v1772_v1 = vmul.f32 %v4920_v43, %v1689_v29  ;;  %v1801_v6 = vadd.f32 %v4927_v49, %v1773_v27 }
 0x1f6   :  { %v3873_v31 = vpop.f32.mrf.mxu0 }
 0x1f7   :  { %v1800_v32 = vadd.f32 %v4927_v49, %v1772_v1  ;;  %v1775_v35 = vmul.f32 %v4920_v43, %v3873_v31  ;;  %3915 = vmatprep.mubr.msk.f32.mxu1 %vm861_vm1, %v1826_v62  ;;  %v1829_v46 = vmax.f32 %v1801_v6, 0.0 }
 0x1f8   :  { %v1699_v37 = vpop.f32.mrf.mxu0  ;;  %3916 = vmatmul.mubr.msk.f32.gmra.mxu1 %vm861_vm1, %v1827_v4 }
 0x1f9   :  { %v1828_v41 = vmax.f32 %v1800_v32, 0.0  ;;  %v1774_v44 = vmul.f32 %v4920_v43, %v1699_v37  ;;  %v1803_v47 = vadd.f32 %v4927_v49, %v1775_v35 }
 0x1fa   :  { %v3876_v50 = vpop.f32.mrf.mxu0 }
 0x1fb   :  { %v1802_v52 = vadd.f32 %v4927_v49, %v1774_v44  ;;  %v1777_v53 = vmul.f32 %v4920_v43, %v3876_v50  ;;  %3918 = vmatprep.mubr.msk.f32.mxu1 %vm861_vm1, %v1828_v41  ;;  %v1831_v59 = vmax.f32 %v1803_v47, 0.0 }
 0x1fc   :  { %v1709_v55 = vpop.f32.mrf.mxu0  ;;  %3919 = vmatmul.mubr.msk.f32.gmra.mxu1 %vm861_vm1, %v1829_v46 }
 0x1fd   :  { %v1830_v56 = vmax.f32 %v1802_v52, 0.0  ;;  %v1776_v58 = vmul.f32 %v4920_v43, %v1709_v55  ;;  %v1805_v61 = vadd.f32 %v4927_v49, %v1777_v53 }
 0x1fe   :  { %v3879_v63 = vpop.f32.mrf.mxu0 }
 0x1ff   :  { %v1804_v9 = vadd.f32 %v4927_v49, %v1776_v58  ;;  %v1779_v10 = vmul.f32 %v4920_v43, %v3879_v63  ;;  %3921 = vmatprep.mubr.msk.f32.mxu1 %vm861_vm1, %v1830_v56  ;;  %v1833_v17 = vmax.f32 %v1805_v61, 0.0 }
 0x200   :  { %v1719_v12 = vpop.f32.mrf.mxu0  ;;  %3922 = vmatmul.mubr.msk.f32.gmra.mxu1 %vm861_vm1, %v1831_v59 }
 0x201   :  { %v1832_v13 = vmax.f32 %v1804_v9, 0.0  ;;  %v1778_v15 = vmul.f32 %v4920_v43, %v1719_v12  ;;  %v1807_v20 = vadd.f32 %v4927_v49, %v1779_v10 }
 0x202   :  { %v3882_v21 = vpop.f32.mrf.mxu0 }
 0x203   :  { %v1806_v16 = vadd.f32 %v4927_v49, %v1778_v15  ;;  %v1781_v23 = vmul.f32 %v4920_v43, %v3882_v21  ;;  %3924 = vmatprep.mubr.msk.f32.mxu1 %vm861_vm1, %v1832_v13  ;;  %v1835_v62 = vmax.f32 %v1807_v20, 0.0 }
 0x204   :  { %v1729_v25 = vpop.f32.mrf.mxu0  ;;  %3925 = vmatmul.mubr.msk.f32.gmra.mxu1 %vm861_vm1, %v1833_v17 }
 0x205   :  { %v1834_v27 = vmax.f32 %v1806_v16, 0.0  ;;  %v1780_v29 = vmul.f32 %v4920_v43, %v1729_v25  ;;  %v1809_v1 = vadd.f32 %v4927_v49, %v1781_v23 }
 0x206   :  { %v3885_v4 = vpop.f32.mrf.mxu0 }
 0x207   :  { %v1808_v6 = vadd.f32 %v4927_v49, %v1780_v29  ;;  %v1783_v31 = vmul.f32 %v4920_v43, %v3885_v4  ;;  %3927 = vmatprep.mubr.msk.f32.mxu1 %vm861_vm1, %v1834_v27  ;;  %v1837_v41 = vmax.f32 %v1809_v1, 0.0 }
 0x208   :  { %v1739_v32 = vpop.f32.mrf.mxu0  ;;  %3928 = vmatmul.mubr.msk.f32.gmra.mxu1 %vm861_vm1, %v1835_v62 }
 0x209   :  { %v1836_v35 = vmax.f32 %v1808_v6, 0.0  ;;  %v1782_v37 = vmul.f32 %v4920_v43, %v1739_v32  ;;  %v1811_v44 = vadd.f32 %v4927_v49, %v1783_v31 }
 0x20a   :  { %v3888_v46 = vpop.f32.mrf.mxu0 }
 0x20b   :  { %v1810_v47 = vadd.f32 %v4927_v49, %v1782_v37  ;;  %v1785_v50 = vmul.f32 %v4920_v43, %v3888_v46  ;;  %3930 = vmatprep.mubr.msk.f32.mxu1 %vm861_vm1, %v1836_v35  ;;  %v1839_v56 = vmax.f32 %v1811_v44, 0.0 }
 0x20c   :  { %v1749_v52 = vpop.f32.mrf.mxu0  ;;  %3931 = vmatmul.mubr.msk.f32.gmra.mxu1 %vm861_vm1, %v1837_v41 }
 0x20d   :  { %v1838_v53 = vmax.f32 %v1810_v47, 0.0  ;;  %v1784_v55 = vmul.f32 %v4920_v43, %v1749_v52  ;;  %v1813_v58 = vadd.f32 %v4927_v49, %v1785_v50 }
 0x20e   :  { %v3957_v59 = vpop.f32.mrf.mxu0 }
 0x20f   :  { %v1812_v61 = vadd.f32 %v4927_v49, %v1784_v55  ;;  %v2483_v63 = vmul.f32 %v4920_v43, %v3957_v59  ;;  %3933 = vmatprep.mubr.msk.f32.mxu1 %vm861_vm1, %v1838_v53  ;;  %v1841_v13 = vmax.f32 %v1813_v58, 0.0 }
 0x210   :  { %3934 = vmatmul.mubr.msk.f32.gmra.mxu1 %vm861_vm1, %v1839_v56  ;;  %v2343_v9 = vpop.f32.mrf.mxu0 }
 0x211   :  { %v1840_v10 = vmax.f32 %v1812_v61, 0.0  ;;  %v2482_v12 = vmul.f32 %v4920_v43, %v2343_v9  ;;  %v2511_v15 = vadd.f32 %v4927_v49, %v2483_v63 }
 0x212   :  { %v3960_v17 = vpop.f32.mrf.mxu0 }
 0x213   :  { %v2510_v20 = vadd.f32 %v4927_v49, %v2482_v12  ;;  %v2485_v21 = vmul.f32 %v4920_v43, %v3960_v17  ;;  %3936 = vmatprep.mubr.msk.f32.mxu1 %vm861_vm1, %v1840_v10  ;;  %v2539_v27 = vmax.f32 %v2511_v15, 0.0 }
 0x214   :  { %3937 = vmatmul.mubr.msk.f32.gmra.mxu1 %vm861_vm1, %v1841_v13  ;;  %v2353_v16 = vpop.f32.mrf.mxu0 }
 0x215   :  { %v2538_v23 = vmax.f32 %v2510_v20, 0.0  ;;  %v2484_v25 = vmul.f32 %v4920_v43, %v2353_v16  ;;  %v2513_v29 = vadd.f32 %v4927_v49, %v2485_v21 }
 0x216   :  { %v3963_v62 = vpop.f32.mrf.mxu0 }
 0x217   :  { %v2512_v1 = vadd.f32 %v4927_v49, %v2484_v25  ;;  %v2487_v4 = vmul.f32 %v4920_v43, %v3963_v62  ;;  %4005 = vmatprep.mubr.msk.f32.mxu1 %vm861_vm1, %v2538_v23  ;;  %v2541_v35 = vmax.f32 %v2513_v29, 0.0 }
 0x218   :  { %v2363_v6 = vpop.f32.mrf.mxu0  ;;  %4006 = vmatmul.mubr.msk.f32.vlgmr.msra.gmra.mxu1 %vm861_vm1, %v2539_v27 }
 0x219   :  { %v2540_v31 = vmax.f32 %v2512_v1, 0.0  ;;  %v2486_v32 = vmul.f32 %v4920_v43, %v2363_v6  ;;  %v2515_v37 = vadd.f32 %v4927_v49, %v2487_v4 }
 0x21a   :  { %v3966_v41 = vpop.f32.mrf.mxu0 }
 0x21b   :  { %v2514_v44 = vadd.f32 %v4927_v49, %v2486_v32  ;;  %v2489_v46 = vmul.f32 %v4920_v43, %v3966_v41  ;;  %4008 = vmatprep.mubr.msk.f32.mxu1 %vm861_vm1, %v2540_v31  ;;  %v2543_v53 = vmax.f32 %v2515_v37, 0.0 }
 0x21c   :  { %v2373_v47 = vpop.f32.mrf.mxu0  ;;  %4009 = vmatmul.mubr.msk.f32.gmra.mxu1 %vm861_vm1, %v2541_v35 }
 0x21d   :  { %v2542_v50 = vmax.f32 %v2514_v44, 0.0  ;;  %v2488_v52 = vmul.f32 %v4920_v43, %v2373_v47  ;;  %v2517_v55 = vadd.f32 %v4927_v49, %v2489_v46 }
 0x21e   :  { %v3969_v56 = vpop.f32.mrf.mxu0 }
 0x21f   :  { %v2516_v58 = vadd.f32 %v4927_v49, %v2488_v52  ;;  %v2491_v59 = vmul.f32 %v4920_v43, %v3969_v56  ;;  %4011 = vmatprep.mubr.msk.f32.mxu1 %vm861_vm1, %v2542_v50  ;;  %v2545_v10 = vmax.f32 %v2517_v55, 0.0 }
 0x220   :  { %v2383_v61 = vpop.f32.mrf.mxu0  ;;  %4012 = vmatmul.mubr.msk.f32.gmra.mxu1 %vm861_vm1, %v2543_v53 }
 0x221   :  { %v2544_v63 = vmax.f32 %v2516_v58, 0.0  ;;  %v2490_v9 = vmul.f32 %v4920_v43, %v2383_v61  ;;  %v2519_v12 = vadd.f32 %v4927_v49, %v2491_v59 }
 0x222   :  { %v3972_v13 = vpop.f32.mrf.mxu0 }
 0x223   :  { %v2518_v15 = vadd.f32 %v4927_v49, %v2490_v9  ;;  %v2493_v17 = vmul.f32 %v4920_v43, %v3972_v13  ;;  %4014 = vmatprep.mubr.msk.f32.mxu1 %vm861_vm1, %v2544_v63  ;;  %v2547_v23 = vmax.f32 %v2519_v12, 0.0 }
 0x224   :  { %v2393_v20 = vpop.f32.mrf.mxu0  ;;  %4015 = vmatmul.mubr.msk.f32.gmra.mxu1 %vm861_vm1, %v2545_v10 }
 0x225   :  { %v2546_v21 = vmax.f32 %v2518_v15, 0.0  ;;  %v2492_v16 = vmul.f32 %v4920_v43, %v2393_v20  ;;  %v2521_v25 = vadd.f32 %v4927_v49, %v2493_v17 }
 0x226   :  { %v3975_v27 = vpop.f32.mrf.mxu0 }
 0x227   :  { %v2520_v29 = vadd.f32 %v4927_v49, %v2492_v16  ;;  %v2495_v62 = vmul.f32 %v4920_v43, %v3975_v27  ;;  %4017 = vmatprep.mubr.msk.f32.mxu1 %vm861_vm1, %v2546_v21  ;;  %v2549_v31 = vmax.f32 %v2521_v25, 0.0 }
 0x228   :  { %v2403_v1 = vpop.f32.mrf.mxu0  ;;  %4018 = vmatmul.mubr.msk.f32.gmra.mxu1 %vm861_vm1, %v2547_v23 }
 0x229   :  { %v2548_v4 = vmax.f32 %v2520_v29, 0.0  ;;  %v2494_v6 = vmul.f32 %v4920_v43, %v2403_v1  ;;  %v2523_v32 = vadd.f32 %v4927_v49, %v2495_v62 }
 0x22a   :  { %v3978_v35 = vpop.f32.mrf.mxu0 }
 0x22b   :  { %v2522_v37 = vadd.f32 %v4927_v49, %v2494_v6  ;;  %v2497_v41 = vmul.f32 %v4920_v43, %v3978_v35  ;;  %4020 = vmatprep.mubr.msk.f32.mxu1 %vm861_vm1, %v2548_v4  ;;  %v2551_v50 = vmax.f32 %v2523_v32, 0.0 }
 0x22c   :  { %v2413_v44 = vpop.f32.mrf.mxu0  ;;  %4021 = vmatmul.mubr.msk.f32.gmra.mxu1 %vm861_vm1, %v2549_v31 }
 0x22d   :  { %v2550_v46 = vmax.f32 %v2522_v37, 0.0  ;;  %v2496_v47 = vmul.f32 %v4920_v43, %v2413_v44  ;;  %v2525_v52 = vadd.f32 %v4927_v49, %v2497_v41 }
 0x22e   :  { %v3981_v53 = vpop.f32.mrf.mxu0 }
 0x22f   :  { %v2524_v55 = vadd.f32 %v4927_v49, %v2496_v47  ;;  %v2499_v56 = vmul.f32 %v4920_v43, %v3981_v53  ;;  %4023 = vmatprep.mubr.msk.f32.mxu1 %vm861_vm1, %v2550_v46  ;;  %v2553_v63 = vmax.f32 %v2525_v52, 0.0 }
 0x230   :  { %v2423_v58 = vpop.f32.mrf.mxu0  ;;  %4024 = vmatmul.mubr.msk.f32.gmra.mxu1 %vm861_vm1, %v2551_v50 }
 0x231   :  { %v2552_v59 = vmax.f32 %v2524_v55, 0.0  ;;  %v2498_v61 = vmul.f32 %v4920_v43, %v2423_v58  ;;  %v2527_v9 = vadd.f32 %v4927_v49, %v2499_v56 }
 0x232   :  { %v3984_v10 = vpop.f32.mrf.mxu0 }
 0x233   :  { %v2526_v12 = vadd.f32 %v4927_v49, %v2498_v61  ;;  %v2501_v13 = vmul.f32 %v4920_v43, %v3984_v10  ;;  %4026 = vmatprep.mubr.msk.f32.mxu1 %vm861_vm1, %v2552_v59  ;;  %v2555_v21 = vmax.f32 %v2527_v9, 0.0 }
 0x234   :  { %v2433_v15 = vpop.f32.mrf.mxu0  ;;  %4027 = vmatmul.mubr.msk.f32.gmra.mxu1 %vm861_vm1, %v2553_v63 }
 0x235   :  { %v2554_v17 = vmax.f32 %v2526_v12, 0.0  ;;  %v2500_v20 = vmul.f32 %v4920_v43, %v2433_v15  ;;  %v2529_v16 = vadd.f32 %v4927_v49, %v2501_v13 }
 0x236   :  { %v3987_v23 = vpop.f32.mrf.mxu0 }
 0x237   :  { %v2528_v25 = vadd.f32 %v4927_v49, %v2500_v20  ;;  %v2503_v27 = vmul.f32 %v4920_v43, %v3987_v23  ;;  %4029 = vmatprep.mubr.msk.f32.mxu1 %vm861_vm1, %v2554_v17  ;;  %v2557_v4 = vmax.f32 %v2529_v16, 0.0 }
 0x238   :  { %v2443_v29 = vpop.f32.mrf.mxu0  ;;  %4030 = vmatmul.mubr.msk.f32.gmra.mxu1 %vm861_vm1, %v2555_v21 }
 0x239   :  { %v2556_v62 = vmax.f32 %v2528_v25, 0.0  ;;  %v2502_v1 = vmul.f32 %v4920_v43, %v2443_v29  ;;  %v2531_v6 = vadd.f32 %v4927_v49, %v2503_v27  ;;  %v5105_v25 = vpop.f32.mrf.mxu1 }
 0x23a   :  { %v3990_v31 = vpop.f32.mrf.mxu0  ;;  %5384 = vst [vmem:[#allocation5_spill] sm:$0xff] %v5105_v25 }
 0x23b   :  { %v2530_v32 = vadd.f32 %v4927_v49, %v2502_v1  ;;  %v2505_v35 = vmul.f32 %v4920_v43, %v3990_v31  ;;  %4032 = vmatprep.mubr.msk.f32.mxu1 %vm861_vm1, %v2556_v62  ;;  %v2559_v46 = vmax.f32 %v2531_v6, 0.0 }
 0x23c   :  { %v2453_v37 = vpop.f32.mrf.mxu0  ;;  %4033 = vmatmul.mubr.msk.f32.gmra.mxu1 %vm861_vm1, %v2557_v4 }
 0x23d   :  { %v2558_v41 = vmax.f32 %v2530_v32, 0.0  ;;  %v2504_v44 = vmul.f32 %v4920_v43, %v2453_v37  ;;  %v2533_v47 = vadd.f32 %v4927_v49, %v2505_v35 }
 0x23e   :  { %v3993_v50 = vpop.f32.mrf.mxu0 }
 0x23f   :  { %v2532_v52 = vadd.f32 %v4927_v49, %v2504_v44  ;;  %v2507_v53 = vmul.f32 %v4920_v43, %v3993_v50  ;;  %4035 = vmatprep.mubr.msk.f32.mxu1 %vm861_vm1, %v2558_v41  ;;  %v2561_v59 = vmax.f32 %v2533_v47, 0.0 }
 0x240   :  { %v2463_v55 = vpop.f32.mrf.mxu0  ;;  %4036 = vmatmul.mubr.msk.f32.gmra.mxu1 %vm861_vm1, %v2559_v46 }
 0x241   :  { %v2560_v56 = vmax.f32 %v2532_v52, 0.0  ;;  %v2506_v58 = vmul.f32 %v4920_v43, %v2463_v55  ;;  %v2535_v61 = vadd.f32 %v4927_v49, %v2507_v53 }
 0x242   :  { %v3996_v63 = vpop.f32.mrf.mxu0 }
 0x243   :  { %v2534_v9 = vadd.f32 %v4927_v49, %v2506_v58  ;;  %v2509_v10 = vmul.f32 %v4920_v43, %v3996_v63  ;;  %4038 = vmatprep.mubr.msk.f32.mxu1 %vm861_vm1, %v2560_v56  ;;  %v2563_v17 = vmax.f32 %v2535_v61, 0.0 }
 0x244   :  { %v2473_v12 = vpop.f32.mrf.mxu0  ;;  %4039 = vmatmul.mubr.msk.f32.gmra.mxu1 %vm861_vm1, %v2561_v59 }
 0x245   :  { %v2562_v13 = vmax.f32 %v2534_v9, 0.0  ;;  %v2508_v15 = vmul.f32 %v4920_v43, %v2473_v12  ;;  %v2537_v20 = vadd.f32 %v4927_v49, %v2509_v10 }
 0x247   :  { %v2536_v21 = vadd.f32 %v4927_v49, %v2508_v15  ;;  %4041 = vmatprep.mubr.msk.f32.mxu1 %vm861_vm1, %v2562_v13  ;;  %v2565_v23 = vmax.f32 %v2537_v20, 0.0 }
 0x248   :  { %4042 = vmatmul.mubr.msk.f32.gmra.mxu1 %vm861_vm1, %v2563_v17  ;;  %v5151_v17 = vld [vmem:[%s5378_s5] ss:$0 sm:$0xff] }
 0x249   :  { %v2564_v16 = vmax.f32 %v2536_v21, 0.0 }
 0x24b   :  { %4044 = vmatprep.mubr.msk.f32.mxu1 %vm861_vm1, %v2564_v16  ;;  %v5157_v16 = vld [vmem:[%s5379_s6] ss:$0 sm:$0xff] }
 0x24c   :  { %4045 = vmatmul.mubr.msk.f32.gmra.mxu1 %vm861_vm1, %v2565_v23 }
 0x2a0   :  { %v3899_v27 = vpop.f32.mrf.mxu1 }
 0x2a1   :  { %v2137_v13 = vadd.f32 %v3899_v27, %v4861_v24 }
 0x2a2   :  { %v1997_v29 = vpop.f32.mrf.mxu1 }
 0x2a3   :  { %v2136_v20 = vadd.f32 %v1997_v29, %v4863_v26 }
 0x2a4   :  { %v3902_v43 = vpop.f32.mrf.mxu1 }
 0x2a6   :  { %v2007_v62 = vpop.f32.mrf.mxu1 }
 0x2a7   :  { %v2138_v38 = vadd.f32 %v2007_v62, %v4867_v2 }
 0x2a8   :  { %v3905_v1 = vpop.f32.mrf.mxu1 }
 0x2a9   :  { %v2141_v29 = vadd.f32 %v3905_v1, %v4869_v5 }
 0x2aa   :  { %v2017_v4 = vpop.f32.mrf.mxu1 }
 0x2ac   :  { %v3908_v6 = vpop.f32.mrf.mxu1 }
 0x2ae   :  { %v2027_v49 = vpop.f32.mrf.mxu1 }
 0x2b0   :  { %v5107_v31 = vpop.f32.mrf.mxu1 }
 0x2b2   :  { %v5109_v32 = vpop.f32.mrf.mxu1 }
 0x2b4   :  { %v5111_v35 = vpop.f32.mrf.mxu1 }
 0x2b6   :  { %v5113_v37 = vpop.f32.mrf.mxu1 }
 0x2b8   :  { %v5115_v41 = vpop.f32.mrf.mxu1 }
 0x2ba   :  { %v5117_v44 = vpop.f32.mrf.mxu1 }
 0x2bc   :  { %v5119_v46 = vpop.f32.mrf.mxu1 }
 0x2be   :  { %v5121_v47 = vpop.f32.mrf.mxu1 }
 0x2c0   :  { %v5123_v50 = vpop.f32.mrf.mxu1 }
 0x2c2   :  { %v5125_v52 = vpop.f32.mrf.mxu1 }
 0x2c4   :  { %v5127_v53 = vpop.f32.mrf.mxu1 }
 0x2c6   :  { %v5129_v55 = vpop.f32.mrf.mxu1 }
 0x2c8   :  { %v5131_v56 = vpop.f32.mrf.mxu1 }
 0x2ca   :  { %v5133_v58 = vpop.f32.mrf.mxu1 }
 0x2cc   :  { %v5135_v59 = vpop.f32.mrf.mxu1 }
 0x2ce   :  { %v5137_v61 = vpop.f32.mrf.mxu1 }
 0x2d0   :  { %v5139_v63 = vpop.f32.mrf.mxu1 }
 0x2d2   :  { %v5141_v9 = vpop.f32.mrf.mxu1 }
 0x2d3   :  { %5385 = vst [vmem:[#allocation6_spill] sm:$0xff] %v5141_v9 }
 0x2d4   :  { %v5143_v10 = vpop.f32.mrf.mxu1 }
 0x2d5   :  { %5386 = vst [vmem:[#allocation7_spill] sm:$0xff] %v5143_v10  ;;  %v2139_v10 = vadd.f32 %v3902_v43, %v4865_v0  ;;  %v2140_v43 = vadd.f32 %v2017_v4, %v4871_v7 }
 0x2d6   :  { %v5145_v12 = vpop.f32.mrf.mxu1 }
 0x2d7   :  { %5387 = vst [vmem:[#allocation8_spill] sm:$0xff] %v5145_v12 }
 0x2d8   :  { %v4007_v15 = vpop.f32.mrf.mxu1 }
 0x2d9   :  { %v2861_v21 = vadd.f32 %v4007_v15, %v2137_v13 }
 0x2da   :  { %v2721_v23 = vpop.f32.mrf.mxu1 }
 0x2db   :  { %v2896_v12 = vmul.f32 %v5151_v17, %v2861_v21  ;;  %v2860_v24 = vadd.f32 %v2721_v23, %v2136_v20  ;;  %v2145_v23 = vadd.f32 %v5107_v31, %v4877_v39 }
 0x2dc   :  { %v4010_v27 = vpop.f32.mrf.mxu1 }
 0x2dd   :  { %v2931_v25 = vadd.f32 %v5157_v16, %v2896_v12  ;;  %v2895_v40 = vmul.f32 %v5151_v17, %v2860_v24  ;;  %v2863_v26 = vadd.f32 %v4010_v27, %v2139_v10 }
 0x2de   :  { %v2731_v13 = vpop.f32.mrf.mxu1 }
 0x2df   :  { %v2959_v15 = vmax.f32 %v2931_v25, 0.0  ;;  %v2930_v9 = vadd.f32 %v5157_v16, %v2895_v40  ;;  %v2898_v34 = vmul.f32 %v5151_v17, %v2863_v26  ;;  %v2862_v0 = vadd.f32 %v2731_v13, %v2138_v38 }
 0x2e0   :  { %v4013_v20 = vpop.f32.mrf.mxu1  ;;  %v2143_v25 = vadd.f32 %v3908_v6, %v4873_v33 }
 0x2e1   :  { %2987 = vst.msk [vmem:[%s5380_s7 + $0x8] sm:$0xff] %vm861_vm1, %v2959_v15  ;;  %v2958_v2 = vmax.f32 %v2930_v9, 0.0  ;;  %v2933_v62 = vadd.f32 %v5157_v16, %v2898_v34  ;;  %v2897_v5 = vmul.f32 %v5151_v17, %v2862_v0  ;;  %v2865_v1 = vadd.f32 %v4013_v20, %v2141_v29 }
 0x2e2   :  { %v2741_v40 = vpop.f32.mrf.mxu1  ;;  %v2142_v9 = vadd.f32 %v2027_v49, %v4875_v36  ;;  %v2144_v29 = vadd.f32 %v5109_v32, %v4879_v42 }
 0x2e3   :  { %2986 = vst.msk [vmem:[%s5380_s7] sm:$0xff] %vm861_vm1, %v2958_v2  ;;  %v2961_v7 = vmax.f32 %v2933_v62, 0.0  ;;  %v2932_v38 = vadd.f32 %v5157_v16, %v2897_v5  ;;  %v2900_v4 = vmul.f32 %v5151_v17, %v2865_v1  ;;  %v2864_v10 = vadd.f32 %v2741_v40, %v2140_v43 }
 0x2e4   :  { %v4016_v34 = vpop.f32.mrf.mxu1  ;;  %v2147_v43 = vadd.f32 %v5111_v35, %v4881_v45  ;;  %v2146_v5 = vadd.f32 %v5113_v37, %v4883_v48 }
 0x2e5   :  { %2989 = vst.msk [vmem:[%s5380_s7 + $0x18] sm:$0xff] %vm861_vm1, %v2961_v7  ;;  %v2960_v33 = vmax.f32 %v2932_v38, 0.0  ;;  %v2935_v6 = vadd.f32 %v5157_v16, %v2900_v4  ;;  %v2899_v12 = vmul.f32 %v5151_v17, %v2864_v10  ;;  %v2867_v21 = vadd.f32 %v4016_v34, %v2143_v25 }
 0x2e6   :  { %v2751_v24 = vpop.f32.mrf.mxu1  ;;  %v2149_v7 = vadd.f32 %v5115_v41, %v4885_v51 }
 0x2e7   :  { %2988 = vst.msk [vmem:[%s5380_s7 + $0x10] sm:$0xff] %vm861_vm1, %v2960_v33  ;;  %v2963_v36 = vmax.f32 %v2935_v6, 0.0  ;;  %v2934_v49 = vadd.f32 %v5157_v16, %v2899_v12  ;;  %v2902_v27 = vmul.f32 %v5151_v17, %v2867_v21  ;;  %v2866_v26 = vadd.f32 %v2751_v24, %v2142_v9 }
 0x2e8   :  { %v4019_v13 = vpop.f32.mrf.mxu1  ;;  %v2148_v9 = vadd.f32 %v5117_v44, %v4887_v54  ;;  %v2151_v12 = vadd.f32 %v5119_v46, %v4889_v57 }
 0x2e9   :  { %2991 = vst.msk [vmem:[%s5380_s7 + $0x28] sm:$0xff] %vm861_vm1, %v2963_v36  ;;  %v2962_v39 = vmax.f32 %v2934_v49, 0.0  ;;  %v2937_v31 = vadd.f32 %v5157_v16, %v2902_v27  ;;  %v2901_v15 = vmul.f32 %v5151_v17, %v2866_v26  ;;  %v2869_v0 = vadd.f32 %v4019_v13, %v2145_v23 }
 0x2ea   :  { %v2761_v20 = vpop.f32.mrf.mxu1  ;;  %v2150_v36 = vadd.f32 %v5121_v47, %v4891_v60 }
 0x2eb   :  { %2990 = vst.msk [vmem:[%s5380_s7 + $0x20] sm:$0xff] %vm861_vm1, %v2962_v39  ;;  %v2965_v42 = vmax.f32 %v2937_v31, 0.0  ;;  %v2936_v32 = vadd.f32 %v5157_v16, %v2901_v15  ;;  %v2904_v2 = vmul.f32 %v5151_v17, %v2869_v0  ;;  %v2868_v62 = vadd.f32 %v2761_v20, %v2144_v29 }
 0x2ec   :  { %v4022_v1 = vpop.f32.mrf.mxu1  ;;  %v2153_v29 = vadd.f32 %v5123_v50, %v4893_v8  ;;  %v2152_v15 = vadd.f32 %v5125_v52, %v4895_v11 }
 0x2ed   :  { %2993 = vst.msk [vmem:[%s5380_s7 + $0x38] sm:$0xff] %vm861_vm1, %v2965_v42  ;;  %v2964_v45 = vmax.f32 %v2936_v32, 0.0  ;;  %v2939_v35 = vadd.f32 %v5157_v16, %v2904_v2  ;;  %v2903_v25 = vmul.f32 %v5151_v17, %v2868_v62  ;;  %v2871_v40 = vadd.f32 %v4022_v1, %v2147_v43 }
 0x2ee   :  { %v2771_v38 = vpop.f32.mrf.mxu1  ;;  %v2155_v42 = vadd.f32 %v5127_v53, %v4897_v14 }
 0x2ef   :  { %2992 = vst.msk [vmem:[%s5380_s7 + $0x30] sm:$0xff] %vm861_vm1, %v2964_v45  ;;  %v2967_v48 = vmax.f32 %v2939_v35, 0.0  ;;  %v2938_v37 = vadd.f32 %v5157_v16, %v2903_v25  ;;  %v2906_v4 = vmul.f32 %v5151_v17, %v2871_v40  ;;  %v2870_v10 = vadd.f32 %v2771_v38, %v2146_v5 }
 0x2f0   :  { %v4025_v34 = vpop.f32.mrf.mxu1  ;;  %v2154_v5 = vadd.f32 %v5129_v55, %v4899_v18  ;;  %v2157_v25 = vadd.f32 %v5131_v56, %v4901_v22 }
 0x2f1   :  { %2995 = vst.msk [vmem:[%s5380_s7 + $0x48] sm:$0xff] %vm861_vm1, %v2967_v48  ;;  %v2966_v51 = vmax.f32 %v2938_v37, 0.0  ;;  %v2941_v41 = vadd.f32 %v5157_v16, %v2906_v4  ;;  %v2905_v33 = vmul.f32 %v5151_v17, %v2870_v10  ;;  %v2873_v6 = vadd.f32 %v4025_v34, %v2149_v7 }
 0x2f2   :  { %v2781_v21 = vpop.f32.mrf.mxu1  ;;  %v2156_v48 = vadd.f32 %v5133_v58, %v4903_v19 }
 0x2f3   :  { %2994 = vst.msk [vmem:[%s5380_s7 + $0x40] sm:$0xff] %vm861_vm1, %v2966_v51  ;;  %v2969_v54 = vmax.f32 %v2941_v41, 0.0  ;;  %v2940_v44 = vadd.f32 %v5157_v16, %v2905_v33  ;;  %v2908_v23 = vmul.f32 %v5151_v17, %v2873_v6  ;;  %v2872_v24 = vadd.f32 %v2781_v21, %v2148_v9 }
 0x2f4   :  { %v4028_v49 = vpop.f32.mrf.mxu1  ;;  %v2159_v9 = vadd.f32 %v5135_v59, %v4905_v28  ;;  %v2158_v33 = vadd.f32 %v5137_v61, %v4907_v3 }
 0x2f5   :  { %2997 = vst.msk [vmem:[%s5380_s7 + $0x58] sm:$0xff] %vm861_vm1, %v2969_v54  ;;  %v2968_v57 = vmax.f32 %v2940_v44, 0.0  ;;  %v2943_v46 = vadd.f32 %v5157_v16, %v2908_v23  ;;  %v2907_v27 = vmul.f32 %v5151_v17, %v2872_v24  ;;  %v2875_v26 = vadd.f32 %v4028_v49, %v2151_v12  ;;  %v5389_v49 = vld [vmem:[#allocation6_spill] sm:$0xff] }
 0x2f6   :  { %v2791_v13 = vpop.f32.mrf.mxu1  ;;  %v2161_v54 = vadd.f32 %v5139_v63, %v4909_v30 }
 0x2f7   :  { %2996 = vst.msk [vmem:[%s5380_s7 + $0x50] sm:$0xff] %vm861_vm1, %v2968_v57  ;;  %v2971_v60 = vmax.f32 %v2943_v46, 0.0  ;;  %v2942_v47 = vadd.f32 %v5157_v16, %v2907_v27  ;;  %v2910_v39 = vmul.f32 %v5151_v17, %v2875_v26  ;;  %v2874_v31 = vadd.f32 %v2791_v13, %v2150_v36  ;;  %v5388_v36 = vld [vmem:[#allocation2_spill] sm:$0xff]  ;;  %v5391_v13 = vld [vmem:[#allocation5_spill] sm:$0xff] }
 0x2f8   :  { %v4031_v0 = vpop.f32.mrf.mxu1  ;;  %v2160_v57 = vadd.f32 %v5389_v49, %v5388_v36 }
 0x2f9   :  { %2999 = vst.msk [vmem:[%s5380_s7 + $0x68] sm:$0xff] %vm861_vm1, %v2971_v60  ;;  %v2970_v8 = vmax.f32 %v2942_v47, 0.0  ;;  %v2945_v50 = vadd.f32 %v5157_v16, %v2910_v39  ;;  %v2909_v43 = vmul.f32 %v5151_v17, %v2874_v31  ;;  %v2877_v20 = vadd.f32 %v4031_v0, %v2153_v29  ;;  %v5390_v29 = vld [vmem:[#allocation4_spill] sm:$0xff]  ;;  %v5392_v47 = vld [vmem:[#allocation3_spill] sm:$0xff] }
 0x2fa   :  { %v2801_v32 = vpop.f32.mrf.mxu1  ;;  %v1432_v60 = vadd.f32 %v5391_v13, %v5390_v29  ;;  %v5393_v39 = vld [vmem:[#allocation7_spill] sm:$0xff] }
 0x2fb   :  { %2998 = vst.msk [vmem:[%s5380_s7 + $0x60] sm:$0xff] %vm861_vm1, %v2970_v8  ;;  %v2973_v11 = vmax.f32 %v2945_v50, 0.0  ;;  %v2944_v52 = vadd.f32 %v5157_v16, %v2909_v43  ;;  %v2912_v2 = vmul.f32 %v5151_v17, %v2877_v20  ;;  %v2876_v62 = vadd.f32 %v2801_v32, %v2152_v15  ;;  %v5394_v20 = vld [vmem:[#allocation8_spill] sm:$0xff] }
 0x2fc   :  { %v4034_v1 = vpop.f32.mrf.mxu1  ;;  %v2163_v31 = vadd.f32 %v5393_v39, %v5392_v47 }
 0x2fd   :  { %3001 = vst.msk [vmem:[%s5380_s7 + $0x78] sm:$0xff] %vm861_vm1, %v2973_v11  ;;  %v2972_v14 = vmax.f32 %v2944_v52, 0.0  ;;  %v2947_v53 = vadd.f32 %v5157_v16, %v2912_v2  ;;  %v2911_v45 = vmul.f32 %v5151_v17, %v2876_v62  ;;  %v2879_v35 = vadd.f32 %v4034_v1, %v2155_v42 }
 0x2fe   :  { %v2811_v40 = vpop.f32.mrf.mxu1  ;;  %v2162_v42 = vadd.f32 %v5394_v20, %v1432_v60 }
 0x2ff   :  { %3000 = vst.msk [vmem:[%s5380_s7 + $0x70] sm:$0xff] %vm861_vm1, %v2972_v14  ;;  %v2975_v18 = vmax.f32 %v2947_v53, 0.0  ;;  %v2946_v55 = vadd.f32 %v5157_v16, %v2911_v45  ;;  %v2914_v7 = vmul.f32 %v5151_v17, %v2879_v35  ;;  %v2878_v38 = vadd.f32 %v2811_v40, %v2154_v5 }
 0x300   :  { %v4037_v37 = vpop.f32.mrf.mxu1 }
 0x301   :  { %3003 = vst.msk [vmem:[%s5380_s7 + $0x88] sm:$0xff] %vm861_vm1, %v2975_v18  ;;  %v2974_v22 = vmax.f32 %v2946_v55, 0.0  ;;  %v2949_v56 = vadd.f32 %v5157_v16, %v2914_v7  ;;  %v2913_v4 = vmul.f32 %v5151_v17, %v2878_v38  ;;  %v2881_v10 = vadd.f32 %v4037_v37, %v2157_v25 }
 0x302   :  { %v2821_v34 = vpop.f32.mrf.mxu1 }
 0x303   :  { %3002 = vst.msk [vmem:[%s5380_s7 + $0x80] sm:$0xff] %vm861_vm1, %v2974_v22  ;;  %v2977_v19 = vmax.f32 %v2949_v56, 0.0  ;;  %v2948_v58 = vadd.f32 %v5157_v16, %v2913_v4  ;;  %v2916_v51 = vmul.f32 %v5151_v17, %v2881_v10  ;;  %v2880_v41 = vadd.f32 %v2821_v34, %v2156_v48 }
 0x304   :  { %v4040_v6 = vpop.f32.mrf.mxu1 }
 0x305   :  { %3005 = vst.msk [vmem:[%s5380_s7 + $0x98] sm:$0xff] %vm861_vm1, %v2977_v19  ;;  %v2976_v28 = vmax.f32 %v2948_v58, 0.0  ;;  %v2951_v59 = vadd.f32 %v5157_v16, %v2916_v51  ;;  %v2915_v12 = vmul.f32 %v5151_v17, %v2880_v41  ;;  %v2883_v21 = vadd.f32 %v4040_v6, %v2159_v9 }
 0x306   :  { %v2831_v44 = vpop.f32.mrf.mxu1 }
 0x307   :  { %3004 = vst.msk [vmem:[%s5380_s7 + $0x90] sm:$0xff] %vm861_vm1, %v2976_v28  ;;  %v2979_v3 = vmax.f32 %v2951_v59, 0.0  ;;  %v2950_v61 = vadd.f32 %v5157_v16, %v2915_v12  ;;  %v2918_v23 = vmul.f32 %v5151_v17, %v2883_v21  ;;  %v2882_v24 = vadd.f32 %v2831_v44, %v2158_v33 }
 0x308   :  { %v4043_v46 = vpop.f32.mrf.mxu1 }
 0x309   :  { %3007 = vst.msk [vmem:[%s5380_s7 + $0xa8] sm:$0xff] %vm861_vm1, %v2979_v3  ;;  %v2978_v30 = vmax.f32 %v2950_v61, 0.0  ;;  %v2953_v63 = vadd.f32 %v5157_v16, %v2918_v23  ;;  %v2917_v27 = vmul.f32 %v5151_v17, %v2882_v24  ;;  %v2885_v26 = vadd.f32 %v4043_v46, %v2161_v54 }
 0x30a   :  { %v2841_v15 = vpop.f32.mrf.mxu1 }
 0x30b   :  { %3006 = vst.msk [vmem:[%s5380_s7 + $0xa0] sm:$0xff] %vm861_vm1, %v2978_v30  ;;  %v2981_v0 = vmax.f32 %v2953_v63, 0.0  ;;  %v2952_v8 = vadd.f32 %v5157_v16, %v2917_v27  ;;  %v2920_v50 = vmul.f32 %v5151_v17, %v2885_v26  ;;  %v2884_v43 = vadd.f32 %v2841_v15, %v2160_v57 }
 0x30c   :  { %v4046_v32 = vpop.f32.mrf.mxu1 }
 0x30d   :  { %3009 = vst.msk [vmem:[%s5380_s7 + $0xb8] sm:$0xff] %vm861_vm1, %v2981_v0  ;;  %v2980_v11 = vmax.f32 %v2952_v8, 0.0  ;;  %v2955_v52 = vadd.f32 %v5157_v16, %v2920_v50  ;;  %v2919_v2 = vmul.f32 %v5151_v17, %v2884_v43  ;;  %v2887_v62 = vadd.f32 %v4046_v32, %v2163_v31 }
 0x30e   :  { %v2851_v5 = vpop.f32.mrf.mxu1 }
 0x30f   :  { %3008 = vst.msk [vmem:[%s5380_s7 + $0xb0] sm:$0xff] %vm861_vm1, %v2980_v11  ;;  %v2983_v1 = vmax.f32 %v2955_v52, 0.0  ;;  %v2954_v14 = vadd.f32 %v5157_v16, %v2919_v2  ;;  %v2922_v53 = vmul.f32 %v5151_v17, %v2887_v62  ;;  %v2886_v45 = vadd.f32 %v2851_v5, %v2162_v42 }
 0x311   :  { %3011 = vst.msk [vmem:[%s5380_s7 + $0xc8] sm:$0xff] %vm861_vm1, %v2983_v1  ;;  %v2982_v35 = vmax.f32 %v2954_v14, 0.0  ;;  %v2957_v25 = vadd.f32 %v5157_v16, %v2922_v53  ;;  %v2921_v40 = vmul.f32 %v5151_v17, %v2886_v45 }
 0x313   :  { %3010 = vst.msk [vmem:[%s5380_s7 + $0xc0] sm:$0xff] %vm861_vm1, %v2982_v35  ;;  %v2985_v18 = vmax.f32 %v2957_v25, 0.0  ;;  %v2956_v55 = vadd.f32 %v5157_v16, %v2921_v40 }
 0x315   :  { %3014 = vst.msk [vmem:[%s5380_s7 + $0xd8] sm:$0xf] %vm3013_vm2, %v2985_v18  ;;  %v2984_v7 = vmax.f32 %v2956_v55, 0.0 }
 0x317   :  { %3012 = vst.msk [vmem:[%s5380_s7 + $0xd0] sm:$0xff] %vm861_vm1, %v2984_v7 }

// kernel: dqn_forward.3
= control target key start
LH: loop header
LB: loop body
LE: loop exit
PB: predicated region body
PF: predicated region fallthrough
CT: control target
= control target key end

     0   :  { %v9542_v36 = vmov 1983009808   ;;  %v46_v38 = vlaneseq  ;;  %vm5519_vm0 = vcmask 523264   ;;  %s12651_s0 = inlined_call_operand.vmem [shape: f32[2,3520], index: 0, kind: input, shape index: {}]   ;;  %s12652_s1 = inlined_call_operand.vmem [shape: bf16[3520,512], index: 1, kind: input, shape index: {}]   ;;  %s12653_s2 = inlined_call_operand.vmem [shape: f32[1,512], index: 2, kind: input, shape index: {}]   ;;  %s12654_s3 = inlined_call_operand.vmem [shape: bf16[512,128], index: 3, kind: input, shape index: {}]   ;;  %s12655_s4 = inlined_call_operand.vmem [shape: f32[1,128], index: 4, kind: input, shape index: {}]   ;;  %s12656_s5 = inlined_call_operand.vmem [shape: bf16[128,8], index: 5, kind: input, shape index: {}]   ;;  %s12657_s6 = inlined_call_operand.vmem [shape: f32[1,8], index: 6, kind: input, shape index: {}]   ;;  %s12658_s7 = inlined_call_operand.hbm [shape: f32[2,8], index: 7, kind: output, shape index: {}]  }
   0x1   :  { %v8152_v0 = vld [vmem:[%s12652_s1 + $0xe4] ss:$16 sps:$4 sm:$0xff]   ;;  %v8156_v2 = vld [vmem:[%s12652_s1 + $0xe0] ss:$16 sps:$4 sm:$0xff]   ;;  %v44_v37 = vunpack.c.l.s4 %v9542_v36 }
   0x2   :  { %v8154_v1 = vld [vmem:[%s12652_s1 + $0x2e4] ss:$16 sps:$4 sm:$0xff]   ;;  %5523 = vmatprep.subr.bf16.mxu0 %v8152_v0  ;;  %v8157_v3 = vld [vmem:[%s12652_s1 + $0x2e0] ss:$16 sps:$4 sm:$0xff]   ;;  %v9703_v43 = vshrl.u32 %v46_v38, 7 }
   0x3   :  { %5564 = vmatprep.subr.bf16.mxu1 %v8154_v1  ;;  %v8158_v4 = vld [vmem:[%s12652_s1 + $0xc4] ss:$16 sps:$4 sm:$0xff]   ;;  %5524 = vmatpush1.bf16.msra.mxu0 %v8156_v2  ;;  %v8162_v6 = vld [vmem:[%s12652_s1 + $0xc0] ss:$16 sps:$4 sm:$0xff]   ;;  %v45_v42 = vunpack.c.0.s8 %v44_v37 }
   0x4   :  { %5565 = vmatpush1.bf16.msra.mxu1 %v8157_v3  ;;  %v8160_v5 = vld [vmem:[%s12652_s1 + $0x2c4] ss:$16 sps:$4 sm:$0xff]   ;;  %5525 = vmatprep.subr.bf16.mxu0 %v8158_v4  ;;  %v8163_v7 = vld [vmem:[%s12652_s1 + $0x2c0] ss:$16 sps:$4 sm:$0xff]  }
   0x5   :  { %5566 = vmatprep.subr.bf16.mxu1 %v8160_v5  ;;  %v8164_v8 = vld [vmem:[%s12652_s1 + $0xa4] ss:$16 sps:$4 sm:$0xff]   ;;  %v8168_v10 = vld [vmem:[%s12652_s1 + $0xa0] ss:$16 sps:$4 sm:$0xff]   ;;  %v9721_v49 = vsub.s32 %v45_v42, %v9703_v43  ;;  %v29_v42 = vld [vmem:[%s12651_s0 + $0x8] sm:$0xff] }
   0x6   :  { %v8166_v9 = vld [vmem:[%s12652_s1 + $0x2a4] ss:$16 sps:$4 sm:$0xff]   ;;  %v8169_v11 = vld [vmem:[%s12652_s1 + $0x2a0] ss:$16 sps:$4 sm:$0xff]  }
   0x7   :  { %5526 = vmatpush1.bf16.msra.mxu0 %v8162_v6  ;;  %v8170_v12 = vld [vmem:[%s12652_s1 + $0x84] ss:$16 sps:$4 sm:$0xff]   ;;  %v8174_v14 = vld [vmem:[%s12652_s1 + $0x80] ss:$16 sps:$4 sm:$0xff]  }
   0x8   :  { %5567 = vmatpush1.bf16.msra.mxu1 %v8163_v7  ;;  %5527 = vmatprep.subr.bf16.mxu0 %v8164_v8  ;;  %v8172_v13 = vld [vmem:[%s12652_s1 + $0x284] ss:$16 sps:$4 sm:$0xff]   ;;  %v8175_v15 = vld [vmem:[%s12652_s1 + $0x280] ss:$16 sps:$4 sm:$0xff]  }
   0x9   :  { %5568 = vmatprep.subr.bf16.mxu1 %v8166_v9  ;;  %v8176_v16 = vld [vmem:[%s12652_s1 + $0x64] ss:$16 sps:$4 sm:$0xff]   ;;  %v8180_v18 = vld [vmem:[%s12652_s1 + $0x60] ss:$16 sps:$4 sm:$0xff]  }
   0xa   :  { %v8178_v17 = vld [vmem:[%s12652_s1 + $0x264] ss:$16 sps:$4 sm:$0xff]   ;;  %v8181_v19 = vld [vmem:[%s12652_s1 + $0x260] ss:$16 sps:$4 sm:$0xff]  }
   0xb   :  { %5528 = vmatpush1.bf16.msra.mxu0 %v8168_v10  ;;  %v8182_v20 = vld [vmem:[%s12652_s1 + $0x44] ss:$16 sps:$4 sm:$0xff]   ;;  %v8186_v22 = vld [vmem:[%s12652_s1 + $0x40] ss:$16 sps:$4 sm:$0xff]  }
   0xc   :  { %5569 = vmatpush1.bf16.msra.mxu1 %v8169_v11  ;;  %5529 = vmatprep.subr.bf16.mxu0 %v8170_v12  ;;  %v8184_v21 = vld [vmem:[%s12652_s1 + $0x244] ss:$16 sps:$4 sm:$0xff]   ;;  %v8187_v23 = vld [vmem:[%s12652_s1 + $0x240] ss:$16 sps:$4 sm:$0xff]  }
   0xd   :  { %5570 = vmatprep.subr.bf16.mxu1 %v8172_v13  ;;  %v8188_v24 = vld [vmem:[%s12652_s1 + $0x24] ss:$16 sps:$4 sm:$0xff]   ;;  %v8192_v26 = vld [vmem:[%s12652_s1 + $0x20] ss:$16 sps:$4 sm:$0xff]  }
   0xe   :  { %v8190_v25 = vld [vmem:[%s12652_s1 + $0x224] ss:$16 sps:$4 sm:$0xff]   ;;  %v8193_v27 = vld [vmem:[%s12652_s1 + $0x220] ss:$16 sps:$4 sm:$0xff]  }
   0xf   :  { %5530 = vmatpush1.bf16.msra.mxu0 %v8174_v14  ;;  %v8194_v28 = vld [vmem:[%s12652_s1 + $0x4] ss:$16 sps:$4 sm:$0xff]   ;;  %v8198_v30 = vld [vmem:[%s12652_s1] ss:$16 sps:$4 sm:$0xff]  }
  0x10   :  { %5571 = vmatpush1.bf16.msra.mxu1 %v8175_v15  ;;  %5531 = vmatprep.subr.bf16.mxu0 %v8176_v16  ;;  %v8196_v29 = vld [vmem:[%s12652_s1 + $0x204] ss:$16 sps:$4 sm:$0xff]   ;;  %v8199_v31 = vld [vmem:[%s12652_s1 + $0x200] ss:$16 sps:$4 sm:$0xff]  }
  0x11   :  { %5572 = vmatprep.subr.bf16.mxu1 %v8178_v17  ;;  %v8200_v32 = vld [vmem:[%s12652_s1 + $0x1e4] ss:$16 sps:$4 sm:$0xff]   ;;  %v8204_v34 = vld [vmem:[%s12652_s1 + $0x1e0] ss:$16 sps:$4 sm:$0xff]  }
  0x12   :  { %v8202_v33 = vld [vmem:[%s12652_s1 + $0x3e4] ss:$16 sps:$4 sm:$0xff]   ;;  %v8205_v35 = vld [vmem:[%s12652_s1 + $0x3e0] ss:$16 sps:$4 sm:$0xff]  }
  0x13   :  { %5532 = vmatpush1.bf16.msra.mxu0 %v8180_v18  ;;  %v8206_v39 = vld [vmem:[%s12652_s1 + $0x1c4] ss:$16 sps:$4 sm:$0xff]   ;;  %v8210_v41 = vld [vmem:[%s12652_s1 + $0x1c0] ss:$16 sps:$4 sm:$0xff]  }
  0x14   :  { %5573 = vmatpush1.bf16.msra.mxu1 %v8181_v19  ;;  %5533 = vmatprep.subr.bf16.mxu0 %v8182_v20  ;;  %v8208_v40 = vld [vmem:[%s12652_s1 + $0x3c4] ss:$16 sps:$4 sm:$0xff]   ;;  %v8211_v44 = vld [vmem:[%s12652_s1 + $0x3c0] ss:$16 sps:$4 sm:$0xff]  }
  0x15   :  { %5574 = vmatprep.subr.bf16.mxu1 %v8184_v21  ;;  %v8212_v45 = vld [vmem:[%s12652_s1 + $0x1a4] ss:$16 sps:$4 sm:$0xff]   ;;  %v8216_v47 = vld [vmem:[%s12652_s1 + $0x1a0] ss:$16 sps:$4 sm:$0xff]  }
  0x16   :  { %v8214_v46 = vld [vmem:[%s12652_s1 + $0x3a4] ss:$16 sps:$4 sm:$0xff]   ;;  %v8217_v48 = vld [vmem:[%s12652_s1 + $0x3a0] ss:$16 sps:$4 sm:$0xff]  }
  0x17   :  { %5534 = vmatpush1.bf16.msra.mxu0 %v8186_v22  ;;  %v8218_v50 = vld [vmem:[%s12652_s1 + $0x184] ss:$16 sps:$4 sm:$0xff]   ;;  %v8222_v53 = vld [vmem:[%s12652_s1 + $0x180] ss:$16 sps:$4 sm:$0xff]  }
  0x18   :  { %5575 = vmatpush1.bf16.msra.mxu1 %v8187_v23  ;;  %5535 = vmatprep.subr.bf16.mxu0 %v8188_v24  ;;  %v8220_v51 = vld [vmem:[%s12652_s1 + $0x384] ss:$16 sps:$4 sm:$0xff]   ;;  %v8223_v56 = vld [vmem:[%s12652_s1 + $0x380] ss:$16 sps:$4 sm:$0xff]  }
  0x19   :  { %5576 = vmatprep.subr.bf16.mxu1 %v8190_v25  ;;  %v28_v52 = vld [vmem:[%s12651_s0] sm:$0xff] }
  0x1a   :  { %v49_v54 = vrot.slane %v28_v52, %v9721_v49  ;;  %v42_v55 = vcombine.high %v28_v52, %v28_v52  ;;  %v8224_v57 = vld [vmem:[%s12652_s1 + $0x164] ss:$16 sps:$4 sm:$0xff]   ;;  %v8228_v61 = vld [vmem:[%s12652_s1 + $0x160] ss:$16 sps:$4 sm:$0xff]  }
  0x1b   :  { %5536 = vmatpush1.bf16.msra.mxu0 %v8192_v26  ;;  %v8226_v58 = vld [vmem:[%s12652_s1 + $0x364] ss:$16 sps:$4 sm:$0xff]   ;;  %v8229_v0 = vld [vmem:[%s12652_s1 + $0x360] ss:$16 sps:$4 sm:$0xff]  }
  0x1c   :  { %5577 = vmatpush1.bf16.msra.mxu1 %v8193_v27  ;;  %5537 = vmatprep.subr.bf16.mxu0 %v8194_v28  ;;  %v57_v59 = vcombine.high %v49_v54, %v49_v54  ;;  %v56_v60 = vrot.slane %v42_v55, %v9721_v49  ;;  %v8230_v1 = vld [vmem:[%s12652_s1 + $0x144] ss:$16 sps:$4 sm:$0xff]   ;;  %v8234_v4 = vld [vmem:[%s12652_s1 + $0x140] ss:$16 sps:$4 sm:$0xff]   ;;  %v9800_v16 = vpack.c.bf16 %v49_v54, %v49_v54 }
  0x1d   :  { %5578 = vmatprep.subr.bf16.mxu1 %v8196_v29  ;;  %v8232_v2 = vld [vmem:[%s12652_s1 + $0x344] ss:$16 sps:$4 sm:$0xff]   ;;  %v8235_v5 = vld [vmem:[%s12652_s1 + $0x340] ss:$16 sps:$4 sm:$0xff]  }
  0x1e   :  { %v9749_v62 = vpack.c.bf16 %v57_v59, %v57_v59  ;;  %v58_v63 = vcombine.high %v56_v60, %v56_v60  ;;  %v8236_v6 = vld [vmem:[%s12652_s1 + $0x124] ss:$16 sps:$4 sm:$0xff]   ;;  %v8240_v8 = vld [vmem:[%s12652_s1 + $0x120] ss:$16 sps:$4 sm:$0xff]   ;;  %v9802_v17 = vpack.c.bf16 %v56_v60, %v56_v60 }
  0x1f   :  { %5538 = vmatpush1.bf16.msra.mxu0 %v8198_v30  ;;  %v8238_v7 = vld [vmem:[%s12652_s1 + $0x324] ss:$16 sps:$4 sm:$0xff]   ;;  %v8241_v9 = vld [vmem:[%s12652_s1 + $0x320] ss:$16 sps:$4 sm:$0xff]  }
  0x20   :  { %5579 = vmatpush1.bf16.msra.mxu1 %v8199_v31  ;;  %5539 = vmatprep.subr.bf16.mxu0 %v8200_v32  ;;  %v9760_v3 = vpack.c.bf16 %v58_v63, %v58_v63  ;;  %v8242_v10 = vld [vmem:[%s12652_s1 + $0x104] ss:$16 sps:$4 sm:$0xff]   ;;  %v8246_v12 = vld [vmem:[%s12652_s1 + $0x100] ss:$16 sps:$4 sm:$0xff]  }
  0x21   :  { %5580 = vmatprep.subr.bf16.mxu1 %v8202_v33  ;;  %5555 = vmatprep.mubr.bf16.mxu0 %v9749_v62  ;;  %v8244_v11 = vld [vmem:[%s12652_s1 + $0x304] ss:$16 sps:$4 sm:$0xff]   ;;  %v8247_v13 = vld [vmem:[%s12652_s1 + $0x300] ss:$16 sps:$4 sm:$0xff]  }
  0x22   :  { %5596 = vmatprep.mubr.bf16.mxu1 %v9760_v3  ;;  %v8251_v14 = vld [vmem:[%s12652_s1 + $0x4e4] ss:$16 sps:$4 sm:$0xff]   ;;  %v8249_v18 = vld [vmem:[%s12652_s1 + $0x4e0] ss:$16 sps:$4 sm:$0xff]  }
  0x23   :  { %5540 = vmatpush2.bf16.msra.mxu0 %v8204_v34  ;;  %v8254_v15 = vld [vmem:[%s12652_s1 + $0x6e4] ss:$16 sps:$4 sm:$0xff]   ;;  %v8252_v19 = vld [vmem:[%s12652_s1 + $0x6e0] ss:$16 sps:$4 sm:$0xff]  }
  0x24   :  { %5581 = vmatpush2.bf16.msra.mxu1 %v8205_v35  ;;  %5541 = vmatprep.subr.bf16.mxu0 %v8206_v39  ;;  %v8257_v20 = vld [vmem:[%s12652_s1 + $0x4c4] ss:$16 sps:$4 sm:$0xff]   ;;  %v8255_v22 = vld [vmem:[%s12652_s1 + $0x4c0] ss:$16 sps:$4 sm:$0xff]  }
  0x25   :  { %5582 = vmatprep.subr.bf16.mxu1 %v8208_v40  ;;  %v8260_v21 = vld [vmem:[%s12652_s1 + $0x6c4] ss:$16 sps:$4 sm:$0xff]   ;;  %v8258_v23 = vld [vmem:[%s12652_s1 + $0x6c0] ss:$16 sps:$4 sm:$0xff]  }
  0x26   :  { %v8263_v24 = vld [vmem:[%s12652_s1 + $0x4a4] ss:$16 sps:$4 sm:$0xff]   ;;  %v8261_v26 = vld [vmem:[%s12652_s1 + $0x4a0] ss:$16 sps:$4 sm:$0xff]  }
  0x27   :  { %5542 = vmatpush2.bf16.msra.mxu0 %v8210_v41  ;;  %v8266_v25 = vld [vmem:[%s12652_s1 + $0x6a4] ss:$16 sps:$4 sm:$0xff]   ;;  %v8264_v27 = vld [vmem:[%s12652_s1 + $0x6a0] ss:$16 sps:$4 sm:$0xff]  }
  0x28   :  { %5583 = vmatpush2.bf16.msra.mxu1 %v8211_v44  ;;  %5543 = vmatprep.subr.bf16.mxu0 %v8212_v45  ;;  %v8269_v28 = vld [vmem:[%s12652_s1 + $0x484] ss:$16 sps:$4 sm:$0xff]   ;;  %v8267_v30 = vld [vmem:[%s12652_s1 + $0x480] ss:$16 sps:$4 sm:$0xff]   ;;  %v9882_v44 = vrot.slane %v29_v42, %v9721_v49  ;;  %v59_v45 = vcombine.high %v29_v42, %v29_v42 }
  0x29   :  { %5584 = vmatprep.subr.bf16.mxu1 %v8214_v46  ;;  %v8272_v29 = vld [vmem:[%s12652_s1 + $0x684] ss:$16 sps:$4 sm:$0xff]   ;;  %v8270_v31 = vld [vmem:[%s12652_s1 + $0x680] ss:$16 sps:$4 sm:$0xff]  }
  0x2a   :  { %v8275_v32 = vld [vmem:[%s12652_s1 + $0x464] ss:$16 sps:$4 sm:$0xff]   ;;  %v8273_v34 = vld [vmem:[%s12652_s1 + $0x460] ss:$16 sps:$4 sm:$0xff]  }
  0x2b   :  { %5544 = vmatpush2.bf16.msra.mxu0 %v8216_v47  ;;  %v8278_v33 = vld [vmem:[%s12652_s1 + $0x664] ss:$16 sps:$4 sm:$0xff]   ;;  %v8276_v35 = vld [vmem:[%s12652_s1 + $0x660] ss:$16 sps:$4 sm:$0xff]  }
  0x2c   :  { %5585 = vmatpush2.bf16.msra.mxu1 %v8217_v48  ;;  %5545 = vmatprep.subr.bf16.mxu0 %v8218_v50  ;;  %v8281_v36 = vld [vmem:[%s12652_s1 + $0x444] ss:$16 sps:$4 sm:$0xff]   ;;  %v8279_v38 = vld [vmem:[%s12652_s1 + $0x440] ss:$16 sps:$4 sm:$0xff]   ;;  %v74_v48 = vcombine.high %v9882_v44, %v9882_v44  ;;  %v9893_v50 = vrot.slane %v59_v45, %v9721_v49 }
  0x2d   :  { %5586 = vmatprep.subr.bf16.mxu1 %v8220_v51  ;;  %v8284_v37 = vld [vmem:[%s12652_s1 + $0x644] ss:$16 sps:$4 sm:$0xff]   ;;  %v8282_v39 = vld [vmem:[%s12652_s1 + $0x640] ss:$16 sps:$4 sm:$0xff]  }
  0x2e   :  { %v8287_v40 = vld [vmem:[%s12652_s1 + $0x424] ss:$16 sps:$4 sm:$0xff]   ;;  %v8285_v46 = vld [vmem:[%s12652_s1 + $0x420] ss:$16 sps:$4 sm:$0xff]   ;;  %v75_v54 = vcombine.high %v9893_v50, %v9893_v50 }
  0x2f   :  { %5546 = vmatpush2.bf16.msra.mxu0 %v8222_v53  ;;  %v8290_v41 = vld [vmem:[%s12652_s1 + $0x624] ss:$16 sps:$4 sm:$0xff]   ;;  %v8288_v47 = vld [vmem:[%s12652_s1 + $0x620] ss:$16 sps:$4 sm:$0xff]   ;;  %v9901_v53 = vpack.c.bf16 %v74_v48, %v74_v48 }
  0x30   :  { %5587 = vmatpush2.bf16.msra.mxu1 %v8223_v56  ;;  %5547 = vmatprep.subr.bf16.mxu0 %v8224_v57  ;;  %v8293_v51 = vld [vmem:[%s12652_s1 + $0x404] ss:$16 sps:$4 sm:$0xff]   ;;  %v8291_v55 = vld [vmem:[%s12652_s1 + $0x400] ss:$16 sps:$4 sm:$0xff]   ;;  %v9911_v57 = vpack.c.bf16 %v75_v54, %v75_v54 }
  0x31   :  { %5588 = vmatprep.subr.bf16.mxu1 %v8226_v58  ;;  %v8296_v52 = vld [vmem:[%s12652_s1 + $0x604] ss:$16 sps:$4 sm:$0xff]   ;;  %v8294_v56 = vld [vmem:[%s12652_s1 + $0x600] ss:$16 sps:$4 sm:$0xff]  }
  0x32   :  { %v8299_v58 = vld [vmem:[%s12652_s1 + $0x5e4] ss:$16 sps:$4 sm:$0xff]   ;;  %v8297_v60 = vld [vmem:[%s12652_s1 + $0x5e0] ss:$16 sps:$4 sm:$0xff]  }
  0x33   :  { %5548 = vmatpush2.bf16.msra.mxu0 %v8228_v61  ;;  %v8302_v59 = vld [vmem:[%s12652_s1 + $0x7e4] ss:$16 sps:$4 sm:$0xff]   ;;  %v8300_v61 = vld [vmem:[%s12652_s1 + $0x7e0] ss:$16 sps:$4 sm:$0xff]  }
  0x34   :  { %5589 = vmatpush2.bf16.msra.mxu1 %v8229_v0  ;;  %5549 = vmatprep.subr.bf16.mxu0 %v8230_v1  ;;  %v8305_v63 = vld [vmem:[%s12652_s1 + $0x5c4] ss:$16 sps:$4 sm:$0xff]   ;;  %v8303_v1 = vld [vmem:[%s12652_s1 + $0x5c0] ss:$16 sps:$4 sm:$0xff]  }
  0x35   :  { %5590 = vmatprep.subr.bf16.mxu1 %v8232_v2  ;;  %v8308_v0 = vld [vmem:[%s12652_s1 + $0x7c4] ss:$16 sps:$4 sm:$0xff]   ;;  %v8306_v2 = vld [vmem:[%s12652_s1 + $0x7c0] ss:$16 sps:$4 sm:$0xff]  }
  0x36   :  { %v8355_v45 = vld [vmem:[%s12652_s1 + $0xac0] ss:$16 sps:$4 sm:$0xff]  }
  0x37   :  { %5550 = vmatpush2.bf16.msra.mxu0 %v8234_v4  ;;  %v8311_v4 = vld [vmem:[%s12652_s1 + $0x5a4] ss:$16 sps:$4 sm:$0xff]   ;;  %v8361_v54 = vld [vmem:[%s12652_s1 + $0xaa0] ss:$16 sps:$4 sm:$0xff]  }
  0x38   :  { %5591 = vmatpush2.bf16.msra.mxu1 %v8235_v5  ;;  %5551 = vmatprep.subr.bf16.mxu0 %v8236_v6  ;;  %v8314_v5 = vld [vmem:[%s12652_s1 + $0x7a4] ss:$16 sps:$4 sm:$0xff]   ;;  %v8309_v6 = vld [vmem:[%s12652_s1 + $0x5a0] ss:$16 sps:$4 sm:$0xff]  }
  0x39   :  { %5592 = vmatprep.subr.bf16.mxu1 %v8238_v7  ;;  %v8312_v7 = vld [vmem:[%s12652_s1 + $0x7a0] ss:$16 sps:$4 sm:$0xff]  }
  0x3b   :  { %5552 = vmatpush2.bf16.msra.mxu0 %v8240_v8  ;;  %v8317_v8 = vld [vmem:[%s12652_s1 + $0x584] ss:$16 sps:$4 sm:$0xff]  }
  0x3c   :  { %5593 = vmatpush2.bf16.msra.mxu1 %v8241_v9  ;;  %5553 = vmatprep.subr.bf16.mxu0 %v8242_v10  ;;  %v8320_v9 = vld [vmem:[%s12652_s1 + $0x784] ss:$16 sps:$4 sm:$0xff]   ;;  %v8315_v10 = vld [vmem:[%s12652_s1 + $0x580] ss:$16 sps:$4 sm:$0xff]  }
  0x3d   :  { %5594 = vmatprep.subr.bf16.mxu1 %v8244_v11  ;;  %v8318_v11 = vld [vmem:[%s12652_s1 + $0x780] ss:$16 sps:$4 sm:$0xff]  }
  0x3f   :  { %5554 = vmatpush2.bf16.msra.mxu0 %v8246_v12  ;;  %v8323_v12 = vld [vmem:[%s12652_s1 + $0x564] ss:$16 sps:$4 sm:$0xff]  }
  0x40   :  { %5595 = vmatpush2.bf16.msra.mxu1 %v8247_v13  ;;  %5605 = vmatprep.subr.bf16.mxu0 %v8251_v14  ;;  %v8326_v13 = vld [vmem:[%s12652_s1 + $0x764] ss:$16 sps:$4 sm:$0xff]   ;;  %v8321_v14 = vld [vmem:[%s12652_s1 + $0x560] ss:$16 sps:$4 sm:$0xff]  }
  0x41   :  { %5646 = vmatprep.subr.bf16.mxu1 %v8254_v15  ;;  %v8324_v15 = vld [vmem:[%s12652_s1 + $0x760] ss:$16 sps:$4 sm:$0xff]  }
  0x42   :  { %5556 = vmatmul.mubr.bf16.vlgmr.msra.gmra.mxu0 %v9800_v16 }
  0x43   :  { %5597 = vmatmul.mubr.bf16.vlgmr.msra.gmra.mxu1 %v9802_v17  ;;  %5606 = vmatpush1.bf16.msra.mxu0 %v8249_v18  ;;  %v8329_v18 = vld [vmem:[%s12652_s1 + $0x544] ss:$16 sps:$4 sm:$0xff]  }
  0x44   :  { %5647 = vmatpush1.bf16.msra.mxu1 %v8252_v19  ;;  %5607 = vmatprep.subr.bf16.mxu0 %v8257_v20  ;;  %v8332_v19 = vld [vmem:[%s12652_s1 + $0x744] ss:$16 sps:$4 sm:$0xff]   ;;  %v8327_v20 = vld [vmem:[%s12652_s1 + $0x540] ss:$16 sps:$4 sm:$0xff]  }
  0x45   :  { %5648 = vmatprep.subr.bf16.mxu1 %v8260_v21  ;;  %5637 = vmatprep.mubr.bf16.mxu0 %v9901_v53  ;;  %v8330_v21 = vld [vmem:[%s12652_s1 + $0x740] ss:$16 sps:$4 sm:$0xff]  }
  0x46   :  { %5678 = vmatprep.mubr.bf16.mxu1 %v9911_v57 }
  0x47   :  { %5608 = vmatpush1.bf16.msra.mxu0 %v8255_v22  ;;  %v8335_v22 = vld [vmem:[%s12652_s1 + $0x524] ss:$16 sps:$4 sm:$0xff]  }
  0x48   :  { %5649 = vmatpush1.bf16.msra.mxu1 %v8258_v23  ;;  %5609 = vmatprep.subr.bf16.mxu0 %v8263_v24  ;;  %v8338_v23 = vld [vmem:[%s12652_s1 + $0x724] ss:$16 sps:$4 sm:$0xff]   ;;  %v8333_v24 = vld [vmem:[%s12652_s1 + $0x520] ss:$16 sps:$4 sm:$0xff]  }
  0x49   :  { %5650 = vmatprep.subr.bf16.mxu1 %v8266_v25  ;;  %v8336_v25 = vld [vmem:[%s12652_s1 + $0x720] ss:$16 sps:$4 sm:$0xff]  }
  0x4b   :  { %5610 = vmatpush1.bf16.msra.mxu0 %v8261_v26  ;;  %v8341_v26 = vld [vmem:[%s12652_s1 + $0x504] ss:$16 sps:$4 sm:$0xff]  }
  0x4c   :  { %5651 = vmatpush1.bf16.msra.mxu1 %v8264_v27  ;;  %5611 = vmatprep.subr.bf16.mxu0 %v8269_v28  ;;  %v8344_v27 = vld [vmem:[%s12652_s1 + $0x704] ss:$16 sps:$4 sm:$0xff]   ;;  %v8339_v28 = vld [vmem:[%s12652_s1 + $0x500] ss:$16 sps:$4 sm:$0xff]  }
  0x4d   :  { %5652 = vmatprep.subr.bf16.mxu1 %v8272_v29  ;;  %v8342_v29 = vld [vmem:[%s12652_s1 + $0x700] ss:$16 sps:$4 sm:$0xff]  }
  0x4f   :  { %5612 = vmatpush1.bf16.msra.mxu0 %v8267_v30  ;;  %v8348_v30 = vld [vmem:[%s12652_s1 + $0x8e4] ss:$16 sps:$4 sm:$0xff]  }
  0x50   :  { %5653 = vmatpush1.bf16.msra.mxu1 %v8270_v31  ;;  %5613 = vmatprep.subr.bf16.mxu0 %v8275_v32  ;;  %v8351_v31 = vld [vmem:[%s12652_s1 + $0xae4] ss:$16 sps:$4 sm:$0xff]   ;;  %v10019_v32 = vpack.c.bf16 %v9882_v44, %v9882_v44 }
  0x51   :  { %5654 = vmatprep.subr.bf16.mxu1 %v8278_v33  ;;  %v10023_v33 = vpack.c.bf16 %v9893_v50, %v9893_v50 }
  0x53   :  { %5614 = vmatpush1.bf16.msra.mxu0 %v8273_v34  ;;  %v8346_v34 = vld [vmem:[%s12652_s1 + $0x8e0] ss:$16 sps:$4 sm:$0xff]  }
  0x54   :  { %5655 = vmatpush1.bf16.msra.mxu1 %v8276_v35  ;;  %5615 = vmatprep.subr.bf16.mxu0 %v8281_v36  ;;  %v8349_v35 = vld [vmem:[%s12652_s1 + $0xae0] ss:$16 sps:$4 sm:$0xff]   ;;  %v8354_v36 = vld [vmem:[%s12652_s1 + $0x8c4] ss:$16 sps:$4 sm:$0xff]  }
  0x55   :  { %5656 = vmatprep.subr.bf16.mxu1 %v8284_v37  ;;  %v30_v37 = vld [vmem:[%s12651_s0 + $0x10] sm:$0xff] }
  0x57   :  { %5616 = vmatpush1.bf16.msra.mxu0 %v8279_v38  ;;  %v8357_v38 = vld [vmem:[%s12652_s1 + $0xac4] ss:$16 sps:$4 sm:$0xff]  }
  0x58   :  { %5657 = vmatpush1.bf16.msra.mxu1 %v8282_v39  ;;  %5617 = vmatprep.subr.bf16.mxu0 %v8287_v40  ;;  %v10041_v39 = vrot.slane %v30_v37, %v9721_v49  ;;  %v76_v40 = vcombine.high %v30_v37, %v30_v37  ;;  %v8421_v37 = vld [vmem:[%s12652_s1 + $0xb60] ss:$16 sps:$4 sm:$0xff]  }
  0x59   :  { %5658 = vmatprep.subr.bf16.mxu1 %v8290_v41  ;;  %v8352_v41 = vld [vmem:[%s12652_s1 + $0x8c0] ss:$16 sps:$4 sm:$0xff]  }
  0x5a   :  { %v91_v42 = vcombine.high %v10041_v39, %v10041_v39  ;;  %v10051_v44 = vrot.slane %v76_v40, %v9721_v49  ;;  %v8429_v40 = vld [vmem:[%s12652_s1 + $0xb44] ss:$16 sps:$4 sm:$0xff]  }
  0x5b   :  { %5618 = vmatpush1.bf16.msra.mxu0 %v8285_v46  ;;  %v8360_v46 = vld [vmem:[%s12652_s1 + $0x8a4] ss:$16 sps:$4 sm:$0xff]  }
  0x5c   :  { %5659 = vmatpush1.bf16.msra.mxu1 %v8288_v47  ;;  %5619 = vmatprep.subr.bf16.mxu0 %v8293_v51  ;;  %v8363_v47 = vld [vmem:[%s12652_s1 + $0xaa4] ss:$16 sps:$4 sm:$0xff]   ;;  %v10062_v48 = vpack.c.bf16 %v91_v42, %v91_v42  ;;  %v92_v50 = vcombine.high %v10051_v44, %v10051_v44  ;;  %v8358_v51 = vld [vmem:[%s12652_s1 + $0x8a0] ss:$16 sps:$4 sm:$0xff]   ;;  %v31_v42 = vld [vmem:[%s12651_s0 + $0x18] sm:$0xff] }
  0x5d   :  { %5660 = vmatprep.subr.bf16.mxu1 %v8296_v52 }
  0x5e   :  { %v10070_v52 = vpack.c.bf16 %v92_v50, %v92_v50  ;;  %v93_v50 = vcombine.high %v31_v42, %v31_v42 }
  0x5f   :  { %5620 = vmatpush1.bf16.msra.mxu0 %v8291_v55  ;;  %v8366_v55 = vld [vmem:[%s12652_s1 + $0x884] ss:$16 sps:$4 sm:$0xff]  }
  0x60   :  { %5661 = vmatpush1.bf16.msra.mxu1 %v8294_v56  ;;  %5621 = vmatprep.subr.bf16.mxu0 %v8299_v58  ;;  %v8369_v56 = vld [vmem:[%s12652_s1 + $0xa84] ss:$16 sps:$4 sm:$0xff]   ;;  %v8364_v58 = vld [vmem:[%s12652_s1 + $0x880] ss:$16 sps:$4 sm:$0xff]  }
  0x61   :  { %5662 = vmatprep.subr.bf16.mxu1 %v8302_v59  ;;  %v8367_v59 = vld [vmem:[%s12652_s1 + $0xa80] ss:$16 sps:$4 sm:$0xff]  }
  0x63   :  { %5622 = vmatpush2.bf16.msra.mxu0 %v8297_v60  ;;  %v8372_v60 = vld [vmem:[%s12652_s1 + $0x864] ss:$16 sps:$4 sm:$0xff]  }
  0x64   :  { %5663 = vmatpush2.bf16.msra.mxu1 %v8300_v61  ;;  %5623 = vmatprep.subr.bf16.mxu0 %v8305_v63  ;;  %v8375_v61 = vld [vmem:[%s12652_s1 + $0xa64] ss:$16 sps:$4 sm:$0xff]   ;;  %v8370_v63 = vld [vmem:[%s12652_s1 + $0x860] ss:$16 sps:$4 sm:$0xff]  }
  0x65   :  { %5664 = vmatprep.subr.bf16.mxu1 %v8308_v0  ;;  %v8373_v0 = vld [vmem:[%s12652_s1 + $0xa60] ss:$16 sps:$4 sm:$0xff]  }
  0x67   :  { %5624 = vmatpush2.bf16.msra.mxu0 %v8303_v1  ;;  %v8378_v1 = vld [vmem:[%s12652_s1 + $0x844] ss:$16 sps:$4 sm:$0xff]  }
  0x68   :  { %5665 = vmatpush2.bf16.msra.mxu1 %v8306_v2  ;;  %5625 = vmatprep.subr.bf16.mxu0 %v8311_v4  ;;  %v8381_v2 = vld [vmem:[%s12652_s1 + $0xa44] ss:$16 sps:$4 sm:$0xff]   ;;  %v8376_v4 = vld [vmem:[%s12652_s1 + $0x840] ss:$16 sps:$4 sm:$0xff]  }
  0x69   :  { %5666 = vmatprep.subr.bf16.mxu1 %v8314_v5  ;;  %v8379_v5 = vld [vmem:[%s12652_s1 + $0xa40] ss:$16 sps:$4 sm:$0xff]  }
  0x6b   :  { %5626 = vmatpush2.bf16.msra.mxu0 %v8309_v6  ;;  %v8384_v6 = vld [vmem:[%s12652_s1 + $0x824] ss:$16 sps:$4 sm:$0xff]  }
  0x6c   :  { %5667 = vmatpush2.bf16.msra.mxu1 %v8312_v7  ;;  %5627 = vmatprep.subr.bf16.mxu0 %v8317_v8  ;;  %v8387_v7 = vld [vmem:[%s12652_s1 + $0xa24] ss:$16 sps:$4 sm:$0xff]   ;;  %v8382_v8 = vld [vmem:[%s12652_s1 + $0x820] ss:$16 sps:$4 sm:$0xff]  }
  0x6d   :  { %5668 = vmatprep.subr.bf16.mxu1 %v8320_v9  ;;  %v8385_v9 = vld [vmem:[%s12652_s1 + $0xa20] ss:$16 sps:$4 sm:$0xff]  }
  0x6f   :  { %5628 = vmatpush2.bf16.msra.mxu0 %v8315_v10  ;;  %v8390_v10 = vld [vmem:[%s12652_s1 + $0x804] ss:$16 sps:$4 sm:$0xff]  }
  0x70   :  { %5669 = vmatpush2.bf16.msra.mxu1 %v8318_v11  ;;  %5629 = vmatprep.subr.bf16.mxu0 %v8323_v12  ;;  %v8393_v11 = vld [vmem:[%s12652_s1 + $0xa04] ss:$16 sps:$4 sm:$0xff]   ;;  %v8388_v12 = vld [vmem:[%s12652_s1 + $0x800] ss:$16 sps:$4 sm:$0xff]  }
  0x71   :  { %5670 = vmatprep.subr.bf16.mxu1 %v8326_v13  ;;  %v8391_v13 = vld [vmem:[%s12652_s1 + $0xa00] ss:$16 sps:$4 sm:$0xff]  }
  0x73   :  { %5630 = vmatpush2.bf16.msra.mxu0 %v8321_v14  ;;  %v8396_v14 = vld [vmem:[%s12652_s1 + $0x9e4] ss:$16 sps:$4 sm:$0xff]  }
  0x74   :  { %5671 = vmatpush2.bf16.msra.mxu1 %v8324_v15  ;;  %5631 = vmatprep.subr.bf16.mxu0 %v8329_v18  ;;  %v8399_v15 = vld [vmem:[%s12652_s1 + $0xbe4] ss:$16 sps:$4 sm:$0xff]   ;;  %v8394_v18 = vld [vmem:[%s12652_s1 + $0x9e0] ss:$16 sps:$4 sm:$0xff]  }
  0x75   :  { %5672 = vmatprep.subr.bf16.mxu1 %v8332_v19  ;;  %v8397_v19 = vld [vmem:[%s12652_s1 + $0xbe0] ss:$16 sps:$4 sm:$0xff]  }
  0x77   :  { %5632 = vmatpush2.bf16.msra.mxu0 %v8327_v20  ;;  %v8402_v20 = vld [vmem:[%s12652_s1 + $0x9c4] ss:$16 sps:$4 sm:$0xff]  }
  0x78   :  { %5673 = vmatpush2.bf16.msra.mxu1 %v8330_v21  ;;  %5633 = vmatprep.subr.bf16.mxu0 %v8335_v22  ;;  %v8405_v21 = vld [vmem:[%s12652_s1 + $0xbc4] ss:$16 sps:$4 sm:$0xff]   ;;  %v8400_v22 = vld [vmem:[%s12652_s1 + $0x9c0] ss:$16 sps:$4 sm:$0xff]  }
  0x79   :  { %5674 = vmatprep.subr.bf16.mxu1 %v8338_v23  ;;  %v8403_v23 = vld [vmem:[%s12652_s1 + $0xbc0] ss:$16 sps:$4 sm:$0xff]  }
  0x7b   :  { %5634 = vmatpush2.bf16.msra.mxu0 %v8333_v24  ;;  %v8408_v24 = vld [vmem:[%s12652_s1 + $0x9a4] ss:$16 sps:$4 sm:$0xff]  }
  0x7c   :  { %5675 = vmatpush2.bf16.msra.mxu1 %v8336_v25  ;;  %5635 = vmatprep.subr.bf16.mxu0 %v8341_v26  ;;  %v8411_v25 = vld [vmem:[%s12652_s1 + $0xba4] ss:$16 sps:$4 sm:$0xff]   ;;  %v8406_v26 = vld [vmem:[%s12652_s1 + $0x9a0] ss:$16 sps:$4 sm:$0xff]  }
  0x7d   :  { %5676 = vmatprep.subr.bf16.mxu1 %v8344_v27  ;;  %v8409_v27 = vld [vmem:[%s12652_s1 + $0xba0] ss:$16 sps:$4 sm:$0xff]  }
  0x7f   :  { %5636 = vmatpush2.bf16.msra.mxu0 %v8339_v28  ;;  %v8414_v28 = vld [vmem:[%s12652_s1 + $0x984] ss:$16 sps:$4 sm:$0xff]  }
  0x80   :  { %5677 = vmatpush2.bf16.msra.mxu1 %v8342_v29  ;;  %5687 = vmatprep.subr.bf16.mxu0 %v8348_v30  ;;  %v8417_v29 = vld [vmem:[%s12652_s1 + $0xb84] ss:$16 sps:$4 sm:$0xff]   ;;  %v8412_v30 = vld [vmem:[%s12652_s1 + $0x980] ss:$16 sps:$4 sm:$0xff]  }
  0x81   :  { %5728 = vmatprep.subr.bf16.mxu1 %v8351_v31  ;;  %v8415_v31 = vld [vmem:[%s12652_s1 + $0xb80] ss:$16 sps:$4 sm:$0xff]  }
  0x82   :  { %5638 = vmatmul.mubr.bf16.vlgmr.msra.gmra.mxu0 %v10019_v32 }
  0x83   :  { %5679 = vmatmul.mubr.bf16.vlgmr.msra.gmra.mxu1 %v10023_v33  ;;  %5688 = vmatpush1.bf16.msra.mxu0 %v8346_v34  ;;  %v8420_v34 = vld [vmem:[%s12652_s1 + $0x964] ss:$16 sps:$4 sm:$0xff]  }
  0x84   :  { %5729 = vmatpush1.bf16.msra.mxu1 %v8349_v35  ;;  %5689 = vmatprep.subr.bf16.mxu0 %v8354_v36  ;;  %v8423_v35 = vld [vmem:[%s12652_s1 + $0xb64] ss:$16 sps:$4 sm:$0xff]   ;;  %v8418_v36 = vld [vmem:[%s12652_s1 + $0x960] ss:$16 sps:$4 sm:$0xff]  }
  0x85   :  { %5730 = vmatprep.subr.bf16.mxu1 %v8357_v38  ;;  %5719 = vmatprep.mubr.bf16.mxu0 %v10062_v48  ;;  %v8426_v38 = vld [vmem:[%s12652_s1 + $0x944] ss:$16 sps:$4 sm:$0xff]  }
  0x86   :  { %5760 = vmatprep.mubr.bf16.mxu1 %v10070_v52 }
  0x87   :  { %5690 = vmatpush1.bf16.msra.mxu0 %v8352_v41  ;;  %v8424_v41 = vld [vmem:[%s12652_s1 + $0x940] ss:$16 sps:$4 sm:$0xff]  }
  0x88   :  { %5731 = vmatpush1.bf16.msra.mxu1 %v8355_v45  ;;  %5691 = vmatprep.subr.bf16.mxu0 %v8360_v46  ;;  %v8427_v45 = vld [vmem:[%s12652_s1 + $0xb40] ss:$16 sps:$4 sm:$0xff]   ;;  %v8432_v46 = vld [vmem:[%s12652_s1 + $0x924] ss:$16 sps:$4 sm:$0xff]  }
  0x89   :  { %5732 = vmatprep.subr.bf16.mxu1 %v8363_v47  ;;  %v8435_v47 = vld [vmem:[%s12652_s1 + $0xb24] ss:$16 sps:$4 sm:$0xff]  }
  0x8b   :  { %5692 = vmatpush1.bf16.msra.mxu0 %v8358_v51  ;;  %v8430_v51 = vld [vmem:[%s12652_s1 + $0x920] ss:$16 sps:$4 sm:$0xff]  }
  0x8c   :  { %5733 = vmatpush1.bf16.msra.mxu1 %v8361_v54  ;;  %5693 = vmatprep.subr.bf16.mxu0 %v8366_v55  ;;  %v8433_v54 = vld [vmem:[%s12652_s1 + $0xb20] ss:$16 sps:$4 sm:$0xff]   ;;  %v8438_v55 = vld [vmem:[%s12652_s1 + $0x904] ss:$16 sps:$4 sm:$0xff]  }
  0x8d   :  { %5734 = vmatprep.subr.bf16.mxu1 %v8369_v56  ;;  %v8441_v56 = vld [vmem:[%s12652_s1 + $0xb04] ss:$16 sps:$4 sm:$0xff]  }
  0x8f   :  { %5694 = vmatpush1.bf16.msra.mxu0 %v8364_v58  ;;  %v10230_v58 = vrot.slane %v31_v42, %v9721_v49  ;;  %v8496_v42 = vld [vmem:[%s12652_s1 + $0xfe4] ss:$16 sps:$4 sm:$0xff]  }
  0x90   :  { %5735 = vmatpush1.bf16.msra.mxu1 %v8367_v59  ;;  %5695 = vmatprep.subr.bf16.mxu0 %v8372_v60  ;;  %v10233_v59 = vrot.slane %v93_v50, %v9721_v49  ;;  %v8436_v60 = vld [vmem:[%s12652_s1 + $0x900] ss:$16 sps:$4 sm:$0xff]   ;;  %v8502_v50 = vld [vmem:[%s12652_s1 + $0xfc4] ss:$16 sps:$4 sm:$0xff]  }
  0x91   :  { %5736 = vmatprep.subr.bf16.mxu1 %v8375_v61  ;;  %v8439_v61 = vld [vmem:[%s12652_s1 + $0xb00] ss:$16 sps:$4 sm:$0xff]  }
  0x93   :  { %5696 = vmatpush1.bf16.msra.mxu0 %v8370_v63  ;;  %v8445_v63 = vld [vmem:[%s12652_s1 + $0xce4] ss:$16 sps:$4 sm:$0xff]  }
  0x94   :  { %5737 = vmatpush1.bf16.msra.mxu1 %v8373_v0  ;;  %5697 = vmatprep.subr.bf16.mxu0 %v8378_v1  ;;  %v8448_v0 = vld [vmem:[%s12652_s1 + $0xee4] ss:$16 sps:$4 sm:$0xff]   ;;  %v108_v1 = vcombine.high %v10230_v58, %v10230_v58 }
  0x95   :  { %5738 = vmatprep.subr.bf16.mxu1 %v8381_v2  ;;  %v109_v2 = vcombine.high %v10233_v59, %v10233_v59 }
  0x97   :  { %5698 = vmatpush1.bf16.msra.mxu0 %v8376_v4  ;;  %v10253_v4 = vpack.c.bf16 %v10041_v39, %v10041_v39  ;;  %v8451_v39 = vld [vmem:[%s12652_s1 + $0xcc4] ss:$16 sps:$4 sm:$0xff]  }
  0x98   :  { %5739 = vmatpush1.bf16.msra.mxu1 %v8379_v5  ;;  %5699 = vmatprep.subr.bf16.mxu0 %v8384_v6  ;;  %v10257_v5 = vpack.c.bf16 %v10051_v44, %v10051_v44  ;;  %v8443_v6 = vld [vmem:[%s12652_s1 + $0xce0] ss:$16 sps:$4 sm:$0xff]   ;;  %v8454_v44 = vld [vmem:[%s12652_s1 + $0xec4] ss:$16 sps:$4 sm:$0xff]  }
  0x99   :  { %5740 = vmatprep.subr.bf16.mxu1 %v8387_v7  ;;  %v8446_v7 = vld [vmem:[%s12652_s1 + $0xee0] ss:$16 sps:$4 sm:$0xff]  }
  0x9b   :  { %5700 = vmatpush1.bf16.msra.mxu0 %v8382_v8  ;;  %v10271_v8 = vpack.c.bf16 %v108_v1, %v108_v1  ;;  %v8509_v1 = vld [vmem:[%s12652_s1 + $0xd80] ss:$16 sps:$4 sm:$0xff]  }
  0x9c   :  { %5741 = vmatpush1.bf16.msra.mxu1 %v8385_v9  ;;  %5701 = vmatprep.subr.bf16.mxu0 %v8390_v10  ;;  %v10273_v9 = vpack.c.bf16 %v109_v2, %v109_v2  ;;  %v8449_v10 = vld [vmem:[%s12652_s1 + $0xcc0] ss:$16 sps:$4 sm:$0xff]  }
  0x9d   :  { %5742 = vmatprep.subr.bf16.mxu1 %v8393_v11  ;;  %v8452_v11 = vld [vmem:[%s12652_s1 + $0xec0] ss:$16 sps:$4 sm:$0xff]  }
  0x9e   :  { %v8512_v2 = vld [vmem:[%s12652_s1 + $0xf80] ss:$16 sps:$4 sm:$0xff]  }
  0x9f   :  { %5702 = vmatpush1.bf16.msra.mxu0 %v8388_v12  ;;  %v8457_v12 = vld [vmem:[%s12652_s1 + $0xca4] ss:$16 sps:$4 sm:$0xff]  }
  0xa0   :  { %5743 = vmatpush1.bf16.msra.mxu1 %v8391_v13  ;;  %5703 = vmatprep.subr.bf16.mxu0 %v8396_v14  ;;  %v8460_v13 = vld [vmem:[%s12652_s1 + $0xea4] ss:$16 sps:$4 sm:$0xff]   ;;  %v8455_v14 = vld [vmem:[%s12652_s1 + $0xca0] ss:$16 sps:$4 sm:$0xff]  }
  0xa1   :  { %5744 = vmatprep.subr.bf16.mxu1 %v8399_v15  ;;  %v8458_v15 = vld [vmem:[%s12652_s1 + $0xea0] ss:$16 sps:$4 sm:$0xff]  }
  0xa3   :  { %5704 = vmatpush2.bf16.msra.mxu0 %v8394_v18  ;;  %v8463_v18 = vld [vmem:[%s12652_s1 + $0xc84] ss:$16 sps:$4 sm:$0xff]  }
  0xa4   :  { %5745 = vmatpush2.bf16.msra.mxu1 %v8397_v19  ;;  %5705 = vmatprep.subr.bf16.mxu0 %v8402_v20  ;;  %v8466_v19 = vld [vmem:[%s12652_s1 + $0xe84] ss:$16 sps:$4 sm:$0xff]   ;;  %v8461_v20 = vld [vmem:[%s12652_s1 + $0xc80] ss:$16 sps:$4 sm:$0xff]  }
  0xa5   :  { %5746 = vmatprep.subr.bf16.mxu1 %v8405_v21  ;;  %v8464_v21 = vld [vmem:[%s12652_s1 + $0xe80] ss:$16 sps:$4 sm:$0xff]  }
  0xa7   :  { %5706 = vmatpush2.bf16.msra.mxu0 %v8400_v22  ;;  %v8469_v22 = vld [vmem:[%s12652_s1 + $0xc64] ss:$16 sps:$4 sm:$0xff]  }
  0xa8   :  { %5747 = vmatpush2.bf16.msra.mxu1 %v8403_v23  ;;  %5707 = vmatprep.subr.bf16.mxu0 %v8408_v24  ;;  %v8472_v23 = vld [vmem:[%s12652_s1 + $0xe64] ss:$16 sps:$4 sm:$0xff]   ;;  %v8467_v24 = vld [vmem:[%s12652_s1 + $0xc60] ss:$16 sps:$4 sm:$0xff]  }
  0xa9   :  { %5748 = vmatprep.subr.bf16.mxu1 %v8411_v25  ;;  %v8470_v25 = vld [vmem:[%s12652_s1 + $0xe60] ss:$16 sps:$4 sm:$0xff]  }
  0xab   :  { %5708 = vmatpush2.bf16.msra.mxu0 %v8406_v26  ;;  %v8475_v26 = vld [vmem:[%s12652_s1 + $0xc44] ss:$16 sps:$4 sm:$0xff]  }
  0xac   :  { %5749 = vmatpush2.bf16.msra.mxu1 %v8409_v27  ;;  %5709 = vmatprep.subr.bf16.mxu0 %v8414_v28  ;;  %v8478_v27 = vld [vmem:[%s12652_s1 + $0xe44] ss:$16 sps:$4 sm:$0xff]   ;;  %v8473_v28 = vld [vmem:[%s12652_s1 + $0xc40] ss:$16 sps:$4 sm:$0xff]  }
  0xad   :  { %5750 = vmatprep.subr.bf16.mxu1 %v8417_v29  ;;  %v8476_v29 = vld [vmem:[%s12652_s1 + $0xe40] ss:$16 sps:$4 sm:$0xff]  }
  0xaf   :  { %5710 = vmatpush2.bf16.msra.mxu0 %v8412_v30  ;;  %v8481_v30 = vld [vmem:[%s12652_s1 + $0xc24] ss:$16 sps:$4 sm:$0xff]  }
  0xb0   :  { %5751 = vmatpush2.bf16.msra.mxu1 %v8415_v31  ;;  %5711 = vmatprep.subr.bf16.mxu0 %v8420_v34  ;;  %v8484_v31 = vld [vmem:[%s12652_s1 + $0xe24] ss:$16 sps:$4 sm:$0xff]   ;;  %v8479_v34 = vld [vmem:[%s12652_s1 + $0xc20] ss:$16 sps:$4 sm:$0xff]  }
  0xb1   :  { %5752 = vmatprep.subr.bf16.mxu1 %v8423_v35  ;;  %v8482_v35 = vld [vmem:[%s12652_s1 + $0xe20] ss:$16 sps:$4 sm:$0xff]  }
  0xb3   :  { %5712 = vmatpush2.bf16.msra.mxu0 %v8418_v36  ;;  %v8487_v36 = vld [vmem:[%s12652_s1 + $0xc04] ss:$16 sps:$4 sm:$0xff]  }
  0xb4   :  { %5753 = vmatpush2.bf16.msra.mxu1 %v8421_v37  ;;  %5713 = vmatprep.subr.bf16.mxu0 %v8426_v38  ;;  %v8490_v37 = vld [vmem:[%s12652_s1 + $0xe04] ss:$16 sps:$4 sm:$0xff]   ;;  %v8485_v38 = vld [vmem:[%s12652_s1 + $0xc00] ss:$16 sps:$4 sm:$0xff]  }
  0xb5   :  { %5754 = vmatprep.subr.bf16.mxu1 %v8429_v40  ;;  %v8488_v40 = vld [vmem:[%s12652_s1 + $0xe00] ss:$16 sps:$4 sm:$0xff]  }
  0xb7   :  { %5714 = vmatpush2.bf16.msra.mxu0 %v8424_v41  ;;  %v8493_v41 = vld [vmem:[%s12652_s1 + $0xde4] ss:$16 sps:$4 sm:$0xff]  }
  0xb8   :  { %5755 = vmatpush2.bf16.msra.mxu1 %v8427_v45  ;;  %5715 = vmatprep.subr.bf16.mxu0 %v8432_v46  ;;  %v8491_v45 = vld [vmem:[%s12652_s1 + $0xde0] ss:$16 sps:$4 sm:$0xff]  }
  0xb9   :  { %5756 = vmatprep.subr.bf16.mxu1 %v8435_v47  ;;  %v8494_v46 = vld [vmem:[%s12652_s1 + $0xfe0] ss:$16 sps:$4 sm:$0xff]   ;;  %v8499_v47 = vld [vmem:[%s12652_s1 + $0xdc4] ss:$16 sps:$4 sm:$0xff]  }
  0xbb   :  { %5716 = vmatpush2.bf16.msra.mxu0 %v8430_v51  ;;  %v8497_v51 = vld [vmem:[%s12652_s1 + $0xdc0] ss:$16 sps:$4 sm:$0xff]  }
  0xbc   :  { %5757 = vmatpush2.bf16.msra.mxu1 %v8433_v54  ;;  %5717 = vmatprep.subr.bf16.mxu0 %v8438_v55  ;;  %v8500_v54 = vld [vmem:[%s12652_s1 + $0xfc0] ss:$16 sps:$4 sm:$0xff]   ;;  %v8505_v55 = vld [vmem:[%s12652_s1 + $0xda4] ss:$16 sps:$4 sm:$0xff]  }
  0xbd   :  { %5758 = vmatprep.subr.bf16.mxu1 %v8441_v56  ;;  %v8508_v56 = vld [vmem:[%s12652_s1 + $0xfa4] ss:$16 sps:$4 sm:$0xff]  }
  0xbf   :  { %5718 = vmatpush2.bf16.msra.mxu0 %v8436_v60  ;;  %v8503_v60 = vld [vmem:[%s12652_s1 + $0xda0] ss:$16 sps:$4 sm:$0xff]  }
  0xc0   :  { %5759 = vmatpush2.bf16.msra.mxu1 %v8439_v61  ;;  %5769 = vmatprep.subr.bf16.mxu0 %v8445_v63  ;;  %v8506_v61 = vld [vmem:[%s12652_s1 + $0xfa0] ss:$16 sps:$4 sm:$0xff]   ;;  %v8511_v63 = vld [vmem:[%s12652_s1 + $0xd84] ss:$16 sps:$4 sm:$0xff]  }
  0xc1   :  { %5810 = vmatprep.subr.bf16.mxu1 %v8448_v0  ;;  %v8514_v0 = vld [vmem:[%s12652_s1 + $0xf84] ss:$16 sps:$4 sm:$0xff]  }
  0xc2   :  { %5720 = vmatmul.mubr.bf16.vlgmr.msra.gmra.mxu0 %v10253_v4 }
  0xc3   :  { %5761 = vmatmul.mubr.bf16.vlgmr.msra.gmra.mxu1 %v10257_v5  ;;  %5770 = vmatpush1.bf16.msra.mxu0 %v8443_v6  ;;  %v8517_v6 = vld [vmem:[%s12652_s1 + $0xd64] ss:$16 sps:$4 sm:$0xff]  }
  0xc4   :  { %5811 = vmatpush1.bf16.msra.mxu1 %v8446_v7  ;;  %5771 = vmatprep.subr.bf16.mxu0 %v8451_v39  ;;  %v8520_v7 = vld [vmem:[%s12652_s1 + $0xf64] ss:$16 sps:$4 sm:$0xff]   ;;  %v8515_v39 = vld [vmem:[%s12652_s1 + $0xd60] ss:$16 sps:$4 sm:$0xff]  }
  0xc5   :  { %5812 = vmatprep.subr.bf16.mxu1 %v8454_v44  ;;  %5801 = vmatprep.mubr.bf16.mxu0 %v10271_v8  ;;  %v8518_v44 = vld [vmem:[%s12652_s1 + $0xf60] ss:$16 sps:$4 sm:$0xff]  }
  0xc6   :  { %5842 = vmatprep.mubr.bf16.mxu1 %v10273_v9 }
  0xc7   :  { %5772 = vmatpush1.bf16.msra.mxu0 %v8449_v10  ;;  %v8523_v10 = vld [vmem:[%s12652_s1 + $0xd44] ss:$16 sps:$4 sm:$0xff]  }
  0xc8   :  { %5813 = vmatpush1.bf16.msra.mxu1 %v8452_v11  ;;  %5773 = vmatprep.subr.bf16.mxu0 %v8457_v12  ;;  %v8526_v11 = vld [vmem:[%s12652_s1 + $0xf44] ss:$16 sps:$4 sm:$0xff]  }
  0xc9   :  { %5814 = vmatprep.subr.bf16.mxu1 %v8460_v13  ;;  %v32_v12 = vld [vmem:[%s12651_s0 + $0x20] sm:$0xff] }
  0xca   :  { %v8521_v13 = vld [vmem:[%s12652_s1 + $0xd40] ss:$16 sps:$4 sm:$0xff]  }
  0xcb   :  { %5774 = vmatpush1.bf16.msra.mxu0 %v8455_v14  ;;  %v8524_v14 = vld [vmem:[%s12652_s1 + $0xf40] ss:$16 sps:$4 sm:$0xff]  }
  0xcc   :  { %5815 = vmatpush1.bf16.msra.mxu1 %v8458_v15  ;;  %5775 = vmatprep.subr.bf16.mxu0 %v8463_v18  ;;  %v8529_v15 = vld [vmem:[%s12652_s1 + $0xd24] ss:$16 sps:$4 sm:$0xff]  }
  0xcd   :  { %5816 = vmatprep.subr.bf16.mxu1 %v8466_v19  ;;  %v8532_v18 = vld [vmem:[%s12652_s1 + $0xf24] ss:$16 sps:$4 sm:$0xff]   ;;  %v110_v19 = vcombine.high %v32_v12, %v32_v12 }
  0xcf   :  { %5776 = vmatpush1.bf16.msra.mxu0 %v8461_v20  ;;  %v8527_v20 = vld [vmem:[%s12652_s1 + $0xd20] ss:$16 sps:$4 sm:$0xff]  }
  0xd0   :  { %5817 = vmatpush1.bf16.msra.mxu1 %v8464_v21  ;;  %5777 = vmatprep.subr.bf16.mxu0 %v8469_v22  ;;  %v8530_v21 = vld [vmem:[%s12652_s1 + $0xf20] ss:$16 sps:$4 sm:$0xff]   ;;  %v8535_v22 = vld [vmem:[%s12652_s1 + $0xd04] ss:$16 sps:$4 sm:$0xff]  }
  0xd1   :  { %5818 = vmatprep.subr.bf16.mxu1 %v8472_v23  ;;  %v8538_v23 = vld [vmem:[%s12652_s1 + $0xf04] ss:$16 sps:$4 sm:$0xff]  }
  0xd3   :  { %5778 = vmatpush1.bf16.msra.mxu0 %v8467_v24  ;;  %v10451_v24 = vrot.slane %v32_v12, %v9721_v49 }
  0xd4   :  { %5819 = vmatpush1.bf16.msra.mxu1 %v8470_v25  ;;  %5779 = vmatprep.subr.bf16.mxu0 %v8475_v26  ;;  %v10454_v25 = vrot.slane %v110_v19, %v9721_v49  ;;  %v8533_v26 = vld [vmem:[%s12652_s1 + $0xd00] ss:$16 sps:$4 sm:$0xff]   ;;  %v8566_v19 = vld [vmem:[%s12652_s1 + $0x1064] ss:$16 sps:$4 sm:$0xff]  }
  0xd5   :  { %5820 = vmatprep.subr.bf16.mxu1 %v8478_v27  ;;  %v8536_v27 = vld [vmem:[%s12652_s1 + $0xf00] ss:$16 sps:$4 sm:$0xff]  }
  0xd7   :  { %5780 = vmatpush1.bf16.msra.mxu0 %v8473_v28  ;;  %v1097_v28 = vld [vmem:[%s12653_s2] sm:$0xf] }
  0xd8   :  { %5821 = vmatpush1.bf16.msra.mxu1 %v8476_v29  ;;  %5781 = vmatprep.subr.bf16.mxu0 %v8481_v30  ;;  %v1101_v29 = vsub.s32 0, %v9703_v43  ;;  %v8542_v30 = vld [vmem:[%s12652_s1 + $0x10e4] ss:$16 sps:$4 sm:$0xff]  }
  0xd9   :  { %5822 = vmatprep.subr.bf16.mxu1 %v8484_v31  ;;  %v8545_v31 = vld [vmem:[%s12652_s1 + $0x12e4] ss:$16 sps:$4 sm:$0xff]  }
  0xdb   :  { %5782 = vmatpush1.bf16.msra.mxu0 %v8479_v34  ;;  %v1105_v34 = vsub.s32 1, %v9703_v43 }
  0xdc   :  { %5823 = vmatpush1.bf16.msra.mxu1 %v8482_v35  ;;  %5783 = vmatprep.subr.bf16.mxu0 %v8487_v36  ;;  %v125_v35 = vcombine.high %v10451_v24, %v10451_v24  ;;  %v126_v36 = vcombine.high %v10454_v25, %v10454_v25 }
  0xdd   :  { %5824 = vmatprep.subr.bf16.mxu1 %v8490_v37  ;;  %v10479_v37 = vpack.c.bf16 %v10230_v58, %v10230_v58  ;;  %v8548_v58 = vld [vmem:[%s12652_s1 + $0x10c4] ss:$16 sps:$4 sm:$0xff]  }
  0xdf   :  { %5784 = vmatpush1.bf16.msra.mxu0 %v8485_v38  ;;  %v10483_v38 = vpack.c.bf16 %v10233_v59, %v10233_v59  ;;  %v8551_v59 = vld [vmem:[%s12652_s1 + $0x12c4] ss:$16 sps:$4 sm:$0xff]  }
  0xe0   :  { %5825 = vmatpush1.bf16.msra.mxu1 %v8488_v40  ;;  %5785 = vmatprep.subr.bf16.mxu0 %v8493_v41  ;;  %v1102_v40 = vrot.slane %v1097_v28, %v1101_v29  ;;  %v8540_v41 = vld [vmem:[%s12652_s1 + $0x10e0] ss:$16 sps:$4 sm:$0xff]   ;;  %v8578_v29 = vld [vmem:[%s12652_s1 + $0x1024] ss:$16 sps:$4 sm:$0xff]  }
  0xe1   :  { %5826 = vmatprep.subr.bf16.mxu1 %v8496_v42  ;;  %v8543_v42 = vld [vmem:[%s12652_s1 + $0x12e0] ss:$16 sps:$4 sm:$0xff]  }
  0xe3   :  { %5786 = vmatpush2.bf16.msra.mxu0 %v8491_v45  ;;  %v1106_v45 = vrot.slane %v1097_v28, %v1105_v34  ;;  %v8573_v28 = vld [vmem:[%s12652_s1 + $0x1240] ss:$16 sps:$4 sm:$0xff]  }
  0xe4   :  { %5827 = vmatpush2.bf16.msra.mxu1 %v8494_v46  ;;  %5787 = vmatprep.subr.bf16.mxu0 %v8499_v47  ;;  %v10497_v46 = vpack.c.bf16 %v125_v35, %v125_v35  ;;  %v10499_v47 = vpack.c.bf16 %v126_v36, %v126_v36  ;;  %v8579_v34 = vld [vmem:[%s12652_s1 + $0x1220] ss:$16 sps:$4 sm:$0xff]   ;;  %v8584_v35 = vld [vmem:[%s12652_s1 + $0x1004] ss:$16 sps:$4 sm:$0xff]  }
  0xe5   :  { %5828 = vmatprep.subr.bf16.mxu1 %v8502_v50  ;;  %v8587_v36 = vld [vmem:[%s12652_s1 + $0x1204] ss:$16 sps:$4 sm:$0xff]  }
  0xe7   :  { %5788 = vmatpush2.bf16.msra.mxu0 %v8497_v51 }
  0xe8   :  { %5829 = vmatpush2.bf16.msra.mxu1 %v8500_v54  ;;  %5789 = vmatprep.subr.bf16.mxu0 %v8505_v55  ;;  %v8546_v54 = vld [vmem:[%s12652_s1 + $0x10c0] ss:$16 sps:$4 sm:$0xff]  }
  0xe9   :  { %5830 = vmatprep.subr.bf16.mxu1 %v8508_v56  ;;  %v8549_v56 = vld [vmem:[%s12652_s1 + $0x12c0] ss:$16 sps:$4 sm:$0xff]  }
  0xeb   :  { %5790 = vmatpush2.bf16.msra.mxu0 %v8503_v60  ;;  %v8554_v60 = vld [vmem:[%s12652_s1 + $0x10a4] ss:$16 sps:$4 sm:$0xff]  }
  0xec   :  { %5831 = vmatpush2.bf16.msra.mxu1 %v8506_v61  ;;  %5791 = vmatprep.subr.bf16.mxu0 %v8511_v63 }
  0xed   :  { %5832 = vmatprep.subr.bf16.mxu1 %v8514_v0  ;;  %v8557_v0 = vld [vmem:[%s12652_s1 + $0x12a4] ss:$16 sps:$4 sm:$0xff]  }
  0xef   :  { %5792 = vmatpush2.bf16.msra.mxu0 %v8509_v1 }
  0xf0   :  { %5833 = vmatpush2.bf16.msra.mxu1 %v8512_v2  ;;  %5793 = vmatprep.subr.bf16.mxu0 %v8517_v6 }
  0xf1   :  { %5834 = vmatprep.subr.bf16.mxu1 %v8520_v7 }
  0xf3   :  { %5794 = vmatpush2.bf16.msra.mxu0 %v8515_v39  ;;  %v8552_v39 = vld [vmem:[%s12652_s1 + $0x10a0] ss:$16 sps:$4 sm:$0xff]  }
  0xf4   :  { %5835 = vmatpush2.bf16.msra.mxu1 %v8518_v44  ;;  %5795 = vmatprep.subr.bf16.mxu0 %v8523_v10  ;;  %v8555_v44 = vld [vmem:[%s12652_s1 + $0x12a0] ss:$16 sps:$4 sm:$0xff]  }
  0xf5   :  { %5836 = vmatprep.subr.bf16.mxu1 %v8526_v11 }
  0xf7   :  { %5796 = vmatpush2.bf16.msra.mxu0 %v8521_v13  ;;  %v8560_v13 = vld [vmem:[%s12652_s1 + $0x1084] ss:$16 sps:$4 sm:$0xff]  }
  0xf8   :  { %5837 = vmatpush2.bf16.msra.mxu1 %v8524_v14  ;;  %5797 = vmatprep.subr.bf16.mxu0 %v8529_v15  ;;  %v8563_v14 = vld [vmem:[%s12652_s1 + $0x1284] ss:$16 sps:$4 sm:$0xff]   ;;  %v8558_v15 = vld [vmem:[%s12652_s1 + $0x1080] ss:$16 sps:$4 sm:$0xff]  }
  0xf9   :  { %5838 = vmatprep.subr.bf16.mxu1 %v8532_v18  ;;  %v8561_v18 = vld [vmem:[%s12652_s1 + $0x1280] ss:$16 sps:$4 sm:$0xff]  }
  0xfb   :  { %5798 = vmatpush2.bf16.msra.mxu0 %v8527_v20  ;;  %v8569_v20 = vld [vmem:[%s12652_s1 + $0x1264] ss:$16 sps:$4 sm:$0xff]  }
  0xfc   :  { %5839 = vmatpush2.bf16.msra.mxu1 %v8530_v21  ;;  %5799 = vmatprep.subr.bf16.mxu0 %v8535_v22  ;;  %v8564_v21 = vld [vmem:[%s12652_s1 + $0x1060] ss:$16 sps:$4 sm:$0xff]  }
  0xfd   :  { %5840 = vmatprep.subr.bf16.mxu1 %v8538_v23  ;;  %v8567_v22 = vld [vmem:[%s12652_s1 + $0x1260] ss:$16 sps:$4 sm:$0xff]   ;;  %v8572_v23 = vld [vmem:[%s12652_s1 + $0x1044] ss:$16 sps:$4 sm:$0xff]  }
  0xff   :  { %5800 = vmatpush2.bf16.msra.mxu0 %v8533_v26  ;;  %v8575_v26 = vld [vmem:[%s12652_s1 + $0x1244] ss:$16 sps:$4 sm:$0xff]  }
 0x100   :  { %5841 = vmatpush2.bf16.msra.mxu1 %v8536_v27  ;;  %5851 = vmatprep.subr.bf16.mxu0 %v8542_v30  ;;  %v8570_v27 = vld [vmem:[%s12652_s1 + $0x1040] ss:$16 sps:$4 sm:$0xff]   ;;  %v8581_v30 = vld [vmem:[%s12652_s1 + $0x1224] ss:$16 sps:$4 sm:$0xff]  }
 0x101   :  { %5892 = vmatprep.subr.bf16.mxu1 %v8545_v31  ;;  %v8576_v31 = vld [vmem:[%s12652_s1 + $0x1020] ss:$16 sps:$4 sm:$0xff]  }
 0x102   :  { %v5557_v50 = vpop.f32.mrf.mxu0  ;;  %5802 = vmatmul.mubr.bf16.vlgmr.msra.gmra.mxu0 %v10479_v37 }
 0x103   :  { %v5598_v51 = vpop.f32.mrf.mxu1  ;;  %5843 = vmatmul.mubr.bf16.vlgmr.msra.gmra.mxu1 %v10483_v38  ;;  %v5558_v55 = vadd.f32 %v5557_v50, %v1102_v40  ;;  %5852 = vmatpush1.bf16.msra.mxu0 %v8540_v41  ;;  %v8582_v40 = vld [vmem:[%s12652_s1 + $0x1000] ss:$16 sps:$4 sm:$0xff]   ;;  %v8596_v50 = vld [vmem:[%s12652_s1 + $0x11c4] ss:$16 sps:$4 sm:$0xff]  }
 0x104   :  { %5893 = vmatpush1.bf16.msra.mxu1 %v8543_v42  ;;  %v5559_v61 = vpop.f32.mrf.mxu0  ;;  %5853 = vmatprep.subr.bf16.mxu0 %v8548_v58  ;;  %v8585_v41 = vld [vmem:[%s12652_s1 + $0x1200] ss:$16 sps:$4 sm:$0xff]   ;;  %v8590_v42 = vld [vmem:[%s12652_s1 + $0x11e4] ss:$16 sps:$4 sm:$0xff]  }
 0x105   :  { %v5600_v63 = vpop.f32.mrf.mxu1  ;;  %5894 = vmatprep.subr.bf16.mxu1 %v8551_v59  ;;  %v10515_v1 = vadd.f32 %v5598_v51, %v5558_v55  ;;  %v5560_v2 = vadd.f32 %v5559_v61, %v1106_v45  ;;  %5883 = vmatprep.mubr.bf16.mxu0 %v10497_v46  ;;  %v8593_v58 = vld [vmem:[%s12652_s1 + $0x13e4] ss:$16 sps:$4 sm:$0xff]   ;;  %v8588_v59 = vld [vmem:[%s12652_s1 + $0x11e0] ss:$16 sps:$4 sm:$0xff]  }
 0x106   :  { %5924 = vmatprep.mubr.bf16.mxu1 %v10499_v47  ;;  %v5561_v6 = vpop.f32.mrf.mxu0  ;;  %v8591_v45 = vld [vmem:[%s12652_s1 + $0x13e0] ss:$16 sps:$4 sm:$0xff]   ;;  %v8599_v51 = vld [vmem:[%s12652_s1 + $0x13c4] ss:$16 sps:$4 sm:$0xff]  }
 0x107   :  { %v5602_v7 = vpop.f32.mrf.mxu1  ;;  %v10525_v10 = vadd.f32 %v5600_v63, %v5560_v2  ;;  %5854 = vmatpush1.bf16.msra.mxu0 %v8546_v54  ;;  %v8594_v54 = vld [vmem:[%s12652_s1 + $0x11c0] ss:$16 sps:$4 sm:$0xff]   ;;  %v8611_v2 = vld [vmem:[%s12652_s1 + $0x1384] ss:$16 sps:$4 sm:$0xff]  }
 0x108   :  { %5895 = vmatpush1.bf16.msra.mxu1 %v8549_v56  ;;  %v5562_v11 = vpop.f32.mrf.mxu0  ;;  %5855 = vmatprep.subr.bf16.mxu0 %v8554_v60  ;;  %v8597_v55 = vld [vmem:[%s12652_s1 + $0x13c0] ss:$16 sps:$4 sm:$0xff]   ;;  %v8602_v56 = vld [vmem:[%s12652_s1 + $0x11a4] ss:$16 sps:$4 sm:$0xff]  }
 0x109   :  { %v5603_v12 = vpop.f32.mrf.mxu1  ;;  %5896 = vmatprep.subr.bf16.mxu1 %v8557_v0  ;;  %v8605_v60 = vld [vmem:[%s12652_s1 + $0x13a4] ss:$16 sps:$4 sm:$0xff]   ;;  %v8600_v61 = vld [vmem:[%s12652_s1 + $0x11a0] ss:$16 sps:$4 sm:$0xff]  }
 0x10a   :  { %v8603_v63 = vld [vmem:[%s12652_s1 + $0x13a0] ss:$16 sps:$4 sm:$0xff]   ;;  %v8608_v0 = vld [vmem:[%s12652_s1 + $0x1184] ss:$16 sps:$4 sm:$0xff]  }
 0x10b   :  { %5856 = vmatpush1.bf16.msra.mxu0 %v8552_v39  ;;  %v8606_v6 = vld [vmem:[%s12652_s1 + $0x1180] ss:$16 sps:$4 sm:$0xff]   ;;  %v8614_v39 = vld [vmem:[%s12652_s1 + $0x1164] ss:$16 sps:$4 sm:$0xff]  }
 0x10c   :  { %5897 = vmatpush1.bf16.msra.mxu1 %v8555_v44  ;;  %5857 = vmatprep.subr.bf16.mxu0 %v8560_v13  ;;  %v8609_v7 = vld [vmem:[%s12652_s1 + $0x1380] ss:$16 sps:$4 sm:$0xff]   ;;  %v8617_v44 = vld [vmem:[%s12652_s1 + $0x1364] ss:$16 sps:$4 sm:$0xff]  }
 0x10d   :  { %5898 = vmatprep.subr.bf16.mxu1 %v8563_v14  ;;  %v8612_v11 = vld [vmem:[%s12652_s1 + $0x1160] ss:$16 sps:$4 sm:$0xff]   ;;  %v8620_v13 = vld [vmem:[%s12652_s1 + $0x1144] ss:$16 sps:$4 sm:$0xff]  }
 0x10e   :  { %v8615_v12 = vld [vmem:[%s12652_s1 + $0x1360] ss:$16 sps:$4 sm:$0xff]   ;;  %v8623_v14 = vld [vmem:[%s12652_s1 + $0x1344] ss:$16 sps:$4 sm:$0xff]  }
 0x10f   :  { %5858 = vmatpush1.bf16.msra.mxu0 %v8558_v15  ;;  %v33_v15 = vld [vmem:[%s12651_s0 + $0x28] sm:$0xff] }
 0x110   :  { %5899 = vmatpush1.bf16.msra.mxu1 %v8561_v18  ;;  %5859 = vmatprep.subr.bf16.mxu0 %v8566_v19  ;;  %v8618_v18 = vld [vmem:[%s12652_s1 + $0x1140] ss:$16 sps:$4 sm:$0xff]  }
 0x111   :  { %5900 = vmatprep.subr.bf16.mxu1 %v8569_v20  ;;  %v8621_v19 = vld [vmem:[%s12652_s1 + $0x1340] ss:$16 sps:$4 sm:$0xff]   ;;  %v8626_v20 = vld [vmem:[%s12652_s1 + $0x1124] ss:$16 sps:$4 sm:$0xff]  }
 0x113   :  { %5860 = vmatpush1.bf16.msra.mxu0 %v8564_v21  ;;  %v8629_v21 = vld [vmem:[%s12652_s1 + $0x1324] ss:$16 sps:$4 sm:$0xff]  }
 0x114   :  { %5901 = vmatpush1.bf16.msra.mxu1 %v8567_v22  ;;  %5861 = vmatprep.subr.bf16.mxu0 %v8572_v23  ;;  %v127_v22 = vcombine.high %v33_v15, %v33_v15  ;;  %v8624_v23 = vld [vmem:[%s12652_s1 + $0x1120] ss:$16 sps:$4 sm:$0xff]  }
 0x115   :  { %5902 = vmatprep.subr.bf16.mxu1 %v8575_v26  ;;  %v8627_v26 = vld [vmem:[%s12652_s1 + $0x1320] ss:$16 sps:$4 sm:$0xff]  }
 0x117   :  { %5862 = vmatpush1.bf16.msra.mxu0 %v8570_v27  ;;  %v8632_v27 = vld [vmem:[%s12652_s1 + $0x1104] ss:$16 sps:$4 sm:$0xff]  }
 0x118   :  { %5903 = vmatpush1.bf16.msra.mxu1 %v8573_v28  ;;  %5863 = vmatprep.subr.bf16.mxu0 %v8578_v29  ;;  %v8635_v28 = vld [vmem:[%s12652_s1 + $0x1304] ss:$16 sps:$4 sm:$0xff]   ;;  %v10681_v29 = vrot.slane %v33_v15, %v9721_v49 }
 0x119   :  { %5904 = vmatprep.subr.bf16.mxu1 %v8581_v30  ;;  %v10684_v30 = vrot.slane %v127_v22, %v9721_v49  ;;  %v8657_v15 = vld [vmem:[%s12652_s1 + $0x1484] ss:$16 sps:$4 sm:$0xff]  }
 0x11a   :  { %v8666_v22 = vld [vmem:[%s12652_s1 + $0x1664] ss:$16 sps:$4 sm:$0xff]  }
 0x11b   :  { %5864 = vmatpush1.bf16.msra.mxu0 %v8576_v31  ;;  %v8630_v31 = vld [vmem:[%s12652_s1 + $0x1100] ss:$16 sps:$4 sm:$0xff]  }
 0x11c   :  { %5905 = vmatpush1.bf16.msra.mxu1 %v8579_v34  ;;  %5865 = vmatprep.subr.bf16.mxu0 %v8584_v35  ;;  %v8633_v34 = vld [vmem:[%s12652_s1 + $0x1300] ss:$16 sps:$4 sm:$0xff]   ;;  %v8639_v35 = vld [vmem:[%s12652_s1 + $0x14e4] ss:$16 sps:$4 sm:$0xff]  }
 0x11d   :  { %5906 = vmatprep.subr.bf16.mxu1 %v8587_v36  ;;  %v8642_v36 = vld [vmem:[%s12652_s1 + $0x16e4] ss:$16 sps:$4 sm:$0xff]  }
 0x11f   :  { %5866 = vmatpush1.bf16.msra.mxu0 %v8582_v40  ;;  %v8637_v40 = vld [vmem:[%s12652_s1 + $0x14e0] ss:$16 sps:$4 sm:$0xff]  }
 0x120   :  { %5907 = vmatpush1.bf16.msra.mxu1 %v8585_v41  ;;  %5867 = vmatprep.subr.bf16.mxu0 %v8590_v42  ;;  %v8640_v41 = vld [vmem:[%s12652_s1 + $0x16e0] ss:$16 sps:$4 sm:$0xff]   ;;  %v142_v42 = vcombine.high %v10681_v29, %v10681_v29 }
 0x121   :  { %5908 = vmatprep.subr.bf16.mxu1 %v8593_v58  ;;  %v143_v58 = vcombine.high %v10684_v30, %v10684_v30 }
 0x123   :  { %5868 = vmatpush2.bf16.msra.mxu0 %v8588_v59  ;;  %v10710_v59 = vpack.c.bf16 %v10451_v24, %v10451_v24  ;;  %v8643_v24 = vld [vmem:[%s12652_s1 + $0x14c0] ss:$16 sps:$4 sm:$0xff]  }
 0x124   :  { %5909 = vmatpush2.bf16.msra.mxu1 %v8591_v45  ;;  %5869 = vmatprep.subr.bf16.mxu0 %v8596_v50  ;;  %v10714_v45 = vpack.c.bf16 %v10454_v25, %v10454_v25  ;;  %v8645_v50 = vld [vmem:[%s12652_s1 + $0x14c4] ss:$16 sps:$4 sm:$0xff]   ;;  %v8646_v25 = vld [vmem:[%s12652_s1 + $0x16c0] ss:$16 sps:$4 sm:$0xff]  }
 0x125   :  { %5910 = vmatprep.subr.bf16.mxu1 %v8599_v51  ;;  %v8648_v51 = vld [vmem:[%s12652_s1 + $0x16c4] ss:$16 sps:$4 sm:$0xff]  }
 0x127   :  { %5870 = vmatpush2.bf16.msra.mxu0 %v8594_v54  ;;  %v10728_v54 = vpack.c.bf16 %v142_v42, %v142_v42  ;;  %v8681_v42 = vld [vmem:[%s12652_s1 + $0x1404] ss:$16 sps:$4 sm:$0xff]  }
 0x128   :  { %5911 = vmatpush2.bf16.msra.mxu1 %v8597_v55  ;;  %5871 = vmatprep.subr.bf16.mxu0 %v8602_v56  ;;  %v10730_v55 = vpack.c.bf16 %v143_v58, %v143_v58  ;;  %v8684_v58 = vld [vmem:[%s12652_s1 + $0x1604] ss:$16 sps:$4 sm:$0xff]  }
 0x129   :  { %5912 = vmatprep.subr.bf16.mxu1 %v8605_v60 }
 0x12b   :  { %5872 = vmatpush2.bf16.msra.mxu0 %v8600_v61 }
 0x12c   :  { %5913 = vmatpush2.bf16.msra.mxu1 %v8603_v63  ;;  %5873 = vmatprep.subr.bf16.mxu0 %v8608_v0 }
 0x12d   :  { %5914 = vmatprep.subr.bf16.mxu1 %v8611_v2  ;;  %v8651_v2 = vld [vmem:[%s12652_s1 + $0x14a4] ss:$16 sps:$4 sm:$0xff]  }
 0x12f   :  { %5874 = vmatpush2.bf16.msra.mxu0 %v8606_v6  ;;  %v8654_v6 = vld [vmem:[%s12652_s1 + $0x16a4] ss:$16 sps:$4 sm:$0xff]  }
 0x130   :  { %5915 = vmatpush2.bf16.msra.mxu1 %v8609_v7  ;;  %5875 = vmatprep.subr.bf16.mxu0 %v8614_v39 }
 0x131   :  { %5916 = vmatprep.subr.bf16.mxu1 %v8617_v44  ;;  %v8652_v44 = vld [vmem:[%s12652_s1 + $0x16a0] ss:$16 sps:$4 sm:$0xff]  }
 0x133   :  { %5876 = vmatpush2.bf16.msra.mxu0 %v8612_v11 }
 0x134   :  { %5917 = vmatpush2.bf16.msra.mxu1 %v8615_v12  ;;  %5877 = vmatprep.subr.bf16.mxu0 %v8620_v13 }
 0x135   :  { %5918 = vmatprep.subr.bf16.mxu1 %v8623_v14 }
 0x137   :  { %5878 = vmatpush2.bf16.msra.mxu0 %v8618_v18  ;;  %v8660_v18 = vld [vmem:[%s12652_s1 + $0x1684] ss:$16 sps:$4 sm:$0xff]  }
 0x138   :  { %5919 = vmatpush2.bf16.msra.mxu1 %v8621_v19  ;;  %5879 = vmatprep.subr.bf16.mxu0 %v8626_v20  ;;  %v8655_v19 = vld [vmem:[%s12652_s1 + $0x1480] ss:$16 sps:$4 sm:$0xff]  }
 0x139   :  { %5920 = vmatprep.subr.bf16.mxu1 %v8629_v21  ;;  %v8658_v20 = vld [vmem:[%s12652_s1 + $0x1680] ss:$16 sps:$4 sm:$0xff]   ;;  %v8663_v21 = vld [vmem:[%s12652_s1 + $0x1464] ss:$16 sps:$4 sm:$0xff]  }
 0x13b   :  { %5880 = vmatpush2.bf16.msra.mxu0 %v8624_v23  ;;  %v8661_v23 = vld [vmem:[%s12652_s1 + $0x1460] ss:$16 sps:$4 sm:$0xff]  }
 0x13c   :  { %5921 = vmatpush2.bf16.msra.mxu1 %v8627_v26  ;;  %5881 = vmatprep.subr.bf16.mxu0 %v8632_v27  ;;  %v8664_v26 = vld [vmem:[%s12652_s1 + $0x1660] ss:$16 sps:$4 sm:$0xff]   ;;  %v8669_v27 = vld [vmem:[%s12652_s1 + $0x1444] ss:$16 sps:$4 sm:$0xff]  }
 0x13d   :  { %5922 = vmatprep.subr.bf16.mxu1 %v8635_v28  ;;  %v8672_v28 = vld [vmem:[%s12652_s1 + $0x1644] ss:$16 sps:$4 sm:$0xff]  }
 0x13f   :  { %5882 = vmatpush2.bf16.msra.mxu0 %v8630_v31  ;;  %v8667_v31 = vld [vmem:[%s12652_s1 + $0x1440] ss:$16 sps:$4 sm:$0xff]  }
 0x140   :  { %5923 = vmatpush2.bf16.msra.mxu1 %v8633_v34  ;;  %5933 = vmatprep.subr.bf16.mxu0 %v8639_v35  ;;  %v8670_v34 = vld [vmem:[%s12652_s1 + $0x1640] ss:$16 sps:$4 sm:$0xff]   ;;  %v8675_v35 = vld [vmem:[%s12652_s1 + $0x1424] ss:$16 sps:$4 sm:$0xff]  }
 0x141   :  { %5974 = vmatprep.subr.bf16.mxu1 %v8642_v36  ;;  %v8678_v36 = vld [vmem:[%s12652_s1 + $0x1624] ss:$16 sps:$4 sm:$0xff]  }
 0x142   :  { %v5639_v56 = vpop.f32.mrf.mxu0  ;;  %5884 = vmatmul.mubr.bf16.vlgmr.msra.gmra.mxu0 %v10710_v59 }
 0x143   :  { %v5680_v60 = vpop.f32.mrf.mxu1  ;;  %5925 = vmatmul.mubr.bf16.vlgmr.msra.gmra.mxu1 %v10714_v45  ;;  %v5640_v61 = vadd.f32 %v5639_v56, %v10515_v1  ;;  %5934 = vmatpush1.bf16.msra.mxu0 %v8637_v40  ;;  %v8649_v1 = vld [vmem:[%s12652_s1 + $0x14a0] ss:$16 sps:$4 sm:$0xff]  }
 0x144   :  { %5975 = vmatpush1.bf16.msra.mxu1 %v8640_v41  ;;  %v5641_v63 = vpop.f32.mrf.mxu0  ;;  %5935 = vmatprep.subr.bf16.mxu0 %v8645_v50  ;;  %v8673_v40 = vld [vmem:[%s12652_s1 + $0x1420] ss:$16 sps:$4 sm:$0xff]  }
 0x145   :  { %v5682_v0 = vpop.f32.mrf.mxu1  ;;  %5976 = vmatprep.subr.bf16.mxu1 %v8648_v51  ;;  %v10741_v7 = vadd.f32 %v5680_v60, %v5640_v61  ;;  %v5642_v39 = vadd.f32 %v5641_v63, %v10525_v10  ;;  %5965 = vmatprep.mubr.bf16.mxu0 %v10728_v54  ;;  %v8676_v41 = vld [vmem:[%s12652_s1 + $0x1620] ss:$16 sps:$4 sm:$0xff]   ;;  %v8693_v61 = vld [vmem:[%s12652_s1 + $0x15c4] ss:$16 sps:$4 sm:$0xff]  }
 0x146   :  { %6006 = vmatprep.mubr.bf16.mxu1 %v10730_v55  ;;  %v5643_v11 = vpop.f32.mrf.mxu0  ;;  %v8679_v50 = vld [vmem:[%s12652_s1 + $0x1400] ss:$16 sps:$4 sm:$0xff]   ;;  %v8696_v63 = vld [vmem:[%s12652_s1 + $0x17c4] ss:$16 sps:$4 sm:$0xff]  }
 0x147   :  { %v5684_v12 = vpop.f32.mrf.mxu1  ;;  %v10752_v13 = vadd.f32 %v5682_v0, %v5642_v39  ;;  %5936 = vmatpush1.bf16.msra.mxu0 %v8643_v24  ;;  %v8682_v51 = vld [vmem:[%s12652_s1 + $0x1600] ss:$16 sps:$4 sm:$0xff]   ;;  %v8687_v24 = vld [vmem:[%s12652_s1 + $0x15e4] ss:$16 sps:$4 sm:$0xff]  }
 0x148   :  { %5977 = vmatpush1.bf16.msra.mxu1 %v8646_v25  ;;  %v5644_v14 = vpop.f32.mrf.mxu0  ;;  %5937 = vmatprep.subr.bf16.mxu0 %v8651_v2  ;;  %v8690_v25 = vld [vmem:[%s12652_s1 + $0x17e4] ss:$16 sps:$4 sm:$0xff]   ;;  %v8685_v56 = vld [vmem:[%s12652_s1 + $0x15e0] ss:$16 sps:$4 sm:$0xff]  }
 0x149   :  { %v5685_v10 = vpop.f32.mrf.mxu1  ;;  %5978 = vmatprep.subr.bf16.mxu1 %v8654_v6  ;;  %v8688_v60 = vld [vmem:[%s12652_s1 + $0x17e0] ss:$16 sps:$4 sm:$0xff]   ;;  %v8699_v6 = vld [vmem:[%s12652_s1 + $0x15a4] ss:$16 sps:$4 sm:$0xff]  }
 0x14a   :  { %v8691_v0 = vld [vmem:[%s12652_s1 + $0x15c0] ss:$16 sps:$4 sm:$0xff]   ;;  %v8702_v39 = vld [vmem:[%s12652_s1 + $0x17a4] ss:$16 sps:$4 sm:$0xff]  }
 0x14b   :  { %5938 = vmatpush1.bf16.msra.mxu0 %v8649_v1  ;;  %v8694_v2 = vld [vmem:[%s12652_s1 + $0x17c0] ss:$16 sps:$4 sm:$0xff]   ;;  %v8705_v11 = vld [vmem:[%s12652_s1 + $0x1584] ss:$16 sps:$4 sm:$0xff]  }
 0x14c   :  { %5979 = vmatpush1.bf16.msra.mxu1 %v8652_v44  ;;  %5939 = vmatprep.subr.bf16.mxu0 %v8657_v15  ;;  %v8697_v1 = vld [vmem:[%s12652_s1 + $0x15a0] ss:$16 sps:$4 sm:$0xff]   ;;  %v8708_v12 = vld [vmem:[%s12652_s1 + $0x1784] ss:$16 sps:$4 sm:$0xff]  }
 0x14d   :  { %5980 = vmatprep.subr.bf16.mxu1 %v8660_v18  ;;  %v8700_v44 = vld [vmem:[%s12652_s1 + $0x17a0] ss:$16 sps:$4 sm:$0xff]   ;;  %v8711_v15 = vld [vmem:[%s12652_s1 + $0x1564] ss:$16 sps:$4 sm:$0xff]  }
 0x14e   :  { %v8703_v14 = vld [vmem:[%s12652_s1 + $0x1580] ss:$16 sps:$4 sm:$0xff]   ;;  %v8714_v18 = vld [vmem:[%s12652_s1 + $0x1764] ss:$16 sps:$4 sm:$0xff]  }
 0x14f   :  { %5940 = vmatpush1.bf16.msra.mxu0 %v8655_v19  ;;  %v8706_v10 = vld [vmem:[%s12652_s1 + $0x1780] ss:$16 sps:$4 sm:$0xff]  }
 0x150   :  { %5981 = vmatpush1.bf16.msra.mxu1 %v8658_v20  ;;  %5941 = vmatprep.subr.bf16.mxu0 %v8663_v21  ;;  %v8709_v19 = vld [vmem:[%s12652_s1 + $0x1560] ss:$16 sps:$4 sm:$0xff]   ;;  %v8717_v21 = vld [vmem:[%s12652_s1 + $0x1544] ss:$16 sps:$4 sm:$0xff]  }
 0x151   :  { %5982 = vmatprep.subr.bf16.mxu1 %v8666_v22  ;;  %v8712_v20 = vld [vmem:[%s12652_s1 + $0x1760] ss:$16 sps:$4 sm:$0xff]   ;;  %v8720_v22 = vld [vmem:[%s12652_s1 + $0x1744] ss:$16 sps:$4 sm:$0xff]  }
 0x153   :  { %5942 = vmatpush1.bf16.msra.mxu0 %v8661_v23  ;;  %v34_v23 = vld [vmem:[%s12651_s0 + $0x30] sm:$0xff] }
 0x154   :  { %5983 = vmatpush1.bf16.msra.mxu1 %v8664_v26  ;;  %5943 = vmatprep.subr.bf16.mxu0 %v8669_v27  ;;  %v8715_v26 = vld [vmem:[%s12652_s1 + $0x1540] ss:$16 sps:$4 sm:$0xff]  }
 0x155   :  { %5984 = vmatprep.subr.bf16.mxu1 %v8672_v28  ;;  %v8718_v27 = vld [vmem:[%s12652_s1 + $0x1740] ss:$16 sps:$4 sm:$0xff]   ;;  %v8723_v28 = vld [vmem:[%s12652_s1 + $0x1524] ss:$16 sps:$4 sm:$0xff]  }
 0x157   :  { %5944 = vmatpush1.bf16.msra.mxu0 %v8667_v31  ;;  %v8726_v31 = vld [vmem:[%s12652_s1 + $0x1724] ss:$16 sps:$4 sm:$0xff]  }
 0x158   :  { %5985 = vmatpush1.bf16.msra.mxu1 %v8670_v34  ;;  %5945 = vmatprep.subr.bf16.mxu0 %v8675_v35  ;;  %v144_v34 = vcombine.high %v34_v23, %v34_v23  ;;  %v8721_v35 = vld [vmem:[%s12652_s1 + $0x1520] ss:$16 sps:$4 sm:$0xff]  }
 0x159   :  { %5986 = vmatprep.subr.bf16.mxu1 %v8678_v36  ;;  %v8724_v36 = vld [vmem:[%s12652_s1 + $0x1720] ss:$16 sps:$4 sm:$0xff]  }
 0x15b   :  { %5946 = vmatpush1.bf16.msra.mxu0 %v8673_v40  ;;  %v8729_v40 = vld [vmem:[%s12652_s1 + $0x1504] ss:$16 sps:$4 sm:$0xff]  }
 0x15c   :  { %5987 = vmatpush1.bf16.msra.mxu1 %v8676_v41  ;;  %5947 = vmatprep.subr.bf16.mxu0 %v8681_v42  ;;  %v8732_v41 = vld [vmem:[%s12652_s1 + $0x1704] ss:$16 sps:$4 sm:$0xff]   ;;  %v10908_v42 = vrot.slane %v144_v34, %v9721_v49  ;;  %v8752_v34 = vld [vmem:[%s12652_s1 + $0x1880] ss:$16 sps:$4 sm:$0xff]  }
 0x15d   :  { %5988 = vmatprep.subr.bf16.mxu1 %v8684_v58  ;;  %v10911_v58 = vrot.slane %v34_v23, %v9721_v49  ;;  %v8739_v49 = vld [vmem:[%s12652_s1 + $0x1ae4] ss:$16 sps:$4 sm:$0xff]  }
 0x15f   :  { %5948 = vmatpush1.bf16.msra.mxu0 %v8679_v50  ;;  %v8727_v50 = vld [vmem:[%s12652_s1 + $0x1500] ss:$16 sps:$4 sm:$0xff]  }
 0x160   :  { %5989 = vmatpush1.bf16.msra.mxu1 %v8682_v51  ;;  %5949 = vmatprep.subr.bf16.mxu0 %v8687_v24  ;;  %v8730_v51 = vld [vmem:[%s12652_s1 + $0x1700] ss:$16 sps:$4 sm:$0xff]   ;;  %v8736_v24 = vld [vmem:[%s12652_s1 + $0x18e4] ss:$16 sps:$4 sm:$0xff]  }
 0x161   :  { %5990 = vmatprep.subr.bf16.mxu1 %v8690_v25  ;;  %v8734_v25 = vld [vmem:[%s12652_s1 + $0x18e0] ss:$16 sps:$4 sm:$0xff]  }
 0x163   :  { %5950 = vmatpush2.bf16.msra.mxu0 %v8685_v56  ;;  %v8737_v56 = vld [vmem:[%s12652_s1 + $0x1ae0] ss:$16 sps:$4 sm:$0xff]  }
 0x164   :  { %5991 = vmatpush2.bf16.msra.mxu1 %v8688_v60  ;;  %5951 = vmatprep.subr.bf16.mxu0 %v8693_v61  ;;  %v160_v60 = vcombine.high %v10908_v42, %v10908_v42  ;;  %v159_v61 = vcombine.high %v10911_v58, %v10911_v58 }
 0x165   :  { %5992 = vmatprep.subr.bf16.mxu1 %v8696_v63  ;;  %v10937_v63 = vpack.c.bf16 %v10681_v29, %v10681_v29  ;;  %v8740_v29 = vld [vmem:[%s12652_s1 + $0x18c0] ss:$16 sps:$4 sm:$0xff]  }
 0x167   :  { %5952 = vmatpush2.bf16.msra.mxu0 %v8691_v0  ;;  %v10941_v0 = vpack.c.bf16 %v10684_v30, %v10684_v30  ;;  %v8743_v30 = vld [vmem:[%s12652_s1 + $0x1ac0] ss:$16 sps:$4 sm:$0xff]  }
 0x168   :  { %5993 = vmatpush2.bf16.msra.mxu1 %v8694_v2  ;;  %5953 = vmatprep.subr.bf16.mxu0 %v8699_v6  ;;  %v8742_v2 = vld [vmem:[%s12652_s1 + $0x18c4] ss:$16 sps:$4 sm:$0xff]  }
 0x169   :  { %5994 = vmatprep.subr.bf16.mxu1 %v8702_v39  ;;  %v8745_v6 = vld [vmem:[%s12652_s1 + $0x1ac4] ss:$16 sps:$4 sm:$0xff]   ;;  %v10955_v39 = vpack.c.bf16 %v160_v60, %v160_v60 }
 0x16a   :  { %v8775_v60 = vld [vmem:[%s12652_s1 + $0x1a24] ss:$16 sps:$4 sm:$0xff]  }
 0x16b   :  { %5954 = vmatpush2.bf16.msra.mxu0 %v8697_v1  ;;  %v10957_v1 = vpack.c.bf16 %v159_v61, %v159_v61  ;;  %v8770_v61 = vld [vmem:[%s12652_s1 + $0x1820] ss:$16 sps:$4 sm:$0xff]  }
 0x16c   :  { %5995 = vmatpush2.bf16.msra.mxu1 %v8700_v44  ;;  %5955 = vmatprep.subr.bf16.mxu0 %v8705_v11 }
 0x16d   :  { %5996 = vmatprep.subr.bf16.mxu1 %v8708_v12 }
 0x16f   :  { %5956 = vmatpush2.bf16.msra.mxu0 %v8703_v14 }
 0x170   :  { %5997 = vmatpush2.bf16.msra.mxu1 %v8706_v10  ;;  %5957 = vmatprep.subr.bf16.mxu0 %v8711_v15  ;;  %v8748_v15 = vld [vmem:[%s12652_s1 + $0x18a4] ss:$16 sps:$4 sm:$0xff]  }
 0x171   :  { %5998 = vmatprep.subr.bf16.mxu1 %v8714_v18  ;;  %v8751_v18 = vld [vmem:[%s12652_s1 + $0x1aa4] ss:$16 sps:$4 sm:$0xff]  }
 0x173   :  { %5958 = vmatpush2.bf16.msra.mxu0 %v8709_v19 }
 0x174   :  { %5999 = vmatpush2.bf16.msra.mxu1 %v8712_v20  ;;  %5959 = vmatprep.subr.bf16.mxu0 %v8717_v21  ;;  %v8749_v21 = vld [vmem:[%s12652_s1 + $0x1aa0] ss:$16 sps:$4 sm:$0xff]  }
 0x175   :  { %6000 = vmatprep.subr.bf16.mxu1 %v8720_v22 }
 0x177   :  { %5960 = vmatpush2.bf16.msra.mxu0 %v8715_v26 }
 0x178   :  { %6001 = vmatpush2.bf16.msra.mxu1 %v8718_v27  ;;  %5961 = vmatprep.subr.bf16.mxu0 %v8723_v28  ;;  %v8754_v28 = vld [vmem:[%s12652_s1 + $0x1884] ss:$16 sps:$4 sm:$0xff]  }
 0x179   :  { %6002 = vmatprep.subr.bf16.mxu1 %v8726_v31  ;;  %v8757_v31 = vld [vmem:[%s12652_s1 + $0x1a84] ss:$16 sps:$4 sm:$0xff]  }
 0x17b   :  { %5962 = vmatpush2.bf16.msra.mxu0 %v8721_v35  ;;  %v8755_v35 = vld [vmem:[%s12652_s1 + $0x1a80] ss:$16 sps:$4 sm:$0xff]  }
 0x17c   :  { %6003 = vmatpush2.bf16.msra.mxu1 %v8724_v36  ;;  %5963 = vmatprep.subr.bf16.mxu0 %v8729_v40  ;;  %v8760_v36 = vld [vmem:[%s12652_s1 + $0x1864] ss:$16 sps:$4 sm:$0xff]  }
 0x17d   :  { %6004 = vmatprep.subr.bf16.mxu1 %v8732_v41  ;;  %v8763_v40 = vld [vmem:[%s12652_s1 + $0x1a64] ss:$16 sps:$4 sm:$0xff]   ;;  %v8758_v41 = vld [vmem:[%s12652_s1 + $0x1860] ss:$16 sps:$4 sm:$0xff]  }
 0x17f   :  { %5964 = vmatpush2.bf16.msra.mxu0 %v8727_v50  ;;  %v8761_v50 = vld [vmem:[%s12652_s1 + $0x1a60] ss:$16 sps:$4 sm:$0xff]  }
 0x180   :  { %6005 = vmatpush2.bf16.msra.mxu1 %v8730_v51  ;;  %6015 = vmatprep.subr.bf16.mxu0 %v8736_v24  ;;  %v8766_v51 = vld [vmem:[%s12652_s1 + $0x1844] ss:$16 sps:$4 sm:$0xff]  }
 0x181   :  { %6056 = vmatprep.subr.bf16.mxu1 %v8739_v49  ;;  %v8769_v24 = vld [vmem:[%s12652_s1 + $0x1a44] ss:$16 sps:$4 sm:$0xff]   ;;  %v8764_v49 = vld [vmem:[%s12652_s1 + $0x1840] ss:$16 sps:$4 sm:$0xff]  }
 0x182   :  { %v5721_v44 = vpop.f32.mrf.mxu0  ;;  %5966 = vmatmul.mubr.bf16.vlgmr.msra.gmra.mxu0 %v10937_v63 }
 0x183   :  { %v5762_v11 = vpop.f32.mrf.mxu1  ;;  %6007 = vmatmul.mubr.bf16.vlgmr.msra.gmra.mxu1 %v10941_v0  ;;  %v5722_v12 = vadd.f32 %v5721_v44, %v10741_v7  ;;  %6016 = vmatpush1.bf16.msra.mxu0 %v8734_v25  ;;  %v8746_v7 = vld [vmem:[%s12652_s1 + $0x18a0] ss:$16 sps:$4 sm:$0xff]  }
 0x184   :  { %6057 = vmatpush1.bf16.msra.mxu1 %v8737_v56  ;;  %v5723_v14 = vpop.f32.mrf.mxu0  ;;  %6017 = vmatprep.subr.bf16.mxu0 %v8742_v2  ;;  %v8767_v25 = vld [vmem:[%s12652_s1 + $0x1a40] ss:$16 sps:$4 sm:$0xff]   ;;  %v8772_v56 = vld [vmem:[%s12652_s1 + $0x1824] ss:$16 sps:$4 sm:$0xff]  }
 0x185   :  { %v5764_v10 = vpop.f32.mrf.mxu1  ;;  %6058 = vmatprep.subr.bf16.mxu1 %v8745_v6  ;;  %v10968_v19 = vadd.f32 %v5762_v11, %v5722_v12  ;;  %v5724_v20 = vadd.f32 %v5723_v14, %v10752_v13  ;;  %8031 = vmatprep.mubr.msk.bf16.mxu1 %vm5519_vm0, %v10955_v39  ;;  %v8773_v2 = vld [vmem:[%s12652_s1 + $0x1a20] ss:$16 sps:$4 sm:$0xff]   ;;  %v8778_v6 = vld [vmem:[%s12652_s1 + $0x1804] ss:$16 sps:$4 sm:$0xff]  }
 0x186   :  { %6047 = vmatprep.mubr.bf16.mxu0 %v10957_v1  ;;  %v5725_v22 = vpop.f32.mrf.mxu0  ;;  %v8779_v44 = vld [vmem:[%s12652_s1 + $0x1a00] ss:$16 sps:$4 sm:$0xff]   ;;  %v8784_v11 = vld [vmem:[%s12652_s1 + $0x19e4] ss:$16 sps:$4 sm:$0xff]  }
 0x187   :  { %v5766_v23 = vpop.f32.mrf.mxu1  ;;  %v10980_v26 = vadd.f32 %v5764_v10, %v5724_v20  ;;  %6018 = vmatpush1.bf16.msra.mxu0 %v8740_v29  ;;  %v8781_v29 = vld [vmem:[%s12652_s1 + $0x1a04] ss:$16 sps:$4 sm:$0xff]   ;;  %v8782_v14 = vld [vmem:[%s12652_s1 + $0x19e0] ss:$16 sps:$4 sm:$0xff]  }
 0x188   :  { %6059 = vmatpush1.bf16.msra.mxu1 %v8743_v30  ;;  %v5726_v13 = vpop.f32.mrf.mxu0  ;;  %6019 = vmatprep.subr.bf16.mxu0 %v8748_v15  ;;  %v8776_v30 = vld [vmem:[%s12652_s1 + $0x1800] ss:$16 sps:$4 sm:$0xff]   ;;  %v8787_v12 = vld [vmem:[%s12652_s1 + $0x1b64] ss:$16 sps:$4 sm:$0xff]  }
 0x189   :  { %v5767_v27 = vpop.f32.mrf.mxu1  ;;  %6060 = vmatprep.subr.bf16.mxu1 %v8751_v18  ;;  %v8785_v10 = vld [vmem:[%s12652_s1 + $0x1b60] ss:$16 sps:$4 sm:$0xff]   ;;  %v8790_v15 = vld [vmem:[%s12652_s1 + $0x19c4] ss:$16 sps:$4 sm:$0xff]  }
 0x18a   :  { %v8793_v18 = vld [vmem:[%s12652_s1 + $0x1b44] ss:$16 sps:$4 sm:$0xff]   ;;  %v8788_v20 = vld [vmem:[%s12652_s1 + $0x19c0] ss:$16 sps:$4 sm:$0xff]  }
 0x18b   :  { %6020 = vmatpush1.bf16.msra.mxu0 %v8746_v7  ;;  %v8791_v7 = vld [vmem:[%s12652_s1 + $0x1b40] ss:$16 sps:$4 sm:$0xff]   ;;  %v8799_v22 = vld [vmem:[%s12652_s1 + $0x1b24] ss:$16 sps:$4 sm:$0xff]  }
 0x18c   :  { %6061 = vmatpush1.bf16.msra.mxu1 %v8749_v21  ;;  %6021 = vmatprep.subr.bf16.mxu0 %v8754_v28  ;;  %v8796_v21 = vld [vmem:[%s12652_s1 + $0x19a4] ss:$16 sps:$4 sm:$0xff]   ;;  %v8794_v23 = vld [vmem:[%s12652_s1 + $0x19a0] ss:$16 sps:$4 sm:$0xff]  }
 0x18d   :  { %6062 = vmatprep.subr.bf16.mxu1 %v8757_v31  ;;  %v8797_v13 = vld [vmem:[%s12652_s1 + $0x1b20] ss:$16 sps:$4 sm:$0xff]   ;;  %v8802_v27 = vld [vmem:[%s12652_s1 + $0x1984] ss:$16 sps:$4 sm:$0xff]  }
 0x18e   :  { %v8805_v28 = vld [vmem:[%s12652_s1 + $0x1b04] ss:$16 sps:$4 sm:$0xff]   ;;  %v8800_v31 = vld [vmem:[%s12652_s1 + $0x1980] ss:$16 sps:$4 sm:$0xff]  }
 0x18f   :  { %6022 = vmatpush1.bf16.msra.mxu0 %v8752_v34  ;;  %v8803_v34 = vld [vmem:[%s12652_s1 + $0x1b00] ss:$16 sps:$4 sm:$0xff]  }
 0x190   :  { %6063 = vmatpush1.bf16.msra.mxu1 %v8755_v35  ;;  %6023 = vmatprep.subr.bf16.mxu0 %v8760_v36  ;;  %v8809_v35 = vld [vmem:[%s12652_s1 + $0x1964] ss:$16 sps:$4 sm:$0xff]   ;;  %v8812_v36 = vld [vmem:[%s12652_s1 + $0xec] ss:$16 sps:$4 sm:$0xff]  }
 0x191   :  { %6064 = vmatprep.subr.bf16.mxu1 %v8763_v40  ;;  %v8807_v40 = vld [vmem:[%s12652_s1 + $0x1960] ss:$16 sps:$4 sm:$0xff]  }
 0x193   :  { %6024 = vmatpush1.bf16.msra.mxu0 %v8758_v41  ;;  %v8810_v41 = vld [vmem:[%s12652_s1 + $0xe8] ss:$16 sps:$4 sm:$0xff]  }
 0x194   :  { %6065 = vmatpush1.bf16.msra.mxu1 %v8761_v50  ;;  %6025 = vmatprep.subr.bf16.mxu0 %v8766_v51  ;;  %v11104_v50 = vpack.c.bf16 %v10908_v42, %v10908_v42  ;;  %v8815_v51 = vld [vmem:[%s12652_s1 + $0x1944] ss:$16 sps:$4 sm:$0xff]   ;;  %v8813_v42 = vld [vmem:[%s12652_s1 + $0x1940] ss:$16 sps:$4 sm:$0xff]  }
 0x195   :  { %6066 = vmatprep.subr.bf16.mxu1 %v8769_v24  ;;  %v8818_v24 = vld [vmem:[%s12652_s1 + $0xcc] ss:$16 sps:$4 sm:$0xff]  }
 0x197   :  { %6026 = vmatpush1.bf16.msra.mxu0 %v8764_v49  ;;  %v8816_v49 = vld [vmem:[%s12652_s1 + $0xc8] ss:$16 sps:$4 sm:$0xff]  }
 0x198   :  { %6067 = vmatpush1.bf16.msra.mxu1 %v8767_v25  ;;  %6027 = vmatprep.subr.bf16.mxu0 %v8772_v56  ;;  %v8821_v25 = vld [vmem:[%s12652_s1 + $0x1924] ss:$16 sps:$4 sm:$0xff]   ;;  %v8824_v56 = vld [vmem:[%s12652_s1 + $0xac] ss:$16 sps:$4 sm:$0xff]  }
 0x199   :  { %6068 = vmatprep.subr.bf16.mxu1 %v8775_v60  ;;  %v8819_v60 = vld [vmem:[%s12652_s1 + $0x1920] ss:$16 sps:$4 sm:$0xff]  }
 0x19b   :  { %6028 = vmatpush1.bf16.msra.mxu0 %v8770_v61  ;;  %v8822_v61 = vld [vmem:[%s12652_s1 + $0xa8] ss:$16 sps:$4 sm:$0xff]  }
 0x19c   :  { %6069 = vmatpush1.bf16.msra.mxu1 %v8773_v2  ;;  %6029 = vmatprep.subr.bf16.mxu0 %v8778_v6  ;;  %v8827_v2 = vld [vmem:[%s12652_s1 + $0x1904] ss:$16 sps:$4 sm:$0xff]   ;;  %v8825_v6 = vld [vmem:[%s12652_s1 + $0x1900] ss:$16 sps:$4 sm:$0xff]  }
 0x19d   :  { %6070 = vmatprep.subr.bf16.mxu1 %v8781_v29  ;;  %v8828_v29 = vld [vmem:[%s12652_s1 + $0x88] ss:$16 sps:$4 sm:$0xff]  }
 0x19f   :  { %6030 = vmatpush1.bf16.msra.mxu0 %v8776_v30  ;;  %v8833_v30 = vld [vmem:[%s12652_s1 + $0x6c] ss:$16 sps:$4 sm:$0xff]  }
 0x1a0   :  { %6071 = vmatpush1.bf16.msra.mxu1 %v8779_v44  ;;  %6031 = vmatprep.subr.bf16.mxu0 %v8784_v11  ;;  %v8836_v44 = vld [vmem:[%s12652_s1 + $0x2ec] ss:$16 sps:$4 sm:$0xff]   ;;  %v8831_v11 = vld [vmem:[%s12652_s1 + $0x68] ss:$16 sps:$4 sm:$0xff]  }
 0x1a1   :  { %6080 = vmatprep.subr.bf16.mxu1 %v8787_v12  ;;  %v8834_v12 = vld [vmem:[%s12652_s1 + $0x2e8] ss:$16 sps:$4 sm:$0xff]  }
 0x1a3   :  { %6032 = vmatpush2.bf16.msra.mxu0 %v8782_v14  ;;  %v11158_v14 = vpack.c.bf16 %v10911_v58, %v10911_v58  ;;  %v8840_v58 = vld [vmem:[%s12652_s1 + $0x2c8] ss:$16 sps:$4 sm:$0xff]  }
 0x1a4   :  { %6081 = vmatpush2.bf16.msra.mxu1 %v8785_v10  ;;  %6033 = vmatprep.subr.bf16.mxu0 %v8790_v15  ;;  %v8839_v10 = vld [vmem:[%s12652_s1 + $0x4c] ss:$16 sps:$4 sm:$0xff]  }
 0x1a5   :  { %6082 = vmatprep.subr.bf16.mxu1 %v8793_v18  ;;  %v8842_v15 = vld [vmem:[%s12652_s1 + $0x2cc] ss:$16 sps:$4 sm:$0xff]   ;;  %v8837_v18 = vld [vmem:[%s12652_s1 + $0x48] ss:$16 sps:$4 sm:$0xff]  }
 0x1a7   :  { %6034 = vmatpush2.bf16.msra.mxu0 %v8788_v20 }
 0x1a8   :  { %6083 = vmatpush2.bf16.msra.mxu1 %v8791_v7  ;;  %6035 = vmatprep.subr.bf16.mxu0 %v8796_v21 }
 0x1a9   :  { %6084 = vmatprep.subr.bf16.mxu1 %v8799_v22 }
 0x1ab   :  { %6036 = vmatpush2.bf16.msra.mxu0 %v8794_v23 }
 0x1ac   :  { %6085 = vmatpush2.bf16.msra.mxu1 %v8797_v13  ;;  %6037 = vmatprep.subr.bf16.mxu0 %v8802_v27  ;;  %v8845_v13 = vld [vmem:[%s12652_s1 + $0x2c] ss:$16 sps:$4 sm:$0xff]  }
 0x1ad   :  { %6086 = vmatprep.subr.bf16.mxu1 %v8805_v28  ;;  %v8848_v27 = vld [vmem:[%s12652_s1 + $0x2ac] ss:$16 sps:$4 sm:$0xff]  }
 0x1af   :  { %6038 = vmatpush2.bf16.msra.mxu0 %v8800_v31 }
 0x1b0   :  { %6087 = vmatpush2.bf16.msra.mxu1 %v8803_v34  ;;  %6039 = vmatprep.subr.bf16.mxu0 %v8809_v35  ;;  %v8846_v34 = vld [vmem:[%s12652_s1 + $0x2a8] ss:$16 sps:$4 sm:$0xff]  }
 0x1b1   :  { %6097 = vmatprep.subr.bf16.mxu1 %v8812_v36 }
 0x1b3   :  { %6089 = vmatmul.mubr.bf16.vlgmr.msra.gmra.mxu1 %v11104_v50  ;;  %6040 = vmatpush2.bf16.msra.mxu0 %v8807_v40 }
 0x1b4   :  { %6098 = vmatpush1.bf16.msra.mxu1 %v8810_v41  ;;  %6041 = vmatprep.subr.bf16.mxu0 %v8815_v51 }
 0x1b5   :  { %6099 = vmatprep.subr.bf16.mxu1 %v8818_v24  ;;  %6129 = vmatprep.mubr.bf16.mxu1 %v9749_v62  ;;  %v8830_v62 = vld [vmem:[%s12652_s1 + $0x8c] ss:$16 sps:$4 sm:$0xff]  }
 0x1b6   :  { %v8854_v24 = vld [vmem:[%s12652_s1 + $0x28c] ss:$16 sps:$4 sm:$0xff]  }
 0x1b7   :  { %6042 = vmatpush2.bf16.msra.mxu0 %v8813_v42  ;;  %v8852_v42 = vld [vmem:[%s12652_s1 + $0x288] ss:$16 sps:$4 sm:$0xff]  }
 0x1b8   :  { %6100 = vmatpush1.bf16.msra.mxu1 %v8816_v49  ;;  %6043 = vmatprep.subr.bf16.mxu0 %v8821_v25  ;;  %v8857_v49 = vld [vmem:[%s12652_s1 + $0x1ec] ss:$16 sps:$4 sm:$0xff]  }
 0x1b9   :  { %6101 = vmatprep.subr.bf16.mxu1 %v8824_v56  ;;  %v8860_v25 = vld [vmem:[%s12652_s1 + $0x26c] ss:$16 sps:$4 sm:$0xff]   ;;  %v8855_v56 = vld [vmem:[%s12652_s1 + $0x1e8] ss:$16 sps:$4 sm:$0xff]  }
 0x1bb   :  { %6044 = vmatpush2.bf16.msra.mxu0 %v8819_v60  ;;  %v8858_v60 = vld [vmem:[%s12652_s1 + $0x268] ss:$16 sps:$4 sm:$0xff]  }
 0x1bc   :  { %6102 = vmatpush1.bf16.msra.mxu1 %v8822_v61  ;;  %6045 = vmatprep.subr.bf16.mxu0 %v8827_v2  ;;  %v8863_v61 = vld [vmem:[%s12652_s1 + $0x1cc] ss:$16 sps:$4 sm:$0xff]  }
 0x1bd   :  { %6103 = vmatprep.subr.bf16.mxu1 %v8830_v62  ;;  %v8866_v2 = vld [vmem:[%s12652_s1 + $0x24c] ss:$16 sps:$4 sm:$0xff]   ;;  %v8861_v62 = vld [vmem:[%s12652_s1 + $0x1c8] ss:$16 sps:$4 sm:$0xff]  }
 0x1bf   :  { %6046 = vmatpush2.bf16.msra.mxu0 %v8825_v6  ;;  %v8864_v6 = vld [vmem:[%s12652_s1 + $0x248] ss:$16 sps:$4 sm:$0xff]  }
 0x1c0   :  { %6104 = vmatpush1.bf16.msra.mxu1 %v8828_v29  ;;  %6138 = vmatprep.subr.bf16.mxu0 %v8836_v44  ;;  %v8869_v29 = vld [vmem:[%s12652_s1 + $0x1ac] ss:$16 sps:$4 sm:$0xff]   ;;  %v8867_v44 = vld [vmem:[%s12652_s1 + $0x1a8] ss:$16 sps:$4 sm:$0xff]  }
 0x1c1   :  { %6105 = vmatprep.subr.bf16.mxu1 %v8833_v30  ;;  %v8872_v30 = vld [vmem:[%s12652_s1 + $0x22c] ss:$16 sps:$4 sm:$0xff]  }
 0x1c2   :  { %v5803_v20 = vpop.f32.mrf.mxu0  ;;  %6048 = vmatmul.mubr.bf16.vlgmr.msra.gmra.mxu0 %v11158_v14 }
 0x1c3   :  { %v5844_v7 = vpop.f32.mrf.mxu1  ;;  %v5804_v21 = vadd.f32 %v5803_v20, %v10968_v19  ;;  %6139 = vmatpush1.bf16.msra.mxu0 %v8834_v12  ;;  %v8843_v19 = vld [vmem:[%s12652_s1 + $0x28] ss:$16 sps:$4 sm:$0xff]   ;;  %6170 = vmatprep.mubr.bf16.mxu0 %v9760_v3  ;;  %v8875_v12 = vld [vmem:[%s12652_s1 + $0x18c] ss:$16 sps:$4 sm:$0xff]  }
 0x1c4   :  { %6106 = vmatpush1.bf16.msra.mxu1 %v8831_v11  ;;  %v5805_v22 = vpop.f32.mrf.mxu0  ;;  %6140 = vmatprep.subr.bf16.mxu0 %v8842_v15  ;;  %v8849_v3 = vld [vmem:[%s12652_s1 + $0x8] ss:$16 sps:$4 sm:$0xff]   ;;  %v8884_v20 = vld [vmem:[%s12652_s1 + $0x3ec] ss:$16 sps:$4 sm:$0xff]  }
 0x1c5   :  { %v5846_v23 = vpop.f32.mrf.mxu1  ;;  %6107 = vmatprep.subr.bf16.mxu1 %v8839_v10  ;;  %v11180_v28 = vadd.f32 %v5844_v7, %v5804_v21  ;;  %v5806_v31 = vadd.f32 %v5805_v22, %v10980_v26  ;;  %v8851_v26 = vld [vmem:[%s12652_s1 + $0xc] ss:$16 sps:$4 sm:$0xff]   ;;  %v8870_v11 = vld [vmem:[%s12652_s1 + $0x228] ss:$16 sps:$4 sm:$0xff]  }
 0x1c6   :  { %v5807_v35 = vpop.f32.mrf.mxu0  ;;  %v8878_v10 = vld [vmem:[%s12652_s1 + $0x20c] ss:$16 sps:$4 sm:$0xff]   ;;  %v8873_v15 = vld [vmem:[%s12652_s1 + $0x188] ss:$16 sps:$4 sm:$0xff]  }
 0x1c7   :  { %v5848_v36 = vpop.f32.mrf.mxu1  ;;  %v11190_v40 = vadd.f32 %v5846_v23, %v5806_v31  ;;  %6141 = vmatpush1.bf16.msra.mxu0 %v8840_v58  ;;  %v8881_v58 = vld [vmem:[%s12652_s1 + $0x16c] ss:$16 sps:$4 sm:$0xff]   ;;  %v8879_v7 = vld [vmem:[%s12652_s1 + $0x168] ss:$16 sps:$4 sm:$0xff]  }
 0x1c8   :  { %6108 = vmatpush1.bf16.msra.mxu1 %v8837_v18  ;;  %v5808_v41 = vpop.f32.mrf.mxu0  ;;  %6142 = vmatprep.subr.bf16.mxu0 %v8848_v27  ;;  %v8876_v18 = vld [vmem:[%s12652_s1 + $0x208] ss:$16 sps:$4 sm:$0xff]   ;;  %v8887_v22 = vld [vmem:[%s12652_s1 + $0x14c] ss:$16 sps:$4 sm:$0xff]  }
 0x1c9   :  { %v5849_v51 = vpop.f32.mrf.mxu1  ;;  %6109 = vmatprep.subr.bf16.mxu1 %v8845_v13  ;;  %v8882_v21 = vld [vmem:[%s12652_s1 + $0x3e8] ss:$16 sps:$4 sm:$0xff]   ;;  %v8890_v23 = vld [vmem:[%s12652_s1 + $0x3cc] ss:$16 sps:$4 sm:$0xff]  }
 0x1ca   :  { %v8885_v13 = vld [vmem:[%s12652_s1 + $0x148] ss:$16 sps:$4 sm:$0xff]   ;;  %v8893_v31 = vld [vmem:[%s12652_s1 + $0x12c] ss:$16 sps:$4 sm:$0xff]  }
 0x1cb   :  { %6143 = vmatpush1.bf16.msra.mxu0 %v8846_v34  ;;  %v8888_v27 = vld [vmem:[%s12652_s1 + $0x3c8] ss:$16 sps:$4 sm:$0xff]   ;;  %v8899_v36 = vld [vmem:[%s12652_s1 + $0x10c] ss:$16 sps:$4 sm:$0xff]  }
 0x1cc   :  { %6110 = vmatpush1.bf16.msra.mxu1 %v8843_v19  ;;  %6144 = vmatprep.subr.bf16.mxu0 %v8854_v24  ;;  %v8896_v19 = vld [vmem:[%s12652_s1 + $0x3ac] ss:$16 sps:$4 sm:$0xff]   ;;  %v8891_v34 = vld [vmem:[%s12652_s1 + $0x128] ss:$16 sps:$4 sm:$0xff]  }
 0x1cd   :  { %6111 = vmatprep.subr.bf16.mxu1 %v8851_v26  ;;  %v8894_v35 = vld [vmem:[%s12652_s1 + $0x3a8] ss:$16 sps:$4 sm:$0xff]   ;;  %v8902_v41 = vld [vmem:[%s12652_s1 + $0x38c] ss:$16 sps:$4 sm:$0xff]  }
 0x1ce   :  { %v8897_v51 = vld [vmem:[%s12652_s1 + $0x108] ss:$16 sps:$4 sm:$0xff]   ;;  %v8905_v24 = vld [vmem:[%s12652_s1 + $0x36c] ss:$16 sps:$4 sm:$0xff]  }
 0x1cf   :  { %6145 = vmatpush1.bf16.msra.mxu0 %v8852_v42  ;;  %v8900_v26 = vld [vmem:[%s12652_s1 + $0x388] ss:$16 sps:$4 sm:$0xff]  }
 0x1d0   :  { %6112 = vmatpush1.bf16.msra.mxu1 %v8849_v3  ;;  %6146 = vmatprep.subr.bf16.mxu0 %v8860_v25  ;;  %v8908_v3 = vld [vmem:[%s12652_s1 + $0x4ec] ss:$16 sps:$4 sm:$0xff]   ;;  %v8903_v42 = vld [vmem:[%s12652_s1 + $0x368] ss:$16 sps:$4 sm:$0xff]  }
 0x1d1   :  { %6113 = vmatprep.subr.bf16.mxu1 %v8857_v49  ;;  %v8906_v49 = vld [vmem:[%s12652_s1 + $0x4e8] ss:$16 sps:$4 sm:$0xff]   ;;  %v8911_v25 = vld [vmem:[%s12652_s1 + $0x34c] ss:$16 sps:$4 sm:$0xff]  }
 0x1d3   :  { %6147 = vmatpush1.bf16.msra.mxu0 %v8858_v60  ;;  %v8909_v60 = vld [vmem:[%s12652_s1 + $0x348] ss:$16 sps:$4 sm:$0xff]  }
 0x1d4   :  { %6114 = vmatpush2.bf16.msra.mxu1 %v8855_v56  ;;  %6148 = vmatprep.subr.bf16.mxu0 %v8866_v2  ;;  %v8914_v56 = vld [vmem:[%s12652_s1 + $0x4cc] ss:$16 sps:$4 sm:$0xff]  }
 0x1d5   :  { %6115 = vmatprep.subr.bf16.mxu1 %v8863_v61  ;;  %v8912_v61 = vld [vmem:[%s12652_s1 + $0x4c8] ss:$16 sps:$4 sm:$0xff]   ;;  %v8917_v2 = vld [vmem:[%s12652_s1 + $0x32c] ss:$16 sps:$4 sm:$0xff]  }
 0x1d7   :  { %6149 = vmatpush1.bf16.msra.mxu0 %v8864_v6  ;;  %v8915_v6 = vld [vmem:[%s12652_s1 + $0x328] ss:$16 sps:$4 sm:$0xff]  }
 0x1d8   :  { %6116 = vmatpush2.bf16.msra.mxu1 %v8861_v62  ;;  %6150 = vmatprep.subr.bf16.mxu0 %v8872_v30  ;;  %v8920_v62 = vld [vmem:[%s12652_s1 + $0x4ac] ss:$16 sps:$4 sm:$0xff]  }
 0x1d9   :  { %6117 = vmatprep.subr.bf16.mxu1 %v8869_v29  ;;  %v8923_v29 = vld [vmem:[%s12652_s1 + $0x30c] ss:$16 sps:$4 sm:$0xff]  }
 0x1da   :  { %v8926_v30 = vld [vmem:[%s12652_s1 + $0x48c] ss:$16 sps:$4 sm:$0xff]  }
 0x1db   :  { %6151 = vmatpush1.bf16.msra.mxu0 %v8870_v11  ;;  %v8929_v11 = vld [vmem:[%s12652_s1 + $0x46c] ss:$16 sps:$4 sm:$0xff]  }
 0x1dc   :  { %6118 = vmatpush2.bf16.msra.mxu1 %v8867_v44  ;;  %6152 = vmatprep.subr.bf16.mxu0 %v8878_v10  ;;  %v8921_v44 = vld [vmem:[%s12652_s1 + $0x308] ss:$16 sps:$4 sm:$0xff]  }
 0x1dd   :  { %6119 = vmatprep.subr.bf16.mxu1 %v8875_v12  ;;  %v8932_v12 = vld [vmem:[%s12652_s1 + $0x6ec] ss:$16 sps:$4 sm:$0xff]   ;;  %v8927_v10 = vld [vmem:[%s12652_s1 + $0x468] ss:$16 sps:$4 sm:$0xff]  }
 0x1df   :  { %6153 = vmatpush1.bf16.msra.mxu0 %v8876_v18  ;;  %v8935_v18 = vld [vmem:[%s12652_s1 + $0x44c] ss:$16 sps:$4 sm:$0xff]  }
 0x1e0   :  { %6120 = vmatpush2.bf16.msra.mxu1 %v8873_v15  ;;  %6154 = vmatprep.subr.bf16.mxu0 %v8884_v20  ;;  %v8930_v15 = vld [vmem:[%s12652_s1 + $0x6e8] ss:$16 sps:$4 sm:$0xff]  }
 0x1e1   :  { %6121 = vmatprep.subr.bf16.mxu1 %v8881_v58  ;;  %v8938_v58 = vld [vmem:[%s12652_s1 + $0x6cc] ss:$16 sps:$4 sm:$0xff]   ;;  %v8933_v20 = vld [vmem:[%s12652_s1 + $0x448] ss:$16 sps:$4 sm:$0xff]  }
 0x1e3   :  { %6155 = vmatpush2.bf16.msra.mxu0 %v8882_v21 }
 0x1e4   :  { %6122 = vmatpush2.bf16.msra.mxu1 %v8879_v7  ;;  %6156 = vmatprep.subr.bf16.mxu0 %v8890_v23  ;;  %v8936_v7 = vld [vmem:[%s12652_s1 + $0x6c8] ss:$16 sps:$4 sm:$0xff]  }
 0x1e5   :  { %6123 = vmatprep.subr.bf16.mxu1 %v8887_v22 }
 0x1e7   :  { %6157 = vmatpush2.bf16.msra.mxu0 %v8888_v27 }
 0x1e8   :  { %6124 = vmatpush2.bf16.msra.mxu1 %v8885_v13  ;;  %6158 = vmatprep.subr.bf16.mxu0 %v8896_v19  ;;  %v8944_v19 = vld [vmem:[%s12652_s1 + $0x6ac] ss:$16 sps:$4 sm:$0xff]  }
 0x1e9   :  { %6125 = vmatprep.subr.bf16.mxu1 %v8893_v31  ;;  %v8941_v31 = vld [vmem:[%s12652_s1 + $0x42c] ss:$16 sps:$4 sm:$0xff]  }
 0x1eb   :  { %6159 = vmatpush2.bf16.msra.mxu0 %v8894_v35  ;;  %v8942_v35 = vld [vmem:[%s12652_s1 + $0x6a8] ss:$16 sps:$4 sm:$0xff]  }
 0x1ec   :  { %6126 = vmatpush2.bf16.msra.mxu1 %v8891_v34  ;;  %6160 = vmatprep.subr.bf16.mxu0 %v8902_v41 }
 0x1ed   :  { %6127 = vmatprep.subr.bf16.mxu1 %v8899_v36 }
 0x1ef   :  { %6161 = vmatpush2.bf16.msra.mxu0 %v8900_v26 }
 0x1f0   :  { %6128 = vmatpush2.bf16.msra.mxu1 %v8897_v51  ;;  %6162 = vmatprep.subr.bf16.mxu0 %v8905_v24 }
 0x1f1   :  { %6179 = vmatprep.subr.bf16.mxu1 %v8908_v3  ;;  %v8950_v3 = vld [vmem:[%s12652_s1 + $0x68c] ss:$16 sps:$4 sm:$0xff]  }
 0x1f3   :  { %6130 = vmatmul.mubr.bf16.vlgmr.msra.gmra.mxu1 %v9800_v16  ;;  %6163 = vmatpush2.bf16.msra.mxu0 %v8903_v42  ;;  %v8918_v16 = vld [vmem:[%s12652_s1 + $0x4a8] ss:$16 sps:$4 sm:$0xff]  }
 0x1f4   :  { %6180 = vmatpush1.bf16.msra.mxu1 %v8906_v49  ;;  %6164 = vmatprep.subr.bf16.mxu0 %v8911_v25  ;;  %v8948_v42 = vld [vmem:[%s12652_s1 + $0x688] ss:$16 sps:$4 sm:$0xff]   ;;  %v8953_v49 = vld [vmem:[%s12652_s1 + $0x5ec] ss:$16 sps:$4 sm:$0xff]  }
 0x1f5   :  { %6181 = vmatprep.subr.bf16.mxu1 %v8914_v56  ;;  %6211 = vmatprep.mubr.bf16.mxu1 %v9901_v53  ;;  %v8924_v53 = vld [vmem:[%s12652_s1 + $0x488] ss:$16 sps:$4 sm:$0xff]   ;;  %v8956_v25 = vld [vmem:[%s12652_s1 + $0x66c] ss:$16 sps:$4 sm:$0xff]  }
 0x1f6   :  { %v8951_v56 = vld [vmem:[%s12652_s1 + $0x5e8] ss:$16 sps:$4 sm:$0xff]  }
 0x1f7   :  { %6165 = vmatpush2.bf16.msra.mxu0 %v8909_v60  ;;  %v8954_v60 = vld [vmem:[%s12652_s1 + $0x668] ss:$16 sps:$4 sm:$0xff]  }
 0x1f8   :  { %6182 = vmatpush1.bf16.msra.mxu1 %v8912_v61  ;;  %6166 = vmatprep.subr.bf16.mxu0 %v8917_v2  ;;  %v8959_v61 = vld [vmem:[%s12652_s1 + $0x5cc] ss:$16 sps:$4 sm:$0xff]  }
 0x1f9   :  { %6183 = vmatprep.subr.bf16.mxu1 %v8920_v62  ;;  %v8962_v2 = vld [vmem:[%s12652_s1 + $0x64c] ss:$16 sps:$4 sm:$0xff]   ;;  %v8957_v62 = vld [vmem:[%s12652_s1 + $0x5c8] ss:$16 sps:$4 sm:$0xff]  }
 0x1fb   :  { %6167 = vmatpush2.bf16.msra.mxu0 %v8915_v6  ;;  %v8960_v6 = vld [vmem:[%s12652_s1 + $0x648] ss:$16 sps:$4 sm:$0xff]  }
 0x1fc   :  { %6184 = vmatpush1.bf16.msra.mxu1 %v8918_v16  ;;  %6168 = vmatprep.subr.bf16.mxu0 %v8923_v29  ;;  %v8965_v16 = vld [vmem:[%s12652_s1 + $0x5ac] ss:$16 sps:$4 sm:$0xff]  }
 0x1fd   :  { %6185 = vmatprep.subr.bf16.mxu1 %v8926_v30  ;;  %v8968_v29 = vld [vmem:[%s12652_s1 + $0x62c] ss:$16 sps:$4 sm:$0xff]   ;;  %v8963_v30 = vld [vmem:[%s12652_s1 + $0x5a8] ss:$16 sps:$4 sm:$0xff]  }
 0x1ff   :  { %6169 = vmatpush2.bf16.msra.mxu0 %v8921_v44  ;;  %v8966_v44 = vld [vmem:[%s12652_s1 + $0x628] ss:$16 sps:$4 sm:$0xff]  }
 0x200   :  { %6186 = vmatpush1.bf16.msra.mxu1 %v8924_v53  ;;  %6220 = vmatprep.subr.bf16.mxu0 %v8932_v12  ;;  %v8971_v53 = vld [vmem:[%s12652_s1 + $0x58c] ss:$16 sps:$4 sm:$0xff]   ;;  %v8969_v12 = vld [vmem:[%s12652_s1 + $0x588] ss:$16 sps:$4 sm:$0xff]  }
 0x201   :  { %6187 = vmatprep.subr.bf16.mxu1 %v8929_v11  ;;  %v8974_v11 = vld [vmem:[%s12652_s1 + $0x60c] ss:$16 sps:$4 sm:$0xff]  }
 0x202   :  { %v5885_v21 = vpop.f32.mrf.mxu0  ;;  %6171 = vmatmul.mubr.bf16.vlgmr.msra.gmra.mxu0 %v9802_v17 }
 0x203   :  { %v5926_v22 = vpop.f32.mrf.mxu1  ;;  %v5886_v23 = vadd.f32 %v5885_v21, %v11180_v28  ;;  %6221 = vmatpush1.bf16.msra.mxu0 %v8930_v15  ;;  %v8939_v28 = vld [vmem:[%s12652_s1 + $0x428] ss:$16 sps:$4 sm:$0xff]   ;;  %6252 = vmatprep.mubr.bf16.mxu0 %v9911_v57  ;;  %v8977_v15 = vld [vmem:[%s12652_s1 + $0x56c] ss:$16 sps:$4 sm:$0xff]  }
 0x204   :  { %6188 = vmatpush1.bf16.msra.mxu1 %v8927_v10  ;;  %v5887_v13 = vpop.f32.mrf.mxu0  ;;  %6222 = vmatprep.subr.bf16.mxu0 %v8938_v58  ;;  %v8945_v57 = vld [vmem:[%s12652_s1 + $0x408] ss:$16 sps:$4 sm:$0xff]   ;;  %v8986_v21 = vld [vmem:[%s12652_s1 + $0x7cc] ss:$16 sps:$4 sm:$0xff]  }
 0x205   :  { %v5928_v27 = vpop.f32.mrf.mxu1  ;;  %6189 = vmatprep.subr.bf16.mxu1 %v8935_v18  ;;  %v11382_v34 = vadd.f32 %v5926_v22, %v5886_v23  ;;  %v5888_v17 = vadd.f32 %v5887_v13, %v11190_v40  ;;  %v8947_v40 = vld [vmem:[%s12652_s1 + $0x40c] ss:$16 sps:$4 sm:$0xff]   ;;  %v8972_v10 = vld [vmem:[%s12652_s1 + $0x608] ss:$16 sps:$4 sm:$0xff]  }
 0x206   :  { %v5889_v36 = vpop.f32.mrf.mxu0  ;;  %v8980_v18 = vld [vmem:[%s12652_s1 + $0x7ec] ss:$16 sps:$4 sm:$0xff]   ;;  %v8975_v58 = vld [vmem:[%s12652_s1 + $0x568] ss:$16 sps:$4 sm:$0xff]  }
 0x207   :  { %v5930_v41 = vpop.f32.mrf.mxu1  ;;  %v11392_v51 = vadd.f32 %v5928_v27, %v5888_v17  ;;  %6223 = vmatpush1.bf16.msra.mxu0 %v8936_v7  ;;  %v8983_v7 = vld [vmem:[%s12652_s1 + $0x54c] ss:$16 sps:$4 sm:$0xff]   ;;  %v8981_v22 = vld [vmem:[%s12652_s1 + $0x548] ss:$16 sps:$4 sm:$0xff]  }
 0x208   :  { %6190 = vmatpush1.bf16.msra.mxu1 %v8933_v20  ;;  %v5890_v26 = vpop.f32.mrf.mxu0  ;;  %6224 = vmatprep.subr.bf16.mxu0 %v8944_v19  ;;  %v8978_v20 = vld [vmem:[%s12652_s1 + $0x7e8] ss:$16 sps:$4 sm:$0xff]  }
 0x209   :  { %v5931_v24 = vpop.f32.mrf.mxu1  ;;  %6191 = vmatprep.subr.bf16.mxu1 %v8941_v31  ;;  %v8984_v23 = vld [vmem:[%s12652_s1 + $0x7c8] ss:$16 sps:$4 sm:$0xff]  }
 0x20b   :  { %6225 = vmatpush1.bf16.msra.mxu0 %v8942_v35 }
 0x20c   :  { %6192 = vmatpush1.bf16.msra.mxu1 %v8939_v28  ;;  %6226 = vmatprep.subr.bf16.mxu0 %v8950_v3 }
 0x20d   :  { %6193 = vmatprep.subr.bf16.mxu1 %v8947_v40 }
 0x20f   :  { %6227 = vmatpush1.bf16.msra.mxu0 %v8948_v42 }
 0x210   :  { %6194 = vmatpush1.bf16.msra.mxu1 %v8945_v57  ;;  %6228 = vmatprep.subr.bf16.mxu0 %v8956_v25 }
 0x211   :  { %6195 = vmatprep.subr.bf16.mxu1 %v8953_v49 }
 0x213   :  { %6229 = vmatpush1.bf16.msra.mxu0 %v8954_v60 }
 0x214   :  { %6196 = vmatpush2.bf16.msra.mxu1 %v8951_v56  ;;  %6230 = vmatprep.subr.bf16.mxu0 %v8962_v2 }
 0x215   :  { %6197 = vmatprep.subr.bf16.mxu1 %v8959_v61 }
 0x217   :  { %6231 = vmatpush1.bf16.msra.mxu0 %v8960_v6 }
 0x218   :  { %6198 = vmatpush2.bf16.msra.mxu1 %v8957_v62  ;;  %6232 = vmatprep.subr.bf16.mxu0 %v8968_v29 }
 0x219   :  { %6199 = vmatprep.subr.bf16.mxu1 %v8965_v16 }
 0x21b   :  { %6233 = vmatpush1.bf16.msra.mxu0 %v8966_v44 }
 0x21c   :  { %6200 = vmatpush2.bf16.msra.mxu1 %v8963_v30  ;;  %6234 = vmatprep.subr.bf16.mxu0 %v8974_v11 }
 0x21d   :  { %6201 = vmatprep.subr.bf16.mxu1 %v8971_v53 }
 0x21f   :  { %6235 = vmatpush1.bf16.msra.mxu0 %v8972_v10 }
 0x220   :  { %6202 = vmatpush2.bf16.msra.mxu1 %v8969_v12  ;;  %6236 = vmatprep.subr.bf16.mxu0 %v8980_v18 }
 0x221   :  { %6203 = vmatprep.subr.bf16.mxu1 %v8977_v15 }
 0x223   :  { %6237 = vmatpush2.bf16.msra.mxu0 %v8978_v20 }
 0x224   :  { %6204 = vmatpush2.bf16.msra.mxu1 %v8975_v58 }
 0x225   :  { %12 = vsyncpa [#allocation3], 0  ;;  %6205 = vmatprep.subr.bf16.mxu1 %v8983_v7  ;;  %6238 = vmatprep.subr.bf16.mxu0 %v8986_v21  ;;  %v8989_v13 = vld [vmem:[%s12652_s1 + $0x52c] ss:$16 sps:$4 sm:$0xff]   ;;  %v8987_v31 = vld [vmem:[%s12652_s1 + $0x528] ss:$16 sps:$4 sm:$0xff]  }
 0x226   :  { %v8992_v27 = vld [vmem:[%s12652_s1 + $0x7ac] ss:$16 sps:$4 sm:$0xff]   ;;  %v8990_v19 = vld [vmem:[%s12652_s1 + $0x7a8] ss:$16 sps:$4 sm:$0xff]   ;;  %vm9544_vm1 = vmmov 0   ;;  %vm7135_vm2 = vcmask 58368  }
 0x227   :  { %6239 = vmatpush2.bf16.msra.mxu0 %v8984_v23  ;;  %v8995_v17 = vld [vmem:[%s12652_s1 + $0x50c] ss:$16 sps:$4 sm:$0xff]   ;;  %v8993_v35 = vld [vmem:[%s12652_s1 + $0x508] ss:$16 sps:$4 sm:$0xff]  }
 0x228   :  { %6206 = vmatpush2.bf16.msra.mxu1 %v8981_v22  ;;  %6240 = vmatprep.subr.bf16.mxu0 %v8992_v27  ;;  %v8998_v28 = vld [vmem:[%s12652_s1 + $0x78c] ss:$16 sps:$4 sm:$0xff]   ;;  %v8996_v36 = vld [vmem:[%s12652_s1 + $0x788] ss:$16 sps:$4 sm:$0xff]  }
 0x229   :  { %6207 = vmatprep.subr.bf16.mxu1 %v8989_v13  ;;  %v9001_v41 = vld [vmem:[%s12652_s1 + $0x76c] ss:$16 sps:$4 sm:$0xff]   ;;  %v8999_v24 = vld [vmem:[%s12652_s1 + $0x768] ss:$16 sps:$4 sm:$0xff]  }
 0x22a   :  { %v9004_v26 = vld [vmem:[%s12652_s1 + $0x8ec] ss:$16 sps:$4 sm:$0xff]   ;;  %v9002_v40 = vld [vmem:[%s12652_s1 + $0x8e8] ss:$16 sps:$4 sm:$0xff]  }
 0x22b   :  { %6241 = vmatpush2.bf16.msra.mxu0 %v8990_v19  ;;  %v9007_v3 = vld [vmem:[%s12652_s1 + $0x74c] ss:$16 sps:$4 sm:$0xff]   ;;  %v9005_v42 = vld [vmem:[%s12652_s1 + $0x748] ss:$16 sps:$4 sm:$0xff]  }
 0x22c   :  { %6208 = vmatpush2.bf16.msra.mxu1 %v8987_v31  ;;  %6242 = vmatprep.subr.bf16.mxu0 %v8998_v28  ;;  %v9010_v57 = vld [vmem:[%s12652_s1 + $0x8cc] ss:$16 sps:$4 sm:$0xff]   ;;  %v9008_v49 = vld [vmem:[%s12652_s1 + $0x8c8] ss:$16 sps:$4 sm:$0xff]  }
 0x22d   :  { %6209 = vmatprep.subr.bf16.mxu1 %v8995_v17  ;;  %v9013_v25 = vld [vmem:[%s12652_s1 + $0x72c] ss:$16 sps:$4 sm:$0xff]   ;;  %v9011_v56 = vld [vmem:[%s12652_s1 + $0x728] ss:$16 sps:$4 sm:$0xff]  }
 0x22e   :  { %v9014_v60 = vld [vmem:[%s12652_s1 + $0x8a8] ss:$16 sps:$4 sm:$0xff]   ;;  %v9019_v61 = vld [vmem:[%s12652_s1 + $0x70c] ss:$16 sps:$4 sm:$0xff]  }
 0x22f   :  { %6243 = vmatpush2.bf16.msra.mxu0 %v8996_v36  ;;  %v9017_v2 = vld [vmem:[%s12652_s1 + $0x708] ss:$16 sps:$4 sm:$0xff]   ;;  %v9025_v6 = vld [vmem:[%s12652_s1 + $0x86c] ss:$16 sps:$4 sm:$0xff]  }
 0x230   :  { %6210 = vmatpush2.bf16.msra.mxu1 %v8993_v35  ;;  %6244 = vmatprep.subr.bf16.mxu0 %v9001_v41  ;;  %v9020_v62 = vld [vmem:[%s12652_s1 + $0x888] ss:$16 sps:$4 sm:$0xff]   ;;  %v9028_v16 = vld [vmem:[%s12652_s1 + $0xaec] ss:$16 sps:$4 sm:$0xff]  }
 0x231   :  { %6261 = vmatprep.subr.bf16.mxu1 %v9004_v26  ;;  %v9023_v29 = vld [vmem:[%s12652_s1 + $0x868] ss:$16 sps:$4 sm:$0xff]   ;;  %v9031_v44 = vld [vmem:[%s12652_s1 + $0x84c] ss:$16 sps:$4 sm:$0xff]  }
 0x232   :  { %v9026_v30 = vld [vmem:[%s12652_s1 + $0xae8] ss:$16 sps:$4 sm:$0xff]   ;;  %v9034_v53 = vld [vmem:[%s12652_s1 + $0xacc] ss:$16 sps:$4 sm:$0xff]  }
 0x233   :  { %6212 = vmatmul.mubr.bf16.vlgmr.msra.gmra.mxu1 %v10019_v32  ;;  %6245 = vmatpush2.bf16.msra.mxu0 %v8999_v24  ;;  %v9016_v32 = vld [vmem:[%s12652_s1 + $0x8ac] ss:$16 sps:$4 sm:$0xff]   ;;  %v9029_v15 = vld [vmem:[%s12652_s1 + $0x848] ss:$16 sps:$4 sm:$0xff]  }
 0x234   :  { %6262 = vmatpush1.bf16.msra.mxu1 %v9002_v40  ;;  %6246 = vmatprep.subr.bf16.mxu0 %v9007_v3  ;;  %v9032_v18 = vld [vmem:[%s12652_s1 + $0xac8] ss:$16 sps:$4 sm:$0xff]   ;;  %v9049_v36 = vld [vmem:[%s12652_s1 + $0x9ec] ss:$16 sps:$4 sm:$0xff]  }
 0x235   :  { %6263 = vmatprep.subr.bf16.mxu1 %v9010_v57  ;;  %6293 = vmatprep.mubr.bf16.mxu1 %v10062_v48  ;;  %v9022_v48 = vld [vmem:[%s12652_s1 + $0x88c] ss:$16 sps:$4 sm:$0xff]   ;;  %v9035_v27 = vld [vmem:[%s12652_s1 + $0x828] ss:$16 sps:$4 sm:$0xff]  }
 0x236   :  { %v9038_v31 = vld [vmem:[%s12652_s1 + $0xaa8] ss:$16 sps:$4 sm:$0xff]   ;;  %v9052_v41 = vld [vmem:[%s12652_s1 + $0xa6c] ss:$16 sps:$4 sm:$0xff]  }
 0x237   :  { %6247 = vmatpush2.bf16.msra.mxu0 %v9005_v42  ;;  %v9041_v28 = vld [vmem:[%s12652_s1 + $0x808] ss:$16 sps:$4 sm:$0xff]   ;;  %v9055_v40 = vld [vmem:[%s12652_s1 + $0x9cc] ss:$16 sps:$4 sm:$0xff]  }
 0x238   :  { %6264 = vmatpush1.bf16.msra.mxu1 %v9008_v49  ;;  %6248 = vmatprep.subr.bf16.mxu0 %v9013_v25  ;;  %v9044_v35 = vld [vmem:[%s12652_s1 + $0xa88] ss:$16 sps:$4 sm:$0xff]   ;;  %v9058_v3 = vld [vmem:[%s12652_s1 + $0xa4c] ss:$16 sps:$4 sm:$0xff]  }
 0x239   :  { %6265 = vmatprep.subr.bf16.mxu1 %v9016_v32  ;;  %v9047_v26 = vld [vmem:[%s12652_s1 + $0x9e8] ss:$16 sps:$4 sm:$0xff]   ;;  %v9061_v49 = vld [vmem:[%s12652_s1 + $0x9ac] ss:$16 sps:$4 sm:$0xff]  }
 0x23a   :  { %v9050_v24 = vld [vmem:[%s12652_s1 + $0xa68] ss:$16 sps:$4 sm:$0xff]   ;;  %v9064_v25 = vld [vmem:[%s12652_s1 + $0xa2c] ss:$16 sps:$4 sm:$0xff]  }
 0x23b   :  { %6249 = vmatpush2.bf16.msra.mxu0 %v9011_v56  ;;  %v9053_v57 = vld [vmem:[%s12652_s1 + $0x9c8] ss:$16 sps:$4 sm:$0xff]  }
 0x23c   :  { %6266 = vmatpush1.bf16.msra.mxu1 %v9014_v60  ;;  %6250 = vmatprep.subr.bf16.mxu0 %v9019_v61  ;;  %v9056_v42 = vld [vmem:[%s12652_s1 + $0xa48] ss:$16 sps:$4 sm:$0xff]   ;;  %v9067_v60 = vld [vmem:[%s12652_s1 + $0x98c] ss:$16 sps:$4 sm:$0xff]  }
 0x23d   :  { %6267 = vmatprep.subr.bf16.mxu1 %v9022_v48  ;;  %v9059_v32 = vld [vmem:[%s12652_s1 + $0x9a8] ss:$16 sps:$4 sm:$0xff]   ;;  %v9070_v61 = vld [vmem:[%s12652_s1 + $0xa0c] ss:$16 sps:$4 sm:$0xff]  }
 0x23e   :  { %v9062_v56 = vld [vmem:[%s12652_s1 + $0xa28] ss:$16 sps:$4 sm:$0xff]  }
 0x23f   :  { %6251 = vmatpush2.bf16.msra.mxu0 %v9017_v2  ;;  %v9065_v48 = vld [vmem:[%s12652_s1 + $0x988] ss:$16 sps:$4 sm:$0xff]  }
 0x240   :  { %6268 = vmatpush1.bf16.msra.mxu1 %v9020_v62  ;;  %6302 = vmatprep.subr.bf16.mxu0 %v9028_v16  ;;  %v9068_v2 = vld [vmem:[%s12652_s1 + $0xa08] ss:$16 sps:$4 sm:$0xff]   ;;  %v9073_v62 = vld [vmem:[%s12652_s1 + $0x96c] ss:$16 sps:$4 sm:$0xff]  }
 0x241   :  { %6269 = vmatprep.subr.bf16.mxu1 %v9025_v6  ;;  %v9076_v6 = vld [vmem:[%s12652_s1 + $0xbec] ss:$16 sps:$4 sm:$0xff]   ;;  %v9071_v16 = vld [vmem:[%s12652_s1 + $0x968] ss:$16 sps:$4 sm:$0xff]  }
 0x242   :  { %v5967_v11 = vpop.f32.mrf.mxu0  ;;  %6253 = vmatmul.mubr.bf16.vlgmr.msra.gmra.mxu0 %v10023_v33  ;;  %v9037_v33 = vld [vmem:[%s12652_s1 + $0x82c] ss:$16 sps:$4 sm:$0xff]  }
 0x243   :  { %v6008_v12 = vpop.f32.mrf.mxu1  ;;  %v5968_v10 = vadd.f32 %v5967_v11, %v11382_v34  ;;  %6303 = vmatpush1.bf16.msra.mxu0 %v9026_v30  ;;  %v9040_v34 = vld [vmem:[%s12652_s1 + $0xaac] ss:$16 sps:$4 sm:$0xff]   ;;  %6334 = vmatprep.mubr.bf16.mxu0 %v10070_v52  ;;  %v9080_v11 = vld [vmem:[%s12652_s1 + $0xbc8] ss:$16 sps:$4 sm:$0xff]  }
 0x244   :  { %6270 = vmatpush1.bf16.msra.mxu1 %v9023_v29  ;;  %v5969_v58 = vpop.f32.mrf.mxu0  ;;  %6304 = vmatprep.subr.bf16.mxu0 %v9034_v53  ;;  %v9043_v52 = vld [vmem:[%s12652_s1 + $0x80c] ss:$16 sps:$4 sm:$0xff]   ;;  %v9074_v29 = vld [vmem:[%s12652_s1 + $0xbe8] ss:$16 sps:$4 sm:$0xff]  }
 0x245   :  { %v6010_v20 = vpop.f32.mrf.mxu1  ;;  %6271 = vmatprep.subr.bf16.mxu1 %v9031_v44  ;;  %v11584_v7 = vadd.f32 %v6008_v12, %v5968_v10  ;;  %v5970_v21 = vadd.f32 %v5969_v58, %v11392_v51  ;;  %v9046_v51 = vld [vmem:[%s12652_s1 + $0xa8c] ss:$16 sps:$4 sm:$0xff]   ;;  %v9077_v53 = vld [vmem:[%s12652_s1 + $0x948] ss:$16 sps:$4 sm:$0xff]  }
 0x246   :  { %v5971_v22 = vpop.f32.mrf.mxu0  ;;  %v9079_v30 = vld [vmem:[%s12652_s1 + $0x94c] ss:$16 sps:$4 sm:$0xff]  }
 0x247   :  { %v6012_v23 = vpop.f32.mrf.mxu1  ;;  %v11588_v13 = vadd.f32 %v6010_v20, %v5970_v21  ;;  %6305 = vmatpush1.bf16.msra.mxu0 %v9032_v18  ;;  %v9082_v44 = vld [vmem:[%s12652_s1 + $0xbcc] ss:$16 sps:$4 sm:$0xff]   ;;  %v9086_v18 = vld [vmem:[%s12652_s1 + $0xba8] ss:$16 sps:$4 sm:$0xff]  }
 0x248   :  { %6272 = vmatpush1.bf16.msra.mxu1 %v9029_v15  ;;  %v5972_v19 = vpop.f32.mrf.mxu0  ;;  %6306 = vmatprep.subr.bf16.mxu0 %v9040_v34  ;;  %v9085_v12 = vld [vmem:[%s12652_s1 + $0x92c] ss:$16 sps:$4 sm:$0xff]   ;;  %v9083_v15 = vld [vmem:[%s12652_s1 + $0x928] ss:$16 sps:$4 sm:$0xff]  }
 0x249   :  { %v6013_v17 = vpop.f32.mrf.mxu1  ;;  %6273 = vmatprep.subr.bf16.mxu1 %v9037_v33  ;;  %v9088_v10 = vld [vmem:[%s12652_s1 + $0xbac] ss:$16 sps:$4 sm:$0xff]   ;;  %v9089_v33 = vld [vmem:[%s12652_s1 + $0x908] ss:$16 sps:$4 sm:$0xff]  }
 0x24a   :  { %v9091_v58 = vld [vmem:[%s12652_s1 + $0x90c] ss:$16 sps:$4 sm:$0xff]   ;;  %v9092_v34 = vld [vmem:[%s12652_s1 + $0xb88] ss:$16 sps:$4 sm:$0xff]  }
 0x24b   :  { %6307 = vmatpush1.bf16.msra.mxu0 %v9038_v31  ;;  %v9094_v20 = vld [vmem:[%s12652_s1 + $0xb8c] ss:$16 sps:$4 sm:$0xff]   ;;  %v9095_v23 = vld [vmem:[%s12652_s1 + $0xb68] ss:$16 sps:$4 sm:$0xff]  }
 0x24c   :  { %6274 = vmatpush1.bf16.msra.mxu1 %v9035_v27  ;;  %6308 = vmatprep.subr.bf16.mxu0 %v9046_v51  ;;  %v9097_v21 = vld [vmem:[%s12652_s1 + $0xb6c] ss:$16 sps:$4 sm:$0xff]   ;;  %v9098_v27 = vld [vmem:[%s12652_s1 + $0xce8] ss:$16 sps:$4 sm:$0xff]  }
 0x24d   :  { %6275 = vmatprep.subr.bf16.mxu1 %v9043_v52  ;;  %v9100_v22 = vld [vmem:[%s12652_s1 + $0xcec] ss:$16 sps:$4 sm:$0xff]   ;;  %v9101_v52 = vld [vmem:[%s12652_s1 + $0xb48] ss:$16 sps:$4 sm:$0xff]  }
 0x24e   :  { %v9103_v31 = vld [vmem:[%s12652_s1 + $0xb4c] ss:$16 sps:$4 sm:$0xff]   ;;  %v9104_v51 = vld [vmem:[%s12652_s1 + $0xcc8] ss:$16 sps:$4 sm:$0xff]  }
 0x24f   :  { %6309 = vmatpush1.bf16.msra.mxu0 %v9044_v35  ;;  %v9106_v19 = vld [vmem:[%s12652_s1 + $0xccc] ss:$16 sps:$4 sm:$0xff]  }
 0x250   :  { %6276 = vmatpush1.bf16.msra.mxu1 %v9041_v28  ;;  %6310 = vmatprep.subr.bf16.mxu0 %v9052_v41  ;;  %v9109_v35 = vld [vmem:[%s12652_s1 + $0xb2c] ss:$16 sps:$4 sm:$0xff]   ;;  %v9107_v41 = vld [vmem:[%s12652_s1 + $0xb28] ss:$16 sps:$4 sm:$0xff]  }
 0x251   :  { %6277 = vmatprep.subr.bf16.mxu1 %v9049_v36 }
 0x253   :  { %6311 = vmatpush1.bf16.msra.mxu0 %v9050_v24 }
 0x254   :  { %6278 = vmatpush2.bf16.msra.mxu1 %v9047_v26  ;;  %6312 = vmatprep.subr.bf16.mxu0 %v9058_v3  ;;  %v9110_v26 = vld [vmem:[%s12652_s1 + $0xca8] ss:$16 sps:$4 sm:$0xff]  }
 0x255   :  { %6279 = vmatprep.subr.bf16.mxu1 %v9055_v40  ;;  %v9115_v40 = vld [vmem:[%s12652_s1 + $0xb0c] ss:$16 sps:$4 sm:$0xff]   ;;  %v9113_v3 = vld [vmem:[%s12652_s1 + $0xb08] ss:$16 sps:$4 sm:$0xff]  }
 0x257   :  { %6313 = vmatpush1.bf16.msra.mxu0 %v9056_v42  ;;  %v9121_v42 = vld [vmem:[%s12652_s1 + $0xc6c] ss:$16 sps:$4 sm:$0xff]  }
 0x258   :  { %6280 = vmatpush2.bf16.msra.mxu1 %v9053_v57  ;;  %6314 = vmatprep.subr.bf16.mxu0 %v9064_v25  ;;  %v9116_v57 = vld [vmem:[%s12652_s1 + $0xc88] ss:$16 sps:$4 sm:$0xff]  }
 0x259   :  { %6281 = vmatprep.subr.bf16.mxu1 %v9061_v49  ;;  %v9124_v49 = vld [vmem:[%s12652_s1 + $0xeec] ss:$16 sps:$4 sm:$0xff]   ;;  %v9119_v25 = vld [vmem:[%s12652_s1 + $0xc68] ss:$16 sps:$4 sm:$0xff]  }
 0x25b   :  { %6315 = vmatpush1.bf16.msra.mxu0 %v9062_v56  ;;  %v9127_v56 = vld [vmem:[%s12652_s1 + $0xc4c] ss:$16 sps:$4 sm:$0xff]  }
 0x25c   :  { %6282 = vmatpush2.bf16.msra.mxu1 %v9059_v32  ;;  %6316 = vmatprep.subr.bf16.mxu0 %v9070_v61  ;;  %v9122_v32 = vld [vmem:[%s12652_s1 + $0xee8] ss:$16 sps:$4 sm:$0xff]  }
 0x25d   :  { %6283 = vmatprep.subr.bf16.mxu1 %v9067_v60  ;;  %v9130_v60 = vld [vmem:[%s12652_s1 + $0xecc] ss:$16 sps:$4 sm:$0xff]  }
 0x25f   :  { %6317 = vmatpush1.bf16.msra.mxu0 %v9068_v2  ;;  %v9125_v2 = vld [vmem:[%s12652_s1 + $0xc48] ss:$16 sps:$4 sm:$0xff]  }
 0x260   :  { %6284 = vmatpush2.bf16.msra.mxu1 %v9065_v48  ;;  %6318 = vmatprep.subr.bf16.mxu0 %v9076_v6 }
 0x261   :  { %6285 = vmatprep.subr.bf16.mxu1 %v9073_v62  ;;  %v9128_v62 = vld [vmem:[%s12652_s1 + $0xec8] ss:$16 sps:$4 sm:$0xff]  }
 0x263   :  { %6319 = vmatpush2.bf16.msra.mxu0 %v9074_v29 }
 0x264   :  { %6286 = vmatpush2.bf16.msra.mxu1 %v9071_v16  ;;  %6320 = vmatprep.subr.bf16.mxu0 %v9082_v44  ;;  %v9133_v16 = vld [vmem:[%s12652_s1 + $0xc2c] ss:$16 sps:$4 sm:$0xff]  }
 0x265   :  { %6287 = vmatprep.subr.bf16.mxu1 %v9079_v30 }
 0x267   :  { %6321 = vmatpush2.bf16.msra.mxu0 %v9080_v11  ;;  %v9134_v11 = vld [vmem:[%s12652_s1 + $0xea8] ss:$16 sps:$4 sm:$0xff]  }
 0x268   :  { %6288 = vmatpush2.bf16.msra.mxu1 %v9077_v53  ;;  %6322 = vmatprep.subr.bf16.mxu0 %v9088_v10  ;;  %v9131_v53 = vld [vmem:[%s12652_s1 + $0xc28] ss:$16 sps:$4 sm:$0xff]  }
 0x269   :  { %6289 = vmatprep.subr.bf16.mxu1 %v9085_v12  ;;  %v9137_v10 = vld [vmem:[%s12652_s1 + $0xc08] ss:$16 sps:$4 sm:$0xff]  }
 0x26b   :  { %6323 = vmatpush2.bf16.msra.mxu0 %v9086_v18  ;;  %v9145_v18 = vld [vmem:[%s12652_s1 + $0xdec] ss:$16 sps:$4 sm:$0xff]  }
 0x26c   :  { %6290 = vmatpush2.bf16.msra.mxu1 %v9083_v15  ;;  %6324 = vmatprep.subr.bf16.mxu0 %v9094_v20  ;;  %v9140_v15 = vld [vmem:[%s12652_s1 + $0xe88] ss:$16 sps:$4 sm:$0xff]  }
 0x26d   :  { %6291 = vmatprep.subr.bf16.mxu1 %v9091_v58  ;;  %v9148_v58 = vld [vmem:[%s12652_s1 + $0xe6c] ss:$16 sps:$4 sm:$0xff]   ;;  %v9143_v20 = vld [vmem:[%s12652_s1 + $0xde8] ss:$16 sps:$4 sm:$0xff]  }
 0x26f   :  { %6325 = vmatpush2.bf16.msra.mxu0 %v9092_v34  ;;  %v9151_v34 = vld [vmem:[%s12652_s1 + $0xdcc] ss:$16 sps:$4 sm:$0xff]  }
 0x270   :  { %6292 = vmatpush2.bf16.msra.mxu1 %v9089_v33  ;;  %6326 = vmatprep.subr.bf16.mxu0 %v9097_v21  ;;  %v9146_v33 = vld [vmem:[%s12652_s1 + $0xe68] ss:$16 sps:$4 sm:$0xff]   ;;  %v9154_v21 = vld [vmem:[%s12652_s1 + $0xe4c] ss:$16 sps:$4 sm:$0xff]  }
 0x271   :  { %6343 = vmatprep.subr.bf16.mxu1 %v9100_v22  ;;  %v9149_v22 = vld [vmem:[%s12652_s1 + $0xdc8] ss:$16 sps:$4 sm:$0xff]  }
 0x273   :  { %v6090_v17 = vpop.f32.mrf.mxu1  ;;  %6294 = vmatmul.mubr.bf16.vlgmr.msra.gmra.mxu1 %v10253_v4  ;;  %6327 = vmatpush2.bf16.msra.mxu0 %v9095_v23  ;;  %v9112_v4 = vld [vmem:[%s12652_s1 + $0xcac] ss:$16 sps:$4 sm:$0xff]   ;;  %v9152_v23 = vld [vmem:[%s12652_s1 + $0xe48] ss:$16 sps:$4 sm:$0xff]  }
 0x274   :  { %6344 = vmatpush1.bf16.msra.mxu1 %v9098_v27  ;;  %6328 = vmatprep.subr.bf16.mxu0 %v9103_v31  ;;  %v9157_v27 = vld [vmem:[%s12652_s1 + $0xdac] ss:$16 sps:$4 sm:$0xff]  }
 0x275   :  { %v6092_v28 = vpop.f32.mrf.mxu1  ;;  %6345 = vmatprep.subr.bf16.mxu1 %v9106_v19  ;;  %6375 = vmatprep.mubr.bf16.mxu1 %v10271_v8  ;;  %v9118_v8 = vld [vmem:[%s12652_s1 + $0xc8c] ss:$16 sps:$4 sm:$0xff]   ;;  %v9155_v19 = vld [vmem:[%s12652_s1 + $0xda8] ss:$16 sps:$4 sm:$0xff]  }
 0x276   :  { %v9160_v31 = vld [vmem:[%s12652_s1 + $0xe2c] ss:$16 sps:$4 sm:$0xff]  }
 0x277   :  { %v6094_v36 = vpop.f32.mrf.mxu1  ;;  %6329 = vmatpush2.bf16.msra.mxu0 %v9101_v52  ;;  %v9163_v52 = vld [vmem:[%s12652_s1 + $0xd8c] ss:$16 sps:$4 sm:$0xff]  }
 0x278   :  { %6346 = vmatpush1.bf16.msra.mxu1 %v9104_v51  ;;  %6330 = vmatprep.subr.bf16.mxu0 %v9109_v35  ;;  %v9166_v51 = vld [vmem:[%s12652_s1 + $0xe0c] ss:$16 sps:$4 sm:$0xff]   ;;  %v9164_v35 = vld [vmem:[%s12652_s1 + $0xe08] ss:$16 sps:$4 sm:$0xff]  }
 0x279   :  { %v6095_v24 = vpop.f32.mrf.mxu1  ;;  %6347 = vmatprep.subr.bf16.mxu1 %v9112_v4  ;;  %v9169_v4 = vld [vmem:[%s12652_s1 + $0xd6c] ss:$16 sps:$4 sm:$0xff]  }
 0x27a   :  { %v9172_v36 = vld [vmem:[%s12652_s1 + $0xfec] ss:$16 sps:$4 sm:$0xff]  }
 0x27b   :  { %6331 = vmatpush2.bf16.msra.mxu0 %v9107_v41  ;;  %v9167_v41 = vld [vmem:[%s12652_s1 + $0xd68] ss:$16 sps:$4 sm:$0xff]   ;;  %v9175_v24 = vld [vmem:[%s12652_s1 + $0xd4c] ss:$16 sps:$4 sm:$0xff]  }
 0x27c   :  { %6348 = vmatpush1.bf16.msra.mxu1 %v9110_v26  ;;  %6332 = vmatprep.subr.bf16.mxu0 %v9115_v40  ;;  %v9170_v26 = vld [vmem:[%s12652_s1 + $0xfe8] ss:$16 sps:$4 sm:$0xff]   ;;  %v9178_v40 = vld [vmem:[%s12652_s1 + $0xfcc] ss:$16 sps:$4 sm:$0xff]  }
 0x27d   :  { %6349 = vmatprep.subr.bf16.mxu1 %v9118_v8  ;;  %v9173_v8 = vld [vmem:[%s12652_s1 + $0xd48] ss:$16 sps:$4 sm:$0xff]  }
 0x27f   :  { %6333 = vmatpush2.bf16.msra.mxu0 %v9113_v3  ;;  %v9176_v3 = vld [vmem:[%s12652_s1 + $0xfc8] ss:$16 sps:$4 sm:$0xff]  }
 0x280   :  { %6350 = vmatpush1.bf16.msra.mxu1 %v9116_v57  ;;  %6384 = vmatprep.subr.bf16.mxu0 %v9124_v49  ;;  %v9181_v57 = vld [vmem:[%s12652_s1 + $0xd2c] ss:$16 sps:$4 sm:$0xff]   ;;  %v9179_v49 = vld [vmem:[%s12652_s1 + $0xd28] ss:$16 sps:$4 sm:$0xff]  }
 0x281   :  { %6351 = vmatprep.subr.bf16.mxu1 %v9121_v42  ;;  %v9184_v42 = vld [vmem:[%s12652_s1 + $0xfac] ss:$16 sps:$4 sm:$0xff]  }
 0x282   :  { %v6049_v61 = vpop.f32.mrf.mxu0  ;;  %6335 = vmatmul.mubr.bf16.vlgmr.msra.gmra.mxu0 %v10257_v5  ;;  %v9136_v5 = vld [vmem:[%s12652_s1 + $0xeac] ss:$16 sps:$4 sm:$0xff]  }
 0x283   :  { %v6050_v48 = vadd.f32 %v6049_v61, %v11584_v7  ;;  %6385 = vmatpush1.bf16.msra.mxu0 %v9122_v32  ;;  %6416 = vmatprep.mubr.bf16.mxu0 %v10273_v9  ;;  %v9139_v9 = vld [vmem:[%s12652_s1 + $0xc0c] ss:$16 sps:$4 sm:$0xff]   ;;  %v9188_v61 = vld [vmem:[%s12652_s1 + $0xf88] ss:$16 sps:$4 sm:$0xff]  }
 0x284   :  { %6352 = vmatpush1.bf16.msra.mxu1 %v9119_v25  ;;  %v6051_v6 = vpop.f32.mrf.mxu0  ;;  %6386 = vmatprep.subr.bf16.mxu0 %v9130_v60  ;;  %v9182_v25 = vld [vmem:[%s12652_s1 + $0xfa8] ss:$16 sps:$4 sm:$0xff]   ;;  %v9187_v32 = vld [vmem:[%s12652_s1 + $0xd0c] ss:$16 sps:$4 sm:$0xff]  }
 0x285   :  { %6353 = vmatprep.subr.bf16.mxu1 %v9127_v56  ;;  %v11786_v7 = vadd.f32 %v6090_v17, %v6050_v48  ;;  %v6052_v29 = vadd.f32 %v6051_v6, %v11588_v13  ;;  %v9142_v13 = vld [vmem:[%s12652_s1 + $0xe8c] ss:$16 sps:$4 sm:$0xff]   ;;  %v9158_v17 = vld [vmem:[%s12652_s1 + $0xe28] ss:$16 sps:$4 sm:$0xff]  }
 0x286   :  { %v6053_v30 = vpop.f32.mrf.mxu0  ;;  %v9190_v56 = vld [vmem:[%s12652_s1 + $0xf8c] ss:$16 sps:$4 sm:$0xff]   ;;  %v9185_v60 = vld [vmem:[%s12652_s1 + $0xd08] ss:$16 sps:$4 sm:$0xff]  }
 0x287   :  { %v11790_v44 = vadd.f32 %v6092_v28, %v6052_v29  ;;  %6387 = vmatpush1.bf16.msra.mxu0 %v9128_v62  ;;  %v9161_v28 = vld [vmem:[%s12652_s1 + $0xd88] ss:$16 sps:$4 sm:$0xff]   ;;  %v9193_v48 = vld [vmem:[%s12652_s1 + $0xf6c] ss:$16 sps:$4 sm:$0xff]  }
 0x288   :  { %6354 = vmatpush1.bf16.msra.mxu1 %v9125_v2  ;;  %v6054_v12 = vpop.f32.mrf.mxu0  ;;  %6388 = vmatprep.subr.bf16.mxu0 %v9136_v5  ;;  %v9196_v2 = vld [vmem:[%s12652_s1 + $0x10ec] ss:$16 sps:$4 sm:$0xff]   ;;  %v9191_v62 = vld [vmem:[%s12652_s1 + $0xf68] ss:$16 sps:$4 sm:$0xff]  }
 0x289   :  { %6355 = vmatprep.subr.bf16.mxu1 %v9133_v16  ;;  %v9194_v6 = vld [vmem:[%s12652_s1 + $0x10e8] ss:$16 sps:$4 sm:$0xff]   ;;  %v9199_v16 = vld [vmem:[%s12652_s1 + $0xf4c] ss:$16 sps:$4 sm:$0xff]  }
 0x28a   :  { %v9202_v5 = vld [vmem:[%s12652_s1 + $0x10cc] ss:$16 sps:$4 sm:$0xff]   ;;  %v9197_v30 = vld [vmem:[%s12652_s1 + $0xf48] ss:$16 sps:$4 sm:$0xff]  }
 0x28b   :  { %6389 = vmatpush1.bf16.msra.mxu0 %v9134_v11  ;;  %v9205_v12 = vld [vmem:[%s12652_s1 + $0xf2c] ss:$16 sps:$4 sm:$0xff]  }
 0x28c   :  { %6356 = vmatpush1.bf16.msra.mxu1 %v9131_v53  ;;  %6390 = vmatprep.subr.bf16.mxu0 %v9142_v13  ;;  %v9200_v53 = vld [vmem:[%s12652_s1 + $0x10c8] ss:$16 sps:$4 sm:$0xff]  }
 0x28d   :  { %6357 = vmatprep.subr.bf16.mxu1 %v9139_v9  ;;  %v9203_v13 = vld [vmem:[%s12652_s1 + $0xf28] ss:$16 sps:$4 sm:$0xff]  }
 0x28f   :  { %6391 = vmatpush1.bf16.msra.mxu0 %v9140_v15 }
 0x290   :  { %6358 = vmatpush1.bf16.msra.mxu1 %v9137_v10  ;;  %6392 = vmatprep.subr.bf16.mxu0 %v9148_v58  ;;  %v9206_v10 = vld [vmem:[%s12652_s1 + $0x10a8] ss:$16 sps:$4 sm:$0xff]   ;;  %v1109_v58 = vsub.s32 2, %v9703_v43 }
 0x291   :  { %6359 = vmatprep.subr.bf16.mxu1 %v9145_v18  ;;  %v9211_v18 = vld [vmem:[%s12652_s1 + $0xf0c] ss:$16 sps:$4 sm:$0xff]  }
 0x293   :  { %6393 = vmatpush1.bf16.msra.mxu0 %v9146_v33  ;;  %v9209_v33 = vld [vmem:[%s12652_s1 + $0xf08] ss:$16 sps:$4 sm:$0xff]  }
 0x294   :  { %6360 = vmatpush2.bf16.msra.mxu1 %v9143_v20  ;;  %6394 = vmatprep.subr.bf16.mxu0 %v9154_v21  ;;  %v1113_v20 = vsub.s32 3, %v9703_v43  ;;  %v9217_v21 = vld [vmem:[%s12652_s1 + $0x106c] ss:$16 sps:$4 sm:$0xff]  }
 0x295   :  { %6361 = vmatprep.subr.bf16.mxu1 %v9151_v34  ;;  %v9212_v34 = vld [vmem:[%s12652_s1 + $0x1088] ss:$16 sps:$4 sm:$0xff]   ;;  %v9220_v43 = vld [vmem:[%s12652_s1 + $0x12ec] ss:$16 sps:$4 sm:$0xff]  }
 0x297   :  { %6395 = vmatpush1.bf16.msra.mxu0 %v9152_v23 }
 0x298   :  { %6362 = vmatpush2.bf16.msra.mxu1 %v9149_v22  ;;  %6396 = vmatprep.subr.bf16.mxu0 %v9160_v31  ;;  %v9519_v22 = vld [vmem:[%s12653_s2] sm:$0xf]  ;;  %v9215_v31 = vld [vmem:[%s12652_s1 + $0x1068] ss:$16 sps:$4 sm:$0xff]  }
 0x299   :  { %6363 = vmatprep.subr.bf16.mxu1 %v9157_v27  ;;  %v1110_v23 = vrot.slane %v9519_v22, %v1109_v58  ;;  %v1114_v27 = vrot.slane %v9519_v22, %v1113_v20  ;;  %v9274_v58 = vld [vmem:[%s12652_s1 + $0x13cc] ss:$16 sps:$4 sm:$0xff]   ;;  %v9269_v20 = vld [vmem:[%s12652_s1 + $0x1148] ss:$16 sps:$4 sm:$0xff]  }
 0x29a   :  { %v9278_v22 = vld [vmem:[%s12652_s1 + $0x13a8] ss:$16 sps:$4 sm:$0xff]  }
 0x29b   :  { %6397 = vmatpush1.bf16.msra.mxu0 %v9158_v17  ;;  %v9223_v17 = vld [vmem:[%s12652_s1 + $0x104c] ss:$16 sps:$4 sm:$0xff]  }
 0x29c   :  { %6364 = vmatpush2.bf16.msra.mxu1 %v9155_v19  ;;  %6398 = vmatprep.subr.bf16.mxu0 %v9166_v51  ;;  %v9218_v19 = vld [vmem:[%s12652_s1 + $0x12e8] ss:$16 sps:$4 sm:$0xff]  }
 0x29d   :  { %6365 = vmatprep.subr.bf16.mxu1 %v9163_v52  ;;  %v9226_v52 = vld [vmem:[%s12652_s1 + $0x12cc] ss:$16 sps:$4 sm:$0xff]  }
 0x29f   :  { %6399 = vmatpush1.bf16.msra.mxu0 %v9164_v35 }
 0x2a0   :  { %6366 = vmatpush2.bf16.msra.mxu1 %v9161_v28  ;;  %6400 = vmatprep.subr.bf16.mxu0 %v9172_v36  ;;  %v9221_v36 = vld [vmem:[%s12652_s1 + $0x1048] ss:$16 sps:$4 sm:$0xff]  }
 0x2a1   :  { %6367 = vmatprep.subr.bf16.mxu1 %v9169_v4 }
 0x2a3   :  { %6401 = vmatpush2.bf16.msra.mxu0 %v9170_v26 }
 0x2a4   :  { %6368 = vmatpush2.bf16.msra.mxu1 %v9167_v41  ;;  %6402 = vmatprep.subr.bf16.mxu0 %v9178_v40  ;;  %v9224_v41 = vld [vmem:[%s12652_s1 + $0x12c8] ss:$16 sps:$4 sm:$0xff]  }
 0x2a5   :  { %6369 = vmatprep.subr.bf16.mxu1 %v9175_v24  ;;  %v9232_v24 = vld [vmem:[%s12652_s1 + $0x12ac] ss:$16 sps:$4 sm:$0xff]  }
 0x2a7   :  { %6403 = vmatpush2.bf16.msra.mxu0 %v9176_v3  ;;  %v9227_v3 = vld [vmem:[%s12652_s1 + $0x1028] ss:$16 sps:$4 sm:$0xff]  }
 0x2a8   :  { %6370 = vmatpush2.bf16.msra.mxu1 %v9173_v8  ;;  %6404 = vmatprep.subr.bf16.mxu0 %v9184_v42 }
 0x2a9   :  { %6371 = vmatprep.subr.bf16.mxu1 %v9181_v57  ;;  %v9230_v57 = vld [vmem:[%s12652_s1 + $0x12a8] ss:$16 sps:$4 sm:$0xff]  }
 0x2ab   :  { %6405 = vmatpush2.bf16.msra.mxu0 %v9182_v25  ;;  %v9233_v25 = vld [vmem:[%s12652_s1 + $0x1008] ss:$16 sps:$4 sm:$0xff]  }
 0x2ac   :  { %6372 = vmatpush2.bf16.msra.mxu1 %v9179_v49  ;;  %6406 = vmatprep.subr.bf16.mxu0 %v9190_v56  ;;  %v9235_v49 = vld [vmem:[%s12652_s1 + $0x100c] ss:$16 sps:$4 sm:$0xff]  }
 0x2ad   :  { %6373 = vmatprep.subr.bf16.mxu1 %v9187_v32  ;;  %v9236_v32 = vld [vmem:[%s12652_s1 + $0x1288] ss:$16 sps:$4 sm:$0xff]   ;;  %v9241_v56 = vld [vmem:[%s12652_s1 + $0x11ec] ss:$16 sps:$4 sm:$0xff]  }
 0x2af   :  { %6407 = vmatpush2.bf16.msra.mxu0 %v9188_v61  ;;  %v9239_v61 = vld [vmem:[%s12652_s1 + $0x11e8] ss:$16 sps:$4 sm:$0xff]  }
 0x2b0   :  { %6374 = vmatpush2.bf16.msra.mxu1 %v9185_v60  ;;  %6408 = vmatprep.subr.bf16.mxu0 %v9193_v48  ;;  %v9244_v60 = vld [vmem:[%s12652_s1 + $0x126c] ss:$16 sps:$4 sm:$0xff]   ;;  %v9242_v48 = vld [vmem:[%s12652_s1 + $0x1268] ss:$16 sps:$4 sm:$0xff]  }
 0x2b1   :  { %6425 = vmatprep.subr.bf16.mxu1 %v9196_v2  ;;  %v9247_v2 = vld [vmem:[%s12652_s1 + $0x11cc] ss:$16 sps:$4 sm:$0xff]  }
 0x2b3   :  { %v6131_v29 = vpop.f32.mrf.mxu1  ;;  %6376 = vmatmul.mubr.bf16.vlgmr.msra.gmra.mxu1 %v10479_v37  ;;  %6409 = vmatpush2.bf16.msra.mxu0 %v9191_v62  ;;  %v9208_v37 = vld [vmem:[%s12652_s1 + $0x10ac] ss:$16 sps:$4 sm:$0xff]  }
 0x2b4   :  { %6426 = vmatpush1.bf16.msra.mxu1 %v9194_v6  ;;  %6410 = vmatprep.subr.bf16.mxu0 %v9199_v16  ;;  %v6132_v51 = vadd.f32 %v6131_v29, %v1110_v23  ;;  %v9250_v62 = vld [vmem:[%s12652_s1 + $0x124c] ss:$16 sps:$4 sm:$0xff]   ;;  %v9245_v6 = vld [vmem:[%s12652_s1 + $0x11c8] ss:$16 sps:$4 sm:$0xff]  }
 0x2b5   :  { %v6133_v11 = vpop.f32.mrf.mxu1  ;;  %6427 = vmatprep.subr.bf16.mxu1 %v9202_v5  ;;  %6457 = vmatprep.mubr.bf16.mxu1 %v10497_v46  ;;  %v9214_v46 = vld [vmem:[%s12652_s1 + $0x108c] ss:$16 sps:$4 sm:$0xff]   ;;  %v9248_v16 = vld [vmem:[%s12652_s1 + $0x1248] ss:$16 sps:$4 sm:$0xff]  }
 0x2b6   :  { %v6134_v35 = vadd.f32 %v6133_v11, %v1114_v27  ;;  %v9253_v5 = vld [vmem:[%s12652_s1 + $0x11ac] ss:$16 sps:$4 sm:$0xff]  }
 0x2b7   :  { %v6135_v9 = vpop.f32.mrf.mxu1  ;;  %6411 = vmatpush2.bf16.msra.mxu0 %v9197_v30  ;;  %v9256_v29 = vld [vmem:[%s12652_s1 + $0x122c] ss:$16 sps:$4 sm:$0xff]   ;;  %v9251_v30 = vld [vmem:[%s12652_s1 + $0x11a8] ss:$16 sps:$4 sm:$0xff]  }
 0x2b8   :  { %6428 = vmatpush1.bf16.msra.mxu1 %v9200_v53  ;;  %6412 = vmatprep.subr.bf16.mxu0 %v9205_v12  ;;  %v9254_v53 = vld [vmem:[%s12652_s1 + $0x1228] ss:$16 sps:$4 sm:$0xff]   ;;  %v9259_v11 = vld [vmem:[%s12652_s1 + $0x118c] ss:$16 sps:$4 sm:$0xff]  }
 0x2b9   :  { %v6136_v15 = vpop.f32.mrf.mxu1  ;;  %6429 = vmatprep.subr.bf16.mxu1 %v9208_v37  ;;  %v9262_v12 = vld [vmem:[%s12652_s1 + $0x120c] ss:$16 sps:$4 sm:$0xff]   ;;  %v9257_v37 = vld [vmem:[%s12652_s1 + $0x1188] ss:$16 sps:$4 sm:$0xff]  }
 0x2ba   :  { %v9260_v9 = vld [vmem:[%s12652_s1 + $0x1208] ss:$16 sps:$4 sm:$0xff]   ;;  %v9283_v23 = vld [vmem:[%s12652_s1 + $0x110c] ss:$16 sps:$4 sm:$0xff]  }
 0x2bb   :  { %6413 = vmatpush2.bf16.msra.mxu0 %v9203_v13  ;;  %v9265_v13 = vld [vmem:[%s12652_s1 + $0x116c] ss:$16 sps:$4 sm:$0xff]   ;;  %v9263_v15 = vld [vmem:[%s12652_s1 + $0x1168] ss:$16 sps:$4 sm:$0xff]  }
 0x2bc   :  { %6430 = vmatpush1.bf16.msra.mxu1 %v9206_v10  ;;  %6414 = vmatprep.subr.bf16.mxu0 %v9211_v18  ;;  %v9268_v10 = vld [vmem:[%s12652_s1 + $0x13ec] ss:$16 sps:$4 sm:$0xff]   ;;  %v9266_v18 = vld [vmem:[%s12652_s1 + $0x13e8] ss:$16 sps:$4 sm:$0xff]  }
 0x2bd   :  { %6431 = vmatprep.subr.bf16.mxu1 %v9214_v46  ;;  %v9271_v46 = vld [vmem:[%s12652_s1 + $0x114c] ss:$16 sps:$4 sm:$0xff]  }
 0x2be   :  { %v9286_v27 = vld [vmem:[%s12652_s1 + $0x138c] ss:$16 sps:$4 sm:$0xff]  }
 0x2bf   :  { %6415 = vmatpush2.bf16.msra.mxu0 %v9209_v33  ;;  %v9272_v33 = vld [vmem:[%s12652_s1 + $0x13c8] ss:$16 sps:$4 sm:$0xff]  }
 0x2c0   :  { %6432 = vmatpush1.bf16.msra.mxu1 %v9212_v34  ;;  %6466 = vmatprep.subr.bf16.mxu0 %v9220_v43  ;;  %v9277_v34 = vld [vmem:[%s12652_s1 + $0x112c] ss:$16 sps:$4 sm:$0xff]   ;;  %v9275_v43 = vld [vmem:[%s12652_s1 + $0x1128] ss:$16 sps:$4 sm:$0xff]  }
 0x2c1   :  { %6433 = vmatprep.subr.bf16.mxu1 %v9217_v21  ;;  %v9280_v21 = vld [vmem:[%s12652_s1 + $0x13ac] ss:$16 sps:$4 sm:$0xff]  }
 0x2c2   :  { %v6172_v28 = vpop.f32.mrf.mxu0  ;;  %6417 = vmatmul.mubr.bf16.vlgmr.msra.gmra.mxu0 %v10483_v38  ;;  %v9229_v38 = vld [vmem:[%s12652_s1 + $0x102c] ss:$16 sps:$4 sm:$0xff]  }
 0x2c3   :  { %v11980_v4 = vadd.f32 %v6172_v28, %v6132_v51  ;;  %6467 = vmatpush1.bf16.msra.mxu0 %v9218_v19  ;;  %6498 = vmatprep.mubr.bf16.mxu0 %v10499_v47  ;;  %v9238_v47 = vld [vmem:[%s12652_s1 + $0x128c] ss:$16 sps:$4 sm:$0xff]   ;;  %v9284_v19 = vld [vmem:[%s12652_s1 + $0x1388] ss:$16 sps:$4 sm:$0xff]  }
 0x2c4   :  { %6434 = vmatpush1.bf16.msra.mxu1 %v9215_v31  ;;  %v6174_v26 = vpop.f32.mrf.mxu0  ;;  %6468 = vmatprep.subr.bf16.mxu0 %v9226_v52  ;;  %v9281_v31 = vld [vmem:[%s12652_s1 + $0x1108] ss:$16 sps:$4 sm:$0xff]   ;;  %v9292_v52 = vld [vmem:[%s12652_s1 + $0x14ec] ss:$16 sps:$4 sm:$0xff]  }
 0x2c5   :  { %6435 = vmatprep.subr.bf16.mxu1 %v9223_v17  ;;  %v11994_v40 = vadd.f32 %v6174_v26, %v6134_v35  ;;  %v9289_v17 = vld [vmem:[%s12652_s1 + $0x136c] ss:$16 sps:$4 sm:$0xff]   ;;  %v9287_v51 = vld [vmem:[%s12652_s1 + $0x1368] ss:$16 sps:$4 sm:$0xff]  }
 0x2c6   :  { %v6176_v8 = vpop.f32.mrf.mxu0  ;;  %v9290_v28 = vld [vmem:[%s12652_s1 + $0x14e8] ss:$16 sps:$4 sm:$0xff]   ;;  %v9295_v35 = vld [vmem:[%s12652_s1 + $0x134c] ss:$16 sps:$4 sm:$0xff]  }
 0x2c7   :  { %6469 = vmatpush1.bf16.msra.mxu0 %v9224_v41 }
 0x2c8   :  { %6436 = vmatpush1.bf16.msra.mxu1 %v9221_v36  ;;  %v6177_v42 = vpop.f32.mrf.mxu0  ;;  %6470 = vmatprep.subr.bf16.mxu0 %v9232_v24  ;;  %v9298_v36 = vld [vmem:[%s12652_s1 + $0x14cc] ss:$16 sps:$4 sm:$0xff]   ;;  %v9296_v24 = vld [vmem:[%s12652_s1 + $0x14c8] ss:$16 sps:$4 sm:$0xff]  }
 0x2c9   :  { %6437 = vmatprep.subr.bf16.mxu1 %v9229_v38  ;;  %v9293_v38 = vld [vmem:[%s12652_s1 + $0x1348] ss:$16 sps:$4 sm:$0xff]  }
 0x2ca   :  { %v9299_v42 = vld [vmem:[%s12652_s1 + $0x1328] ss:$16 sps:$4 sm:$0xff]  }
 0x2cb   :  { %6471 = vmatpush1.bf16.msra.mxu0 %v9230_v57 }
 0x2cc   :  { %6438 = vmatpush1.bf16.msra.mxu1 %v9227_v3  ;;  %6472 = vmatprep.subr.bf16.mxu0 %v9238_v47  ;;  %v9301_v3 = vld [vmem:[%s12652_s1 + $0x132c] ss:$16 sps:$4 sm:$0xff]  }
 0x2cd   :  { %6439 = vmatprep.subr.bf16.mxu1 %v9235_v49  ;;  %v9302_v49 = vld [vmem:[%s12652_s1 + $0x14a8] ss:$16 sps:$4 sm:$0xff]  }
 0x2cf   :  { %6473 = vmatpush1.bf16.msra.mxu0 %v9236_v32  ;;  %v9308_v32 = vld [vmem:[%s12652_s1 + $0x1488] ss:$16 sps:$4 sm:$0xff]  }
 0x2d0   :  { %6440 = vmatpush1.bf16.msra.mxu1 %v9233_v25  ;;  %6474 = vmatprep.subr.bf16.mxu0 %v9244_v60  ;;  %v9305_v25 = vld [vmem:[%s12652_s1 + $0x1308] ss:$16 sps:$4 sm:$0xff]   ;;  %v9316_v60 = vld [vmem:[%s12652_s1 + $0x16ec] ss:$16 sps:$4 sm:$0xff]  }
 0x2d1   :  { %6441 = vmatprep.subr.bf16.mxu1 %v9241_v56  ;;  %v9313_v56 = vld [vmem:[%s12652_s1 + $0x146c] ss:$16 sps:$4 sm:$0xff]  }
 0x2d3   :  { %6475 = vmatpush1.bf16.msra.mxu0 %v9242_v48  ;;  %v9314_v48 = vld [vmem:[%s12652_s1 + $0x16e8] ss:$16 sps:$4 sm:$0xff]  }
 0x2d4   :  { %6442 = vmatpush2.bf16.msra.mxu1 %v9239_v61  ;;  %6476 = vmatprep.subr.bf16.mxu0 %v9250_v62  ;;  %v9311_v61 = vld [vmem:[%s12652_s1 + $0x1468] ss:$16 sps:$4 sm:$0xff]   ;;  %v9322_v62 = vld [vmem:[%s12652_s1 + $0x16cc] ss:$16 sps:$4 sm:$0xff]  }
 0x2d5   :  { %6443 = vmatprep.subr.bf16.mxu1 %v9247_v2  ;;  %v9319_v2 = vld [vmem:[%s12652_s1 + $0x144c] ss:$16 sps:$4 sm:$0xff]  }
 0x2d7   :  { %6477 = vmatpush1.bf16.msra.mxu0 %v9248_v16 }
 0x2d8   :  { %6444 = vmatpush2.bf16.msra.mxu1 %v9245_v6  ;;  %6478 = vmatprep.subr.bf16.mxu0 %v9256_v29  ;;  %v9320_v29 = vld [vmem:[%s12652_s1 + $0x16c8] ss:$16 sps:$4 sm:$0xff]  }
 0x2d9   :  { %6445 = vmatprep.subr.bf16.mxu1 %v9253_v5  ;;  %v9317_v5 = vld [vmem:[%s12652_s1 + $0x1448] ss:$16 sps:$4 sm:$0xff]  }
 0x2db   :  { %6479 = vmatpush1.bf16.msra.mxu0 %v9254_v53  ;;  %v9325_v53 = vld [vmem:[%s12652_s1 + $0x142c] ss:$16 sps:$4 sm:$0xff]  }
 0x2dc   :  { %6446 = vmatpush2.bf16.msra.mxu1 %v9251_v30  ;;  %6480 = vmatprep.subr.bf16.mxu0 %v9262_v12 }
 0x2dd   :  { %6447 = vmatprep.subr.bf16.mxu1 %v9259_v11 }
 0x2df   :  { %6481 = vmatpush1.bf16.msra.mxu0 %v9260_v9  ;;  %v9326_v9 = vld [vmem:[%s12652_s1 + $0x16a8] ss:$16 sps:$4 sm:$0xff]  }
 0x2e0   :  { %6448 = vmatpush2.bf16.msra.mxu1 %v9257_v37  ;;  %6482 = vmatprep.subr.bf16.mxu0 %v9268_v10  ;;  %v9323_v37 = vld [vmem:[%s12652_s1 + $0x1428] ss:$16 sps:$4 sm:$0xff]   ;;  %v9331_v10 = vld [vmem:[%s12652_s1 + $0x140c] ss:$16 sps:$4 sm:$0xff]  }
 0x2e1   :  { %6449 = vmatprep.subr.bf16.mxu1 %v9265_v13 }
 0x2e3   :  { %6483 = vmatpush2.bf16.msra.mxu0 %v9266_v18  ;;  %v9332_v18 = vld [vmem:[%s12652_s1 + $0x1688] ss:$16 sps:$4 sm:$0xff]  }
 0x2e4   :  { %6450 = vmatpush2.bf16.msra.mxu1 %v9263_v15  ;;  %6484 = vmatprep.subr.bf16.mxu0 %v9274_v58  ;;  %v9329_v15 = vld [vmem:[%s12652_s1 + $0x1408] ss:$16 sps:$4 sm:$0xff]   ;;  %v9340_v58 = vld [vmem:[%s12652_s1 + $0x166c] ss:$16 sps:$4 sm:$0xff]  }
 0x2e5   :  { %6451 = vmatprep.subr.bf16.mxu1 %v9271_v46  ;;  %v9337_v46 = vld [vmem:[%s12652_s1 + $0x15ec] ss:$16 sps:$4 sm:$0xff]  }
 0x2e7   :  { %6485 = vmatpush2.bf16.msra.mxu0 %v9272_v33  ;;  %v9338_v33 = vld [vmem:[%s12652_s1 + $0x1668] ss:$16 sps:$4 sm:$0xff]  }
 0x2e8   :  { %6452 = vmatpush2.bf16.msra.mxu1 %v9269_v20  ;;  %6486 = vmatprep.subr.bf16.mxu0 %v9280_v21  ;;  %v9335_v20 = vld [vmem:[%s12652_s1 + $0x15e8] ss:$16 sps:$4 sm:$0xff]   ;;  %v9346_v21 = vld [vmem:[%s12652_s1 + $0x164c] ss:$16 sps:$4 sm:$0xff]  }
 0x2e9   :  { %6453 = vmatprep.subr.bf16.mxu1 %v9277_v34  ;;  %v9343_v34 = vld [vmem:[%s12652_s1 + $0x15cc] ss:$16 sps:$4 sm:$0xff]  }
 0x2eb   :  { %6487 = vmatpush2.bf16.msra.mxu0 %v9278_v22  ;;  %v9344_v22 = vld [vmem:[%s12652_s1 + $0x1648] ss:$16 sps:$4 sm:$0xff]  }
 0x2ec   :  { %6454 = vmatpush2.bf16.msra.mxu1 %v9275_v43  ;;  %6488 = vmatprep.subr.bf16.mxu0 %v9286_v27  ;;  %v9341_v43 = vld [vmem:[%s12652_s1 + $0x15c8] ss:$16 sps:$4 sm:$0xff]   ;;  %v9352_v27 = vld [vmem:[%s12652_s1 + $0x162c] ss:$16 sps:$4 sm:$0xff]  }
 0x2ed   :  { %6455 = vmatprep.subr.bf16.mxu1 %v9283_v23  ;;  %v9349_v23 = vld [vmem:[%s12652_s1 + $0x15ac] ss:$16 sps:$4 sm:$0xff]  }
 0x2ef   :  { %6489 = vmatpush2.bf16.msra.mxu0 %v9284_v19  ;;  %v9350_v19 = vld [vmem:[%s12652_s1 + $0x1628] ss:$16 sps:$4 sm:$0xff]  }
 0x2f0   :  { %6456 = vmatpush2.bf16.msra.mxu1 %v9281_v31  ;;  %6490 = vmatprep.subr.bf16.mxu0 %v9289_v17  ;;  %v9347_v31 = vld [vmem:[%s12652_s1 + $0x15a8] ss:$16 sps:$4 sm:$0xff]   ;;  %v9355_v17 = vld [vmem:[%s12652_s1 + $0x158c] ss:$16 sps:$4 sm:$0xff]  }
 0x2f1   :  { %6507 = vmatprep.subr.bf16.mxu1 %v9292_v52  ;;  %v9358_v52 = vld [vmem:[%s12652_s1 + $0x160c] ss:$16 sps:$4 sm:$0xff]  }
 0x2f3   :  { %v6213_v41 = vpop.f32.mrf.mxu1  ;;  %6458 = vmatmul.mubr.bf16.vlgmr.msra.gmra.mxu1 %v10710_v59  ;;  %6491 = vmatpush2.bf16.msra.mxu0 %v9287_v51  ;;  %v9304_v59 = vld [vmem:[%s12652_s1 + $0x14ac] ss:$16 sps:$4 sm:$0xff]   ;;  %v9353_v51 = vld [vmem:[%s12652_s1 + $0x1588] ss:$16 sps:$4 sm:$0xff]  }
 0x2f4   :  { %v6214_v26 = vadd.f32 %v6213_v41, %v11980_v4  ;;  %6508 = vmatpush1.bf16.msra.mxu1 %v9290_v28  ;;  %6492 = vmatprep.subr.bf16.mxu0 %v9295_v35  ;;  %v9356_v28 = vld [vmem:[%s12652_s1 + $0x1608] ss:$16 sps:$4 sm:$0xff]   ;;  %v9361_v35 = vld [vmem:[%s12652_s1 + $0x156c] ss:$16 sps:$4 sm:$0xff]  }
 0x2f5   :  { %v6215_v8 = vpop.f32.mrf.mxu1  ;;  %6509 = vmatprep.subr.bf16.mxu1 %v9298_v36  ;;  %6539 = vmatprep.mubr.bf16.mxu1 %v10728_v54  ;;  %v9310_v54 = vld [vmem:[%s12652_s1 + $0x148c] ss:$16 sps:$4 sm:$0xff]   ;;  %v9359_v41 = vld [vmem:[%s12652_s1 + $0x1568] ss:$16 sps:$4 sm:$0xff]  }
 0x2f6   :  { %v6216_v4 = vadd.f32 %v6215_v8, %v11994_v40  ;;  %v9307_v40 = vld [vmem:[%s12652_s1 + $0x130c] ss:$16 sps:$4 sm:$0xff]   ;;  %v9365_v8 = vld [vmem:[%s12652_s1 + $0x1548] ss:$16 sps:$4 sm:$0xff]  }
 0x2f7   :  { %v6217_v57 = vpop.f32.mrf.mxu1  ;;  %6493 = vmatpush2.bf16.msra.mxu0 %v9293_v38  ;;  %v9364_v36 = vld [vmem:[%s12652_s1 + $0x17ec] ss:$16 sps:$4 sm:$0xff]  }
 0x2f8   :  { %6510 = vmatpush1.bf16.msra.mxu1 %v9296_v24  ;;  %6494 = vmatprep.subr.bf16.mxu0 %v9301_v3  ;;  %v9367_v38 = vld [vmem:[%s12652_s1 + $0x154c] ss:$16 sps:$4 sm:$0xff]   ;;  %v9368_v3 = vld [vmem:[%s12652_s1 + $0x17c8] ss:$16 sps:$4 sm:$0xff]  }
 0x2f9   :  { %v6218_v47 = vpop.f32.mrf.mxu1  ;;  %6511 = vmatprep.subr.bf16.mxu1 %v9304_v59  ;;  %v9370_v24 = vld [vmem:[%s12652_s1 + $0x17cc] ss:$16 sps:$4 sm:$0xff]   ;;  %v9371_v57 = vld [vmem:[%s12652_s1 + $0x1528] ss:$16 sps:$4 sm:$0xff]  }
 0x2fa   :  { %v9373_v59 = vld [vmem:[%s12652_s1 + $0x152c] ss:$16 sps:$4 sm:$0xff]  }
 0x2fb   :  { %6495 = vmatpush2.bf16.msra.mxu0 %v9299_v42  ;;  %v9374_v42 = vld [vmem:[%s12652_s1 + $0x17a8] ss:$16 sps:$4 sm:$0xff]   ;;  %v9382_v47 = vld [vmem:[%s12652_s1 + $0x178c] ss:$16 sps:$4 sm:$0xff]  }
 0x2fc   :  { %6512 = vmatpush1.bf16.msra.mxu1 %v9302_v49  ;;  %6496 = vmatprep.subr.bf16.mxu0 %v9307_v40  ;;  %v9379_v49 = vld [vmem:[%s12652_s1 + $0x150c] ss:$16 sps:$4 sm:$0xff]   ;;  %v9377_v40 = vld [vmem:[%s12652_s1 + $0x1508] ss:$16 sps:$4 sm:$0xff]  }
 0x2fd   :  { %6513 = vmatprep.subr.bf16.mxu1 %v9310_v54  ;;  %v9380_v54 = vld [vmem:[%s12652_s1 + $0x1788] ss:$16 sps:$4 sm:$0xff]  }
 0x2ff   :  { %6497 = vmatpush2.bf16.msra.mxu0 %v9305_v25  ;;  %v9385_v25 = vld [vmem:[%s12652_s1 + $0x176c] ss:$16 sps:$4 sm:$0xff]  }
 0x300   :  { %6514 = vmatpush1.bf16.msra.mxu1 %v9308_v32  ;;  %6548 = vmatprep.subr.bf16.mxu0 %v9316_v60  ;;  %v9388_v32 = vld [vmem:[%s12652_s1 + $0x18ec] ss:$16 sps:$4 sm:$0xff]   ;;  %v9386_v60 = vld [vmem:[%s12652_s1 + $0x18e8] ss:$16 sps:$4 sm:$0xff]  }
 0x301   :  { %6515 = vmatprep.subr.bf16.mxu1 %v9313_v56  ;;  %v9383_v56 = vld [vmem:[%s12652_s1 + $0x1768] ss:$16 sps:$4 sm:$0xff]  }
 0x302   :  { %v6254_v6 = vpop.f32.mrf.mxu0  ;;  %6499 = vmatmul.mubr.bf16.vlgmr.msra.gmra.mxu0 %v10714_v45  ;;  %v9328_v45 = vld [vmem:[%s12652_s1 + $0x16ac] ss:$16 sps:$4 sm:$0xff]  }
 0x303   :  { %v12182_v16 = vadd.f32 %v6254_v6, %v6214_v26  ;;  %6549 = vmatpush1.bf16.msra.mxu0 %v9314_v48  ;;  %6580 = vmatprep.mubr.bf16.mxu0 %v10730_v55  ;;  %v9334_v55 = vld [vmem:[%s12652_s1 + $0x168c] ss:$16 sps:$4 sm:$0xff]   ;;  %v9362_v26 = vld [vmem:[%s12652_s1 + $0x17e8] ss:$16 sps:$4 sm:$0xff]  }
 0x304   :  { %6516 = vmatpush1.bf16.msra.mxu1 %v9311_v61  ;;  %v6256_v30 = vpop.f32.mrf.mxu0  ;;  %6550 = vmatprep.subr.bf16.mxu0 %v9322_v62  ;;  %v9391_v61 = vld [vmem:[%s12652_s1 + $0x174c] ss:$16 sps:$4 sm:$0xff]   ;;  %v9389_v6 = vld [vmem:[%s12652_s1 + $0x1748] ss:$16 sps:$4 sm:$0xff]  }
 0x305   :  { %6517 = vmatprep.subr.bf16.mxu1 %v9319_v2  ;;  %v12196_v11 = vadd.f32 %v6256_v30, %v6216_v4  ;;  %v9376_v4 = vld [vmem:[%s12652_s1 + $0x17ac] ss:$16 sps:$4 sm:$0xff]  }
 0x306   :  { %v6258_v12 = vpop.f32.mrf.mxu0  ;;  %v9394_v48 = vld [vmem:[%s12652_s1 + $0x18cc] ss:$16 sps:$4 sm:$0xff]  }
 0x307   :  { %6551 = vmatpush1.bf16.msra.mxu0 %v9320_v29  ;;  %v9397_v30 = vld [vmem:[%s12652_s1 + $0x172c] ss:$16 sps:$4 sm:$0xff]   ;;  %v9398_v12 = vld [vmem:[%s12652_s1 + $0x18a8] ss:$16 sps:$4 sm:$0xff]  }
 0x308   :  { %6518 = vmatpush1.bf16.msra.mxu1 %v9317_v5  ;;  %v6259_v13 = vpop.f32.mrf.mxu0  ;;  %6552 = vmatprep.subr.bf16.mxu0 %v9328_v45  ;;  %v9392_v5 = vld [vmem:[%s12652_s1 + $0x18c8] ss:$16 sps:$4 sm:$0xff]  }
 0x309   :  { %6519 = vmatprep.subr.bf16.mxu1 %v9325_v53  ;;  %v9395_v45 = vld [vmem:[%s12652_s1 + $0x1728] ss:$16 sps:$4 sm:$0xff]  }
 0x30a   :  { %v9404_v13 = vld [vmem:[%s12652_s1 + $0x1888] ss:$16 sps:$4 sm:$0xff]  }
 0x30b   :  { %6553 = vmatpush1.bf16.msra.mxu0 %v9326_v9  ;;  %v9401_v9 = vld [vmem:[%s12652_s1 + $0x1708] ss:$16 sps:$4 sm:$0xff]  }
 0x30c   :  { %6520 = vmatpush1.bf16.msra.mxu1 %v9323_v37  ;;  %6554 = vmatprep.subr.bf16.mxu0 %v9334_v55  ;;  %v9412_v55 = vld [vmem:[%s12652_s1 + $0x1aec] ss:$16 sps:$4 sm:$0xff]  }
 0x30d   :  { %6521 = vmatprep.subr.bf16.mxu1 %v9331_v10  ;;  %v9409_v10 = vld [vmem:[%s12652_s1 + $0x186c] ss:$16 sps:$4 sm:$0xff]  }
 0x30f   :  { %6555 = vmatpush1.bf16.msra.mxu0 %v9332_v18  ;;  %v9410_v18 = vld [vmem:[%s12652_s1 + $0x1ae8] ss:$16 sps:$4 sm:$0xff]  }
 0x310   :  { %6522 = vmatpush1.bf16.msra.mxu1 %v9329_v15  ;;  %6556 = vmatprep.subr.bf16.mxu0 %v9340_v58  ;;  %v9407_v15 = vld [vmem:[%s12652_s1 + $0x1868] ss:$16 sps:$4 sm:$0xff]   ;;  %v9418_v58 = vld [vmem:[%s12652_s1 + $0x1acc] ss:$16 sps:$4 sm:$0xff]  }
 0x311   :  { %6523 = vmatprep.subr.bf16.mxu1 %v9337_v46  ;;  %v9415_v46 = vld [vmem:[%s12652_s1 + $0x184c] ss:$16 sps:$4 sm:$0xff]  }
 0x313   :  { %6557 = vmatpush1.bf16.msra.mxu0 %v9338_v33 }
 0x314   :  { %6524 = vmatpush2.bf16.msra.mxu1 %v9335_v20  ;;  %6558 = vmatprep.subr.bf16.mxu0 %v9346_v21  ;;  %v9416_v21 = vld [vmem:[%s12652_s1 + $0x1ac8] ss:$16 sps:$4 sm:$0xff]  }
 0x315   :  { %6525 = vmatprep.subr.bf16.mxu1 %v9343_v34  ;;  %v9413_v34 = vld [vmem:[%s12652_s1 + $0x1848] ss:$16 sps:$4 sm:$0xff]  }
 0x317   :  { %6559 = vmatpush1.bf16.msra.mxu0 %v9344_v22  ;;  %v9421_v22 = vld [vmem:[%s12652_s1 + $0x182c] ss:$16 sps:$4 sm:$0xff]  }
 0x318   :  { %6526 = vmatpush2.bf16.msra.mxu1 %v9341_v43  ;;  %6560 = vmatprep.subr.bf16.mxu0 %v9352_v27 }
 0x319   :  { %6527 = vmatprep.subr.bf16.mxu1 %v9349_v23 }
 0x31b   :  { %6561 = vmatpush1.bf16.msra.mxu0 %v9350_v19  ;;  %v9422_v19 = vld [vmem:[%s12652_s1 + $0x1aa8] ss:$16 sps:$4 sm:$0xff]  }
 0x31c   :  { %6528 = vmatpush2.bf16.msra.mxu1 %v9347_v31  ;;  %6562 = vmatprep.subr.bf16.mxu0 %v9358_v52  ;;  %v9419_v31 = vld [vmem:[%s12652_s1 + $0x1828] ss:$16 sps:$4 sm:$0xff]   ;;  %v9427_v52 = vld [vmem:[%s12652_s1 + $0x180c] ss:$16 sps:$4 sm:$0xff]  }
 0x31d   :  { %6529 = vmatprep.subr.bf16.mxu1 %v9355_v17 }
 0x31f   :  { %6563 = vmatpush1.bf16.msra.mxu0 %v9356_v28  ;;  %v9428_v28 = vld [vmem:[%s12652_s1 + $0x1a88] ss:$16 sps:$4 sm:$0xff]  }
 0x320   :  { %6530 = vmatpush2.bf16.msra.mxu1 %v9353_v51  ;;  %6564 = vmatprep.subr.bf16.mxu0 %v9364_v36  ;;  %v9425_v51 = vld [vmem:[%s12652_s1 + $0x1808] ss:$16 sps:$4 sm:$0xff]   ;;  %v9436_v36 = vld [vmem:[%s12652_s1 + $0x1a6c] ss:$16 sps:$4 sm:$0xff]  }
 0x321   :  { %6531 = vmatprep.subr.bf16.mxu1 %v9361_v35  ;;  %v9433_v35 = vld [vmem:[%s12652_s1 + $0x19ec] ss:$16 sps:$4 sm:$0xff]  }
 0x323   :  { %6565 = vmatpush2.bf16.msra.mxu0 %v9362_v26  ;;  %v9434_v26 = vld [vmem:[%s12652_s1 + $0x1a68] ss:$16 sps:$4 sm:$0xff]  }
 0x324   :  { %6532 = vmatpush2.bf16.msra.mxu1 %v9359_v41  ;;  %6566 = vmatprep.subr.bf16.mxu0 %v9370_v24  ;;  %v9431_v41 = vld [vmem:[%s12652_s1 + $0x19e8] ss:$16 sps:$4 sm:$0xff]   ;;  %v9442_v24 = vld [vmem:[%s12652_s1 + $0x1a4c] ss:$16 sps:$4 sm:$0xff]  }
 0x325   :  { %6533 = vmatprep.subr.bf16.mxu1 %v9367_v38  ;;  %v9439_v38 = vld [vmem:[%s12652_s1 + $0x19cc] ss:$16 sps:$4 sm:$0xff]  }
 0x327   :  { %6567 = vmatpush2.bf16.msra.mxu0 %v9368_v3  ;;  %v9440_v3 = vld [vmem:[%s12652_s1 + $0x1a48] ss:$16 sps:$4 sm:$0xff]  }
 0x328   :  { %6534 = vmatpush2.bf16.msra.mxu1 %v9365_v8  ;;  %6568 = vmatprep.subr.bf16.mxu0 %v9376_v4  ;;  %v9437_v8 = vld [vmem:[%s12652_s1 + $0x19c8] ss:$16 sps:$4 sm:$0xff]   ;;  %v9448_v4 = vld [vmem:[%s12652_s1 + $0x1a2c] ss:$16 sps:$4 sm:$0xff]  }
 0x329   :  { %6535 = vmatprep.subr.bf16.mxu1 %v9373_v59  ;;  %v9445_v59 = vld [vmem:[%s12652_s1 + $0x19ac] ss:$16 sps:$4 sm:$0xff]  }
 0x32b   :  { %6569 = vmatpush2.bf16.msra.mxu0 %v9374_v42  ;;  %v9446_v42 = vld [vmem:[%s12652_s1 + $0x1a28] ss:$16 sps:$4 sm:$0xff]  }
 0x32c   :  { %6536 = vmatpush2.bf16.msra.mxu1 %v9371_v57  ;;  %6570 = vmatprep.subr.bf16.mxu0 %v9382_v47  ;;  %v9443_v57 = vld [vmem:[%s12652_s1 + $0x19a8] ss:$16 sps:$4 sm:$0xff]   ;;  %v9454_v47 = vld [vmem:[%s12652_s1 + $0x1a0c] ss:$16 sps:$4 sm:$0xff]  }
 0x32d   :  { %6537 = vmatprep.subr.bf16.mxu1 %v9379_v49  ;;  %v9451_v49 = vld [vmem:[%s12652_s1 + $0x198c] ss:$16 sps:$4 sm:$0xff]  }
 0x32f   :  { %6571 = vmatpush2.bf16.msra.mxu0 %v9380_v54  ;;  %v9452_v54 = vld [vmem:[%s12652_s1 + $0x1a08] ss:$16 sps:$4 sm:$0xff]  }
 0x330   :  { %6538 = vmatpush2.bf16.msra.mxu1 %v9377_v40  ;;  %6572 = vmatprep.subr.bf16.mxu0 %v9385_v25  ;;  %v9449_v40 = vld [vmem:[%s12652_s1 + $0x1988] ss:$16 sps:$4 sm:$0xff]   ;;  %v9457_v25 = vld [vmem:[%s12652_s1 + $0x196c] ss:$16 sps:$4 sm:$0xff]  }
 0x331   :  { %6589 = vmatprep.subr.bf16.mxu1 %v9388_v32  ;;  %v9460_v32 = vld [vmem:[%s12652_s1 + $0x1b6c] ss:$16 sps:$4 sm:$0xff]  }
 0x333   :  { %v6295_v2 = vpop.f32.mrf.mxu1  ;;  %6540 = vmatmul.mubr.bf16.vlgmr.msra.gmra.mxu1 %v10937_v63  ;;  %6573 = vmatpush2.bf16.msra.mxu0 %v9383_v56  ;;  %v9400_v63 = vld [vmem:[%s12652_s1 + $0x18ac] ss:$16 sps:$4 sm:$0xff]   ;;  %v9455_v56 = vld [vmem:[%s12652_s1 + $0x1968] ss:$16 sps:$4 sm:$0xff]  }
 0x334   :  { %v6296_v62 = vadd.f32 %v6295_v2, %v12182_v16  ;;  %6590 = vmatpush1.bf16.msra.mxu1 %v9386_v60  ;;  %6574 = vmatprep.subr.bf16.mxu0 %v9391_v61  ;;  %v9458_v60 = vld [vmem:[%s12652_s1 + $0x1b68] ss:$16 sps:$4 sm:$0xff]   ;;  %v9463_v61 = vld [vmem:[%s12652_s1 + $0x194c] ss:$16 sps:$4 sm:$0xff]  }
 0x335   :  { %v6297_v29 = vpop.f32.mrf.mxu1  ;;  %6591 = vmatprep.subr.bf16.mxu1 %v9394_v48  ;;  %6621 = vmatprep.mubr.bf16.mxu1 %v10957_v1  ;;  %v9406_v1 = vld [vmem:[%s12652_s1 + $0x188c] ss:$16 sps:$4 sm:$0xff]   ;;  %v9461_v2 = vld [vmem:[%s12652_s1 + $0x1948] ss:$16 sps:$4 sm:$0xff]  }
 0x336   :  { %v6298_v16 = vadd.f32 %v6297_v29, %v12196_v11  ;;  %v9403_v11 = vld [vmem:[%s12652_s1 + $0x170c] ss:$16 sps:$4 sm:$0xff]   ;;  %v9467_v29 = vld [vmem:[%s12652_s1 + $0x1928] ss:$16 sps:$4 sm:$0xff]  }
 0x337   :  { %v6299_v53 = vpop.f32.mrf.mxu1  ;;  %6575 = vmatpush2.bf16.msra.mxu0 %v9389_v6  ;;  %v9466_v48 = vld [vmem:[%s12652_s1 + $0x1b4c] ss:$16 sps:$4 sm:$0xff]  }
 0x338   :  { %6592 = vmatpush1.bf16.msra.mxu1 %v9392_v5  ;;  %6576 = vmatprep.subr.bf16.mxu0 %v9397_v30  ;;  %v9469_v6 = vld [vmem:[%s12652_s1 + $0x192c] ss:$16 sps:$4 sm:$0xff]   ;;  %v9470_v30 = vld [vmem:[%s12652_s1 + $0x1b28] ss:$16 sps:$4 sm:$0xff]  }
 0x339   :  { %v6300_v37 = vpop.f32.mrf.mxu1  ;;  %6593 = vmatprep.subr.bf16.mxu1 %v9400_v63  ;;  %v9472_v5 = vld [vmem:[%s12652_s1 + $0x1b2c] ss:$16 sps:$4 sm:$0xff]   ;;  %v9473_v53 = vld [vmem:[%s12652_s1 + $0x1908] ss:$16 sps:$4 sm:$0xff]  }
 0x33a   :  { %v9475_v63 = vld [vmem:[%s12652_s1 + $0x190c] ss:$16 sps:$4 sm:$0xff]   ;;  %v6672_v37 = vmax.f32 %v11790_v44, 0.0  ;;  %v9482_v44 = vld [vmem:[%s12654_s3 + $0x30] sm:$0xff]  }
 0x33b   :  { %6577 = vmatpush2.bf16.msra.mxu0 %v9395_v45  ;;  %v9476_v45 = vld [vmem:[%s12652_s1 + $0x1b08] ss:$16 sps:$4 sm:$0xff]  }
 0x33c   :  { %6594 = vmatpush1.bf16.msra.mxu1 %v9398_v12  ;;  %6578 = vmatprep.subr.bf16.mxu0 %v9403_v11  ;;  %v9479_v12 = vld [vmem:[%s12654_s3 + $0x78] sm:$0xff]  }
 0x33d   :  { %6595 = vmatprep.subr.bf16.mxu1 %v9406_v1  ;;  %v9480_v11 = vld [vmem:[%s12654_s3 + $0x38] sm:$0xff]   ;;  %v9481_v1 = vld [vmem:[%s12654_s3 + $0x70] sm:$0xff]  }
 0x33f   :  { %6579 = vmatpush2.bf16.msra.mxu0 %v9401_v9  ;;  %v6676_v9 = vpack.c.bf16 %v6672_v37, %v6672_v37  ;;  %v9515_v37 = vld [vmem:[%s12656_s5 + $0x18] sm:$0xff]  }
 0x340   :  { %6596 = vmatpush1.bf16.msra.mxu1 %v9404_v13  ;;  %6630 = vmatprep.subr.bf16.mxu0 %v9412_v55 }
 0x341   :  { %6597 = vmatprep.subr.bf16.mxu1 %v9409_v10 }
 0x342   :  { %v6336_v20 = vpop.f32.mrf.mxu0  ;;  %6581 = vmatmul.mubr.bf16.vlgmr.msra.gmra.mxu0 %v10941_v0  ;;  %v9424_v0 = vld [vmem:[%s12652_s1 + $0x1aac] ss:$16 sps:$4 sm:$0xff]  }
 0x343   :  { %v12384_v33 = vadd.f32 %v6336_v20, %v6296_v62  ;;  %6631 = vmatpush1.bf16.msra.mxu0 %v9410_v18  ;;  %8032 = vmatprep.mubr.msk.bf16.mxu0 %vm5519_vm0, %v10955_v39  ;;  %v9430_v39 = vld [vmem:[%s12652_s1 + $0x1a8c] ss:$16 sps:$4 sm:$0xff]   ;;  %v9464_v62 = vld [vmem:[%s12652_s1 + $0x1b48] ss:$16 sps:$4 sm:$0xff]   ;;  %v9486_v20 = vld [vmem:[%s12654_s3 + $0x20] sm:$0xff]  }
 0x344   :  { %6598 = vmatpush1.bf16.msra.mxu1 %v9407_v15  ;;  %v6338_v43 = vpop.f32.mrf.mxu0  ;;  %6632 = vmatprep.subr.bf16.mxu0 %v9418_v58  ;;  %v9483_v15 = vld [vmem:[%s12654_s3 + $0x68] sm:$0xff]   ;;  %v9485_v58 = vld [vmem:[%s12654_s3 + $0x60] sm:$0xff]  }
 0x345   :  { %6599 = vmatprep.subr.bf16.mxu1 %v9415_v46  ;;  %v12398_v23 = vadd.f32 %v6338_v43, %v6298_v16  ;;  %v9478_v16 = vld [vmem:[%s12652_s1 + $0x1b0c] ss:$16 sps:$4 sm:$0xff]  }
 0x346   :  { %v6340_v27 = vpop.f32.mrf.mxu0 }
 0x347   :  { %6633 = vmatpush1.bf16.msra.mxu0 %v9416_v21  ;;  %v9489_v21 = vld [vmem:[%s12654_s3 + $0x50] sm:$0xff]   ;;  %v9491_v27 = vld [vmem:[%s12654_s3 + $0x48] sm:$0xff]  }
 0x348   :  { %6600 = vmatpush1.bf16.msra.mxu1 %v9413_v34  ;;  %v6341_v17 = vpop.f32.mrf.mxu0  ;;  %6634 = vmatprep.subr.bf16.mxu0 %v9424_v0  ;;  %v9488_v34 = vld [vmem:[%s12654_s3 + $0x18] sm:$0xff]   ;;  %v9490_v0 = vld [vmem:[%s12654_s3 + $0x10] sm:$0xff]  }
 0x349   :  { %6601 = vmatprep.subr.bf16.mxu1 %v9421_v22  ;;  %v9492_v17 = vld [vmem:[%s12654_s3 + $0x8] sm:$0xff]  }
 0x34b   :  { %6635 = vmatpush1.bf16.msra.mxu0 %v9422_v19 }
 0x34c   :  { %6602 = vmatpush1.bf16.msra.mxu1 %v9419_v31  ;;  %6636 = vmatprep.subr.bf16.mxu0 %v9430_v39 }
 0x34d   :  { %6603 = vmatprep.subr.bf16.mxu1 %v9427_v52  ;;  %v9493_v52 = vld [vmem:[%s12654_s3 + $0x40] sm:$0xff]  }
 0x34f   :  { %6637 = vmatpush1.bf16.msra.mxu0 %v9428_v28  ;;  %v9496_v28 = vld [vmem:[%s12654_s3 + $0xb8] sm:$0xff]  }
 0x350   :  { %6604 = vmatpush1.bf16.msra.mxu1 %v9425_v51  ;;  %6638 = vmatprep.subr.bf16.mxu0 %v9436_v36  ;;  %v9495_v51 = vld [vmem:[%s12654_s3 + $0xf8] sm:$0xff]   ;;  %v9494_v36 = vld [vmem:[%s12654_s3] sm:$0xff]  }
 0x351   :  { %6605 = vmatprep.subr.bf16.mxu1 %v9433_v35  ;;  %v9497_v35 = vld [vmem:[%s12654_s3 + $0xf0] sm:$0xff]  }
 0x353   :  { %6639 = vmatpush1.bf16.msra.mxu0 %v9434_v26  ;;  %v6671_v26 = vmax.f32 %v11786_v7, 0.0  ;;  %v9502_v7 = vld [vmem:[%s12654_s3 + $0xa0] sm:$0xff]  }
 0x354   :  { %6606 = vmatpush2.bf16.msra.mxu1 %v9431_v41  ;;  %6640 = vmatprep.subr.bf16.mxu0 %v9442_v24  ;;  %v9498_v41 = vld [vmem:[%s12654_s3 + $0xb0] sm:$0xff]   ;;  %v9500_v24 = vld [vmem:[%s12654_s3 + $0xa8] sm:$0xff]  }
 0x355   :  { %6607 = vmatprep.subr.bf16.mxu1 %v9439_v38  ;;  %v9499_v38 = vld [vmem:[%s12654_s3 + $0xe8] sm:$0xff]  }
 0x357   :  { %6641 = vmatpush1.bf16.msra.mxu0 %v9440_v3  ;;  %v9501_v3 = vld [vmem:[%s12654_s3 + $0xe0] sm:$0xff]  }
 0x358   :  { %6608 = vmatpush2.bf16.msra.mxu1 %v9437_v8  ;;  %6642 = vmatprep.subr.bf16.mxu0 %v9448_v4  ;;  %v6675_v8 = vpack.c.bf16 %v6671_v26, %v6671_v26  ;;  %v9504_v4 = vld [vmem:[%s12654_s3 + $0x98] sm:$0xff]  }
 0x359   :  { %6609 = vmatprep.subr.bf16.mxu1 %v9445_v59  ;;  %v9503_v59 = vld [vmem:[%s12654_s3 + $0xd8] sm:$0xff]  }
 0x35b   :  { %6643 = vmatpush1.bf16.msra.mxu0 %v9446_v42  ;;  %v9506_v42 = vld [vmem:[%s12654_s3 + $0x90] sm:$0xff]  }
 0x35c   :  { %6610 = vmatpush2.bf16.msra.mxu1 %v9443_v57  ;;  %6644 = vmatprep.subr.bf16.mxu0 %v9454_v47  ;;  %v9505_v57 = vld [vmem:[%s12654_s3 + $0xd0] sm:$0xff]  }
 0x35d   :  { %6611 = vmatprep.subr.bf16.mxu1 %v9451_v49 }
 0x35f   :  { %6645 = vmatpush1.bf16.msra.mxu0 %v9452_v54  ;;  %v9507_v54 = vld [vmem:[%s12654_s3 + $0xc8] sm:$0xff]  }
 0x360   :  { %6612 = vmatpush2.bf16.msra.mxu1 %v9449_v40  ;;  %6654 = vmatprep.subr.bf16.mxu0 %v9460_v32  ;;  %v9508_v32 = vld [vmem:[%s12654_s3 + $0x88] sm:$0xff]  }
 0x361   :  { %6613 = vmatprep.subr.bf16.mxu1 %v9457_v25 }
 0x363   :  { %6655 = vmatpush2.bf16.msra.mxu0 %v9458_v60 }
 0x364   :  { %6614 = vmatpush2.bf16.msra.mxu1 %v9455_v56  ;;  %6656 = vmatprep.subr.bf16.mxu0 %v9466_v48  ;;  %v9510_v48 = vld [vmem:[%s12654_s3 + $0x80] sm:$0xff]  }
 0x365   :  { %6615 = vmatprep.subr.bf16.mxu1 %v9463_v61  ;;  %v9509_v61 = vld [vmem:[%s12654_s3 + $0xc0] sm:$0xff]  }
 0x367   :  { %6657 = vmatpush2.bf16.msra.mxu0 %v9464_v62 }
 0x368   :  { %6616 = vmatpush2.bf16.msra.mxu1 %v9461_v2  ;;  %6658 = vmatprep.subr.bf16.mxu0 %v9472_v5 }
 0x369   :  { %6617 = vmatprep.subr.bf16.mxu1 %v9469_v6 }
 0x36b   :  { %6659 = vmatpush2.bf16.msra.mxu0 %v9470_v30 }
 0x36c   :  { %6618 = vmatpush2.bf16.msra.mxu1 %v9467_v29  ;;  %6660 = vmatprep.subr.bf16.mxu0 %v9478_v16  ;;  %v9543_v16 = vmov 0.0  }
 0x36d   :  { %6619 = vmatprep.subr.bf16.mxu1 %v9475_v63  ;;  %v9511_v63 = vld [vmem:[%s12656_s5 + $0x38] sm:$0xff]  }
 0x36f   :  { %6661 = vmatpush2.bf16.msra.mxu0 %v9476_v45  ;;  %v9513_v45 = vld [vmem:[%s12656_s5 + $0x28] sm:$0xff]  }
 0x370   :  { %6620 = vmatpush2.bf16.msra.mxu1 %v9473_v53  ;;  %8075 = vmatprep.subr.bf16.mxu0 %v9479_v12  ;;  %v9512_v53 = vld [vmem:[%s12656_s5 + $0x30] sm:$0xff]   ;;  %v9514_v12 = vld [vmem:[%s12656_s5 + $0x20] sm:$0xff]  }
 0x371   :  { %8097 = vmatprep.subr.bf16.mxu1 %v9495_v51 }
 0x372   :  { %6663 = vmatmul.mubr.bf16.vlgmr.msra.gmra.mxu0 %v11104_v50  ;;  %v9484_v50 = vld [vmem:[%s12654_s3 + $0x28] sm:$0xff]  }
 0x373   :  { %v6377_v13 = vpop.f32.mrf.mxu1  ;;  %6622 = vmatmul.mubr.bf16.vlgmr.msra.gmra.mxu1 %v11158_v14  ;;  %8076 = vmatpush3.bf16.msra.mxu0 %v9480_v11 }
 0x374   :  { %v6378_v10 = vadd.f32 %v6377_v13, %v12384_v33  ;;  %6974 = vmatprep.mubr.bf16.mxu0 %v6676_v9  ;;  %8077 = vmatprep.subr.bf16.mxu0 %v9481_v1  ;;  %v9487_v33 = vld [vmem:[%s12654_s3 + $0x58] sm:$0xff]  }
 0x375   :  { %v6379_v55 = vpop.f32.mrf.mxu1  ;;  %8098 = vmatpush3.bf16.msra.mxu1 %v9496_v28 }
 0x376   :  { %v6380_v18 = vadd.f32 %v6379_v55, %v12398_v23  ;;  %8099 = vmatprep.subr.bf16.mxu1 %v9497_v35 }
 0x377   :  { %v6381_v46 = vpop.f32.mrf.mxu1  ;;  %8078 = vmatpush3.bf16.msra.mxu0 %v9482_v44 }
 0x378   :  { %8079 = vmatprep.subr.bf16.mxu0 %v9483_v15 }
 0x379   :  { %v6382_v14 = vpop.f32.mrf.mxu1  ;;  %8100 = vmatpush3.bf16.msra.mxu1 %v9498_v41 }
 0x37a   :  { %8101 = vmatprep.subr.bf16.mxu1 %v9499_v38  ;;  %v9516_v38 = vld [vmem:[%s12656_s5 + $0x10] sm:$0xff]  }
 0x37b   :  { %8080 = vmatpush3.bf16.msra.mxu0 %v9484_v50 }
 0x37c   :  { %8081 = vmatprep.subr.bf16.mxu0 %v9485_v58 }
 0x37d   :  { %8102 = vmatpush3.bf16.msra.mxu1 %v9500_v24  ;;  %v9517_v24 = vld [vmem:[%s12656_s5 + $0x8] sm:$0xff]  }
 0x37e   :  { %8103 = vmatprep.subr.bf16.mxu1 %v9501_v3  ;;  %v8033_v3 = vld [vmem:[%s12655_s4] ss:$0 sm:$0xff] }
 0x37f   :  { %8082 = vmatpush3.bf16.msra.mxu0 %v9486_v20 }
 0x380   :  { %8083 = vmatprep.subr.bf16.mxu0 %v9487_v33 }
 0x381   :  { %8104 = vmatpush3.bf16.msra.mxu1 %v9502_v7 }
 0x382   :  { %v6418_v43 = vpop.f32.mrf.mxu0  ;;  %8105 = vmatprep.subr.bf16.mxu1 %v9503_v59 }
 0x383   :  { %v6419_v22 = vadd.f32 %v6418_v43, %v6378_v10  ;;  %8084 = vmatpush3.bf16.msra.mxu0 %v9488_v34 }
 0x384   :  { %v6420_v23 = vpop.f32.mrf.mxu0  ;;  %8085 = vmatprep.subr.bf16.mxu0 %v9489_v21 }
 0x385   :  { %v6421_v31 = vadd.f32 %v6420_v23, %v6380_v18  ;;  %8106 = vmatpush3.bf16.msra.mxu1 %v9504_v4 }
 0x386   :  { %v6422_v19 = vpop.f32.mrf.mxu0  ;;  %8107 = vmatprep.subr.bf16.mxu1 %v9505_v57 }
 0x387   :  { %8086 = vmatpush3.bf16.msra.mxu0 %v9490_v0 }
 0x388   :  { %v6423_v39 = vpop.f32.mrf.mxu0  ;;  %8087 = vmatprep.subr.bf16.mxu0 %v9491_v27 }
 0x389   :  { %8108 = vmatpush3.bf16.msra.mxu1 %v9506_v42 }
 0x38a   :  { %8109 = vmatprep.subr.bf16.mxu1 %v9507_v54 }
 0x38b   :  { %8088 = vmatpush3.bf16.msra.mxu0 %v9492_v17 }
 0x38c   :  { %8089 = vmatprep.subr.bf16.mxu0 %v9493_v52 }
 0x38d   :  { %8110 = vmatpush3.bf16.msra.mxu1 %v9508_v32 }
 0x38e   :  { %8111 = vmatprep.subr.bf16.mxu1 %v9509_v61 }
 0x38f   :  { %8090 = vmatpush3.bf16.msra.mxu0 %v9494_v36 }
 0x390   :  { %8128 = vmatprep.subr.bf16.mxu0 %v9543_v16 }
 0x391   :  { %8112 = vmatpush3.bf16.msra.mxu1 %v9510_v48 }
 0x392   :  { %6975 = vmatmul.mubr.bf16.vlgmr.msra.gmra.mxu0 %v6675_v8  ;;  %v9518_v8 = vld [vmem:[%s12656_s5] sm:$0xff]   ;;  %s9545_s5 = smov [#allocation2]  }
 0x393   :  { %8129 = vmatpush3.bf16.msra.mxu0 %v9511_v63  ;;  %8144 = vmatprep.mubr.msk.bf16.mxu0 %vm9544_vm1, %v9543_v16  ;;  %s7143_s26 = sshll.u32 %s9545_s5, 4  ;;  %s7144_s26 = int_to_ptr.vmem [resolvable:$true] %s7143_s26 }
 0x394   :  { %8130 = vmatprep.subr.bf16.mxu0 %v9543_v16  ;;  %s9520_s4 = scalar_lea.vmem %s7144_s26, 32  ;;  %p9525_p1 = scmp.lt.s32.totalorder %s7144_s26, %s7144_s26 }
 0x395   :  { %p9521_p0 = scmp.ne.s32.totalorder %s7144_s26, %s9520_s4  ;;  %p9526_p2 = scmp.lt.s32.totalorder %s9520_s4, %s9520_s4 }
 0x397   :  { %8131 = vmatpush3.bf16.msra.mxu0 %v9512_v53  ;;  %p9527_p3 = por %p9526_p2, %p9525_p1 }
 0x398   :  { %8132 = vmatprep.subr.bf16.mxu0 %v9543_v16 }
 0x399   :  { %p9528_p4 = pnand %p9527_p3, %p9521_p0 }
 0x39b   :  { %8133 = vmatpush3.bf16.msra.mxu0 %v9513_v45 }
 0x39c   :  { %8134 = vmatprep.subr.bf16.mxu0 %v9543_v16 }
 0x39f   :  { %8135 = vmatpush3.bf16.msra.mxu0 %v9514_v12 }
 0x3a0   :  { %8136 = vmatprep.subr.bf16.mxu0 %v9543_v16 }
 0x3a3   :  { %8137 = vmatpush3.bf16.msra.mxu0 %v9515_v37 }
 0x3a4   :  { %8138 = vmatprep.subr.bf16.mxu0 %v9543_v16 }
 0x3a7   :  { %8139 = vmatpush3.bf16.msra.mxu0 %v9516_v38 }
 0x3a8   :  { %8140 = vmatprep.subr.bf16.mxu0 %v9543_v16 }
 0x3ab   :  { %8141 = vmatpush3.bf16.msra.mxu0 %v9517_v24 }
 0x3ac   :  { %8142 = vmatprep.subr.bf16.mxu0 %v9543_v16 }
 0x3af   :  { %8143 = vmatpush3.bf16.msra.mxu0 %v9518_v8 }
 0x3b3   :  { %v6459_v49 = vpop.f32.mrf.mxu1 }
 0x3b4   :  { %v6460_v47 = vadd.f32 %v6459_v49, %v6419_v22 }
 0x3b5   :  { %v6461_v40 = vpop.f32.mrf.mxu1 }
 0x3b6   :  { %v6462_v25 = vadd.f32 %v6461_v40, %v6421_v31 }
 0x3b7   :  { %v6463_v56 = vpop.f32.mrf.mxu1 }
 0x3b9   :  { %v6464_v60 = vpop.f32.mrf.mxu1 }
 0x3c2   :  { %v6500_v2 = vpop.f32.mrf.mxu0 }
 0x3c3   :  { %v6501_v62 = vadd.f32 %v6500_v2, %v6460_v47 }
 0x3c4   :  { %v6502_v6 = vpop.f32.mrf.mxu0 }
 0x3c5   :  { %v6503_v5 = vadd.f32 %v6502_v6, %v6462_v25  ;;  %v8066_v25 = vld [vmem:[%s12657_s6] ss:$0 sm:$0xff] }
 0x3c6   :  { %v6504_v29 = vpop.f32.mrf.mxu0 }
 0x3c8   :  { %v6505_v30 = vpop.f32.mrf.mxu0 }
 0x3f3   :  { %v6541_v11 = vpop.f32.mrf.mxu1 }
 0x3f4   :  { %v6542_v18 = vadd.f32 %v6541_v11, %v6501_v62 }
 0x3f5   :  { %v6543_v1 = vpop.f32.mrf.mxu1 }
 0x3f6   :  { %v6544_v46 = vadd.f32 %v6543_v1, %v6503_v5 }
 0x3f7   :  { %v6545_v9 = vpop.f32.mrf.mxu1 }
 0x3f9   :  { %v6546_v13 = vpop.f32.mrf.mxu1 }
 0x402   :  { %v6582_v10 = vpop.f32.mrf.mxu0 }
 0x403   :  { %v6583_v50 = vadd.f32 %v6582_v10, %v6542_v18 }
 0x404   :  { %v6584_v44 = vpop.f32.mrf.mxu0 }
 0x405   :  { %v6585_v20 = vadd.f32 %v6584_v44, %v6544_v46 }
 0x406   :  { %v6586_v55 = vpop.f32.mrf.mxu0 }
 0x408   :  { %v6587_v15 = vpop.f32.mrf.mxu0 }
 0x432   :  { %v6664_v58 = vpop.f32.mrf.mxu0 }
 0x433   :  { %v6623_v14 = vpop.f32.mrf.mxu1 }
 0x434   :  { %v6624_v33 = vadd.f32 %v6623_v14, %v6583_v50  ;;  %v6666_v21 = vpop.f32.mrf.mxu0 }
 0x435   :  { %v6625_v34 = vpop.f32.mrf.mxu1 }
 0x436   :  { %v6665_v43 = vadd.f32 %v6664_v58, %v6624_v33  ;;  %v6626_v22 = vadd.f32 %v6625_v34, %v6585_v20  ;;  %v6668_v23 = vpop.f32.mrf.mxu0 }
 0x437   :  { %v6627_v0 = vpop.f32.mrf.mxu1 }
 0x438   :  { %v6667_v27 = vadd.f32 %v6666_v21, %v6626_v22  ;;  %v6673_v31 = vmax.f32 %v6665_v43, 0.0  ;;  %v6669_v17 = vpop.f32.mrf.mxu0 }
 0x439   :  { %v6628_v19 = vpop.f32.mrf.mxu1 }
 0x43a   :  { %v6674_v52 = vmax.f32 %v6667_v27, 0.0  ;;  %v6677_v51 = vpack.c.bf16 %v6673_v31, %v6673_v31 }
 0x43c   :  { %v6678_v39 = vpack.c.bf16 %v6674_v52, %v6674_v52 }
 0x43e   :  { %7014 = vmatprep.mubr.bf16.mxu1 %v6678_v39 }
 0x43f   :  { %7015 = vmatmul.mubr.bf16.vlgmr.msra.gmra.mxu1 %v6677_v51 }
 0x452   :  { %v8091_v28 = vpop.f32.mrf.mxu0 }
 0x454   :  { %v8092_v35 = vpop.f32.mrf.mxu0 }
 0x455   :  { %v8093_v36 = vadd.f32 %v8092_v35, %v8091_v28 }
 0x456   :  { %v8094_v41 = vpop.f32.mrf.mxu0 }
 0x457   :  { %v6977_v4 = vadd.f32 %v8093_v36, %v8033_v3 }
 0x458   :  { %v8095_v26 = vpop.f32.mrf.mxu0 }
 0x4ff   :  { %v8113_v7 = vpop.f32.mrf.mxu1 }
 0x501   :  { %v8114_v59 = vpop.f32.mrf.mxu1 }
 0x502   :  { %v8115_v57 = vadd.f32 %v8114_v59, %v8113_v7 }
 0x503   :  { %v8116_v42 = vpop.f32.mrf.mxu1 }
 0x504   :  { %v7017_v49 = vadd.f32 %v8115_v57, %v6977_v4 }
 0x505   :  { %v8117_v47 = vpop.f32.mrf.mxu1 }
 0x506   :  { %v7022_v40 = vmax.f32 %v7017_v49, 0.0 }
 0x508   :  { %v7023_v54 = vpack.c.bf16 %v7022_v40, %v7022_v40 }
 0x50a   :  { %8145 = vmatmul.mubr.bf16.vlgmr.msra.gmra.mxu0 %v7023_v54 }
 0x5ca   :  { %v7129_v32 = vpop.f32.mrf.mxu0 }
 0x5cb   :  { %v7130_v56 = vadd.f32 %v8066_v25, %v7129_v32 }
 0x5cc   :  { %v8146_v60 = vpop.f32.mrf.mxu0 }
 0x5cd   :  { %7136 = vst.msk [vmem:[#allocation2] sm:$0x3] %vm7135_vm2, %v7130_v56 }
 0x5ce   :  { %v7132_v61 = vpop.f32.mrf.mxu0 }
 0x5cf   :  { %9531 = shalt.err (!%p9528_p4)
}
 0x5d0   :  { %7146 = dma.vmem_to_hbm [thread:$0]  %s7144_s26, 32, %s12658_s7, [#allocation3]   ;;  %v8147_v48 = vpop.f32.mrf.mxu0 }
 0x5d1   :  { %9540 = dma.done.wait [#allocation3], 32  }
 0x5d2   :  { %9541 = vsyncadd [#allocation3], 4294967264 }
 0x5d3   :  { %7150 = vsyncpa [#allocation3], 1 }

</bundles_post_ra>
